<compile_context>
chip_gen: v5e
topology: v5e:2x2
jax: 0.10.0
libtpu: 0.0.40
codegen_flags: <defaults>
</compile_context>

<pallas_src>
import math
import functools

import jax
import jax.numpy as jnp
from jax.experimental import pallas as pl
from jax.experimental.pallas import tpu as pltpu


# ----------------------------------------------------------------------------
# Hardware / tiling helpers
# ----------------------------------------------------------------------------

def _num_tensorcores():
    """Best-effort count of TensorCores per Pallas device (for megacore
    sharding via 'parallel' grid axes). Single-TC chips get 1."""
    try:
        kind = jax.devices()[0].device_kind.lower()
        if any(tag in kind for tag in ("v7", "v4", "v5p", "v5 p")):
            return 2
    except Exception:
        pass
    return 1


_NUM_CORES = _num_tensorcores()


def _round_up(x, m):
    return ((x + m - 1) // m) * m


def _row_tiling(M, tm_max=512):
    """Pick (tm, M_padded): tm a multiple of 8.  Split into multiple
    'parallel' tiles only when the chip has >1 TensorCore; on single-TC chips
    prefer one big tile (better HBM-roofline fraction).  When M > tm_max the
    tile count is chosen so row padding waste stays < 8 rows per tile."""
    Mp8 = _round_up(M, 8)
    if Mp8 <= tm_max:
        if _NUM_CORES > 1 and Mp8 % (8 * _NUM_CORES) == 0 and Mp8 >= 16 * _NUM_CORES:
            return Mp8 // _NUM_CORES, Mp8
        return Mp8, Mp8
    nt = -(-Mp8 // tm_max)
    if _NUM_CORES > 1:
        nt = _round_up(nt, _NUM_CORES)
    tm = _round_up(-(-Mp8 // nt), 8)
    return tm, tm * nt


def _pad_rows(a, Mp):
    M = a.shape[-2]
    if Mp == M:
        return a
    pad = [(0, 0)] * a.ndim
    pad[-2] = (0, Mp - M)
    return jnp.pad(a, pad)


def _vmem_limit(block_bytes):
    """Scoped-VMEM limit: at least 32 MiB (v5e default is 16), at most 48 MiB
    (safe under v7x's 64 MiB physical per TC)."""
    want = int(2.5 * block_bytes) + (4 << 20)
    return max(32 << 20, min(48 << 20, want))


# ----------------------------------------------------------------------------
# Fused matmul kernel:  maybe_relu(a @ w [+ a2 @ w2] + bias [+ residual])
# ----------------------------------------------------------------------------

def _mm_kernel(relu, has_mm2, has_res):
    def kernel(a_ref, w_ref, b_ref, *rest):
        o_ref = rest[-1]
        acc = jnp.dot(a_ref[...], w_ref[...], preferred_element_type=jnp.float32)
        idx = 0
        if has_mm2:
            a2_ref, w2_ref = rest[idx], rest[idx + 1]
            idx += 2
            acc = acc + jnp.dot(a2_ref[...], w2_ref[...],
                                preferred_element_type=jnp.float32)
        if has_res:
            acc = acc + rest[idx][...].astype(jnp.float32)  # fp32 epilogue add
            idx += 1
        acc = acc + b_ref[...]
        if relu:
            acc = jnp.maximum(acc, 0.0)
        o_ref[...] = acc.astype(o_ref.dtype)
    return kernel


def matmul_bias_act(a, w, bias, *, a2=None, w2=None, residual=None,
                    relu=False, out_dtype=jnp.bfloat16, tm_max=512):
    """maybe_relu(a @ w [+ a2 @ w2] + bias [+ residual]).

    bf16 MXU inputs, fp32 accumulation/epilogue.  `a2 @ w2` fuses a second
    matmul (downsample 1x1 conv) into the same accumulator; `residual` is
    added at its native dtype (fp32 for the identity path)."""
    M, K = a.shape
    Kw, N = w.shape
    assert K == Kw
    a = a.astype(jnp.bfloat16)
    w = w.astype(jnp.bfloat16)
    bias = bias.astype(jnp.float32).reshape(1, N)

    tm, Mp = _row_tiling(M, tm_max)
    a = _pad_rows(a, Mp)

    has_mm2 = a2 is not None
    has_res = residual is not None

    args = [a, w, bias]
    in_specs = [
        pl.BlockSpec((tm, K), lambda i: (i, 0)),
        pl.BlockSpec((K, N), lambda i: (0, 0)),      # weights resident
        pl.BlockSpec((1, N), lambda i: (0, 0)),
    ]
    blk = tm * K * 2 + K * N * 2 + N * 4 + tm * N * jnp.dtype(out_dtype).itemsize

    if has_mm2:
        K2 = a2.shape[1]
        args += [_pad_rows(a2.astype(jnp.bfloat16), Mp), w2.astype(jnp.bfloat16)]
        in_specs += [pl.BlockSpec((tm, K2), lambda i: (i, 0)),
                     pl.BlockSpec((K2, N), lambda i: (0, 0))]
        blk += tm * K2 * 2 + K2 * N * 2
    if has_res:
        args.append(_pad_rows(residual, Mp))
        in_specs.append(pl.BlockSpec((tm, N), lambda i: (i, 0)))
        blk += tm * N * residual.dtype.itemsize

    out = pl.pallas_call(
        _mm_kernel(relu, has_mm2, has_res),
        out_shape=jax.ShapeDtypeStruct((Mp, N), out_dtype),
        grid=(Mp // tm,),
        in_specs=in_specs,
        out_specs=pl.BlockSpec((tm, N), lambda i: (i, 0)),
        compiler_params=pltpu.CompilerParams(
            dimension_semantics=("parallel",),
            vmem_limit_bytes=_vmem_limit(blk)),
    )(*args)
    return out[:M] if Mp != M else out


# ----------------------------------------------------------------------------
# 3x3 conv + folded BN + ReLU  (direct conv, all 9 taps inside one kernel call)
# ----------------------------------------------------------------------------

def _make_conv3x3_kernel(stride, Ho, Wo):
    def kernel(xph_ref, w_ref, b_ref, o_ref):
        # xph_ref: (1, s*s, Hh, Wh, C) phase-decomposed padded input (bf16)
        # w_ref:   (9, C, Cout) folded weights, VMEM-resident across the grid
        C = xph_ref.shape[-1]
        Cout = w_ref.shape[-1]
        # Load each phase once; all 9 taps are static register-level slices.
        phases = [xph_ref[0, p] for p in range(stride * stride)]
        acc = jnp.zeros((Ho * Wo, Cout), jnp.float32)
        for dy in range(3):
            for dx in range(3):
                ph = (dy % stride) * stride + (dx % stride)
                oy, ox = dy // stride, dx // stride
                tap = phases[ph][oy:oy + Ho, ox:ox + Wo, :].reshape(Ho * Wo, C)
                acc = acc + jnp.dot(tap, w_ref[dy * 3 + dx],
                                    preferred_element_type=jnp.float32)
        acc = jnp.maximum(acc + b_ref[...], 0.0)
        o_ref[...] = acc.reshape(1, Ho, Wo, Cout).astype(o_ref.dtype)
    return kernel


def conv3x3_bn_relu(x, w_folded, bias, stride, out_dtype=jnp.bfloat16):
    """3x3 conv (padding=1, stride s) + folded BN + ReLU.

    x: (N, H, W, C) NHWC; w_folded: (3, 3, C, Cout) with BN scale folded in.
    The padded input is phase-decomposed once in the wrapper (free for s=1,
    ~1x input traffic for s=2) so the kernel needs only contiguous static
    slices — no (9, M, C) im2row intermediate and no strided in-kernel loads.
    """
    N, H, W, C = x.shape
    Cout = w_folded.shape[-1]
    s = int(stride)
    Ho = (H + 2 - 3) // s + 1
    Wo = (W + 2 - 3) // s + 1
    Hh = Ho + 2 // s                       # rows needed per phase
    Wh = Wo + 2 // s

    x = x.astype(jnp.bfloat16)
    xp = jnp.pad(x, ((0, 0), (1, s * Hh - H - 1), (1, s * Wh - W - 1), (0, 0)))
    # xph[n, p*s+q, i, j, c] == xp[n, s*i+p, s*j+q, c]
    xph = xp.reshape(N, Hh, s, Wh, s, C).transpose(0, 2, 4, 1, 3, 5)
    xph = xph.reshape(N, s * s, Hh, Wh, C)

    w = w_folded.reshape(9, C, Cout).astype(jnp.bfloat16)
    b = bias.astype(jnp.float32).reshape(1, Cout)

    blk = (s * s * Hh * Wh * C * 2 + 9 * C * Cout * 2 + Cout * 4
           + Ho * Wo * Cout * (2 + 4))
    out = pl.pallas_call(
        _make_conv3x3_kernel(s, Ho, Wo),
        out_shape=jax.ShapeDtypeStruct((N, Ho, Wo, Cout), out_dtype),
        grid=(N,),                                           # one image / step
        in_specs=[
            pl.BlockSpec((1, s * s, Hh, Wh, C), lambda n: (n, 0, 0, 0, 0)),
            pl.BlockSpec((9, C, Cout), lambda n: (0, 0, 0)),  # weights resident
            pl.BlockSpec((1, Cout), lambda n: (0, 0)),
        ],
        out_specs=pl.BlockSpec((1, Ho, Wo, Cout), lambda n: (n, 0, 0, 0)),
        compiler_params=pltpu.CompilerParams(
            dimension_semantics=("parallel",),
            vmem_limit_bytes=_vmem_limit(blk)),
    )(xph, w, b)
    return out


# ----------------------------------------------------------------------------
# BN folding, params, forward
# ----------------------------------------------------------------------------

def fold_bn(w_hwio, bn, eps=1e-5):
    """Return (weight * scale, bias) with eval-mode BN folded into the weight."""
    scale = bn["gamma"] / jnp.sqrt(bn["var"] + eps)
    bias = bn["beta"] - bn["mean"] * scale
    return w_hwio * scale, bias          # scale broadcasts over out-channel axis


def init_bottleneck(key, inplanes, planes, downsample=False):
    ks = jax.random.split(key, 8)

    def conv_w(k, kh, kw, cin, cout):
        std = math.sqrt(2.0 / (kh * kw * cin))
        return std * jax.random.normal(k, (kh, kw, cin, cout), jnp.float32)

    def bn(k, c):
        k1, k2, k3, k4 = jax.random.split(k, 4)
        return dict(
            gamma=1.0 + 0.1 * jax.random.normal(k1, (c,), jnp.float32),
            beta=0.1 * jax.random.normal(k2, (c,), jnp.float32),
            mean=0.1 * jax.random.normal(k3, (c,), jnp.float32),
            var=1.0 + 0.1 * jax.random.uniform(k4, (c,), jnp.float32),
        )

    out_planes = planes * 4              # Bottleneck.expansion = 4
    p = dict(
        conv1_w=conv_w(ks[0], 1, 1, inplanes, planes), bn1=bn(ks[1], planes),
        conv2_w=conv_w(ks[2], 3, 3, planes, planes),   bn2=bn(ks[3], planes),
        conv3_w=conv_w(ks[4], 1, 1, planes, out_planes), bn3=bn(ks[5], out_planes),
    )
    if downsample:
        p["ds_w"] = conv_w(ks[6], 1, 1, inplanes, out_planes)
        p["ds_bn"] = bn(ks[7], out_planes)
    return p


def bottleneck_forward_nhwc(params, x, stride=1, out_dtype=jnp.float32):
    """NHWC Bottleneck forward (eval-mode BN).  Use this end-to-end in a
    network to avoid per-block layout transposes."""
    N, H, W, Cin = x.shape
    planes = params["conv1_w"].shape[-1]
    out_planes = params["conv3_w"].shape[-1]
    has_ds = "ds_w" in params
    if not has_ds:
        assert stride == 1 and Cin == out_planes, \
            "identity residual requires stride=1 and Cin == 4*planes"

    # Fold eval-mode BN into the weights; only the bias survives per epilogue.
    w1, b1 = fold_bn(params["conv1_w"], params["bn1"])
    w2, b2 = fold_bn(params["conv2_w"], params["bn2"])
    w3, b3 = fold_bn(params["conv3_w"], params["bn3"])

    # conv1 (1x1) + bn1 + relu
    out = matmul_bias_act(x.reshape(N * H * W, Cin), w1.reshape(Cin, planes),
                          b1, relu=True)
    out = out.reshape(N, H, W, planes)

    # conv2 (3x3, stride, pad=1) + bn2 + relu  (direct conv, 9 taps in-kernel)
    out = conv3x3_bn_relu(out, w2, b2, stride)
    _, Ho, Wo, _ = out.shape
    out2d = out.reshape(N * Ho * Wo, planes)

    # conv3 (1x1) + bn3 + residual + relu  (residual path fused into this call)
    if has_ds:
        wd, bd = fold_bn(params["ds_w"], params["ds_bn"])
        xs = x[:, ::stride, ::stride, :] if stride > 1 else x
        y = matmul_bias_act(out2d, w3.reshape(planes, out_planes), b3 + bd,
                            a2=xs.reshape(N * Ho * Wo, Cin),
                            w2=wd.reshape(Cin, out_planes),
                            relu=True, out_dtype=out_dtype)
    else:
        y = matmul_bias_act(out2d, w3.reshape(planes, out_planes), b3,
                            residual=x.reshape(N * H * W, Cin).astype(jnp.float32),
                            relu=True, out_dtype=out_dtype)
    return y.reshape(N, Ho, Wo, out_planes)


@functools.partial(jax.jit, static_argnames=("stride",))
def bottleneck_forward(params, x_nchw, stride=1):
    """NCHW wrapper matching the PyTorch module interface (fp32 output)."""
    x = jnp.transpose(x_nchw, (0, 2, 3, 1))          # NHWC
    y = bottleneck_forward_nhwc(params, x, stride=stride, out_dtype=jnp.float32)
    return jnp.transpose(y, (0, 3, 1, 2))             # back to NCHW


# ----------------------------------------------------------------------------
# Pure-JAX reference (eval-mode semantics) for a sanity check
# ----------------------------------------------------------------------------

def _conv_ref(x, w, stride, pad):
    return jax.lax.conv_general_dilated(
        x, w, (stride, stride), ((pad, pad), (pad, pad)),
        dimension_numbers=("NCHW", "HWIO", "NCHW"))


def _bn_ref(x, bn, eps=1e-5):
    scale = bn["gamma"] / jnp.sqrt(bn["var"] + eps)
    bias = bn["beta"] - bn["mean"] * scale
    return x * scale[None, :, None, None] + bias[None, :, None, None]


def bottleneck_ref(params, x, stride=1):
    out = jax.nn.relu(_bn_ref(_conv_ref(x, params["conv1_w"], 1, 0), params["bn1"]))
    out = jax.nn.relu(_bn_ref(_conv_ref(out, params["conv2_w"], stride, 1), params["bn2"]))
    out = _bn_ref(_conv_ref(out, params["conv3_w"], 1, 0), params["bn3"])
    if "ds_w" in params:
        residual = _bn_ref(_conv_ref(x, params["ds_w"], stride, 0), params["ds_bn"])
    else:
        residual = x
    return jax.nn.relu(out + residual)


# ----------------------------------------------------------------------------
# Main
# ----------------------------------------------------------------------------

if __name__ == "__main__":
    key = jax.random.PRNGKey(0)
    k1, k2, kx = jax.random.split(key, 3)

    # Small but lane-denser demo: out_planes = 128 channels on the lane axis.
    B, inplanes, planes, H, W = 2, 128, 32, 16, 16     # inplanes == planes*4
    x = jax.random.normal(kx, (B, inplanes, H, W), jnp.float32)

    # Case 1: identity residual, stride 1.
    p1 = init_bottleneck(k1, inplanes, planes, downsample=False)
    y1 = jax.block_until_ready(bottleneck_forward(p1, x, stride=1))
    assert y1.shape == (B, planes * 4, H, W), y1.shape
    assert bool(jnp.all(jnp.isfinite(y1)))
    r1 = bottleneck_ref(p1, x, stride=1)
    err1 = float(jnp.max(jnp.abs(y1 - r1)))
    assert err1 < 0.3, err1                            # bf16-vs-fp32 tolerance

    # Case 2: stride-2 block with 1x1 downsample fused into conv3.
    p2 = init_bottleneck(k2, inplanes, planes, downsample=True)
    y2 = jax.block_until_ready(bottleneck_forward(p2, x, stride=2))
    assert y2.shape == (B, planes * 4, H // 2, W // 2), y2.shape
    assert bool(jnp.all(jnp.isfinite(y2)))
    r2 = bottleneck_ref(p2, x, stride=2)
    err2 = float(jnp.max(jnp.abs(y2 - r2)))
    assert err2 < 0.3, err2

    print("KERNEL_OK")
</pallas_src>

<mosaic_0001>
module attributes {stable_mosaic.version = 11 : i64} {
  func.func @kernel(%arg0: i32, %arg1: memref<512x128xbf16, #tpu.memory_space<vmem>>, %arg2: memref<128x32xbf16, #tpu.memory_space<vmem>>, %arg3: memref<1x32xf32, #tpu.memory_space<vmem>>, %arg4: memref<512x32xbf16, #tpu.memory_space<vmem>>) attributes {dimension_semantics = [#tpu.dimension_semantics<parallel>], iteration_bounds = array<i64: 1>, scalar_prefetch = 0 : i64, scratch_operands = 0 : i64, tpu.core_type = #tpu.core_type<tc>, window_params = [{transform_indices = @transform_0, window_bounds = array<i64: 512, 128>}, {pipeline_mode = #tpu.pipeline_mode<synchronous>, transform_indices = @transform_1, window_bounds = array<i64: 128, 32>}, {pipeline_mode = #tpu.pipeline_mode<synchronous>, transform_indices = @transform_2, window_bounds = array<i64: 1, 32>}, {transform_indices = @transform_3, window_bounds = array<i64: 512, 32>}]} {
    %c0 = arith.constant 0 : index
    %c0_0 = arith.constant 0 : index
    %0 = vector.load %arg1[%c0, %c0_0] : memref<512x128xbf16, #tpu.memory_space<vmem>>, vector<512x128xbf16>
    %c0_1 = arith.constant 0 : index
    %c0_2 = arith.constant 0 : index
    %1 = vector.load %arg2[%c0_1, %c0_2] : memref<128x32xbf16, #tpu.memory_space<vmem>>, vector<128x32xbf16>
    %cst = arith.constant dense<0.000000e+00> : vector<512x32xf32>
    %2 = tpu.matmul %0, %1, %cst {dimension_numbers = #tpu.dot_dimension_numbers<[1], [0], [0], [1], [0, 0, 1, 1], [], []>} : vector<512x128xbf16>, vector<128x32xbf16>, vector<512x32xf32> -> vector<512x32xf32>
    %c0_3 = arith.constant 0 : index
    %c0_4 = arith.constant 0 : index
    %3 = vector.load %arg3[%c0_3, %c0_4] : memref<1x32xf32, #tpu.memory_space<vmem>>, vector<1x32xf32>
    %4 = vector.broadcast %3 : vector<1x32xf32> to vector<512x32xf32>
    %5 = arith.addf %2, %4 : vector<512x32xf32>
    %cst_5 = arith.constant 0.000000e+00 : f32
    %6 = vector.broadcast %cst_5 : f32 to vector<512x32xf32>
    %7 = arith.maximumf %5, %6 : vector<512x32xf32>
    %8 = arith.truncf %7 : vector<512x32xf32> to vector<512x32xbf16>
    %c0_6 = arith.constant 0 : index
    %c0_7 = arith.constant 0 : index
    %9 = vector.load %arg4[%c0_6, %c0_7] : memref<512x32xbf16, #tpu.memory_space<vmem>>, vector<512x32xbf16>
    tpu.vector_store %arg4[%c0_6, %c0_7], %8 {strides = array<i32>} : memref<512x32xbf16, #tpu.memory_space<vmem>>, vector<512x32xbf16>,
    return
  }
  func.func @transform_0(%arg0: i32) -> (i32, i32) {
    %c0_i32 = arith.constant 0 : i32
    %c0_i32_0 = arith.constant 0 : i32
    return %arg0, %c0_i32 : i32, i32
  }
  func.func @transform_1(%arg0: i32) -> (i32, i32) {
    %c0_i32 = arith.constant 0 : i32
    %c0_i32_0 = arith.constant 0 : i32
    %c0_i32_1 = arith.constant 0 : i32
    return %c0_i32, %c0_i32_0 : i32, i32
  }
  func.func @transform_2(%arg0: i32) -> (i32, i32) {
    %c0_i32 = arith.constant 0 : i32
    %c0_i32_0 = arith.constant 0 : i32
    %c0_i32_1 = arith.constant 0 : i32
    return %c0_i32, %c0_i32_0 : i32, i32
  }
  func.func @transform_3(%arg0: i32) -> (i32, i32) {
    %c0_i32 = arith.constant 0 : i32
    %c0_i32_0 = arith.constant 0 : i32
    return %arg0, %c0_i32 : i32, i32
  }
}

module attributes {stable_mosaic.version = 11 : i64} {
  func.func @kernel(%arg0: i32, %arg1: memref<1x1x18x18x32xbf16, #tpu.memory_space<vmem>>, %arg2: memref<9x32x32xbf16, #tpu.memory_space<vmem>>, %arg3: memref<1x32xf32, #tpu.memory_space<vmem>>, %arg4: memref<1x16x16x32xbf16, #tpu.memory_space<vmem>>) attributes {dimension_semantics = [#tpu.dimension_semantics<parallel>], iteration_bounds = array<i64: 2>, scalar_prefetch = 0 : i64, scratch_operands = 0 : i64, tpu.core_type = #tpu.core_type<tc>, window_params = [{transform_indices = @transform_0, window_bounds = array<i64: 1, 1, 18, 18, 32>}, {pipeline_mode = #tpu.pipeline_mode<synchronous>, transform_indices = @transform_1, window_bounds = array<i64: 9, 32, 32>}, {pipeline_mode = #tpu.pipeline_mode<synchronous>, transform_indices = @transform_2, window_bounds = array<i64: 1, 32>}, {transform_indices = @transform_3, window_bounds = array<i64: 1, 16, 16, 32>}]} {
    %c0 = arith.constant 0 : index
    %c0_0 = arith.constant 0 : index
    %c0_1 = arith.constant 0 : index
    %c0_2 = arith.constant 0 : index
    %c0_3 = arith.constant 0 : index
    %0 = vector.load %arg1[%c0, %c0_0, %c0_1, %c0_2, %c0_3] : memref<1x1x18x18x32xbf16, #tpu.memory_space<vmem>>, vector<1x1x18x18x32xbf16>
    %1 = vector.shape_cast %0 : vector<1x1x18x18x32xbf16> to vector<18x18x32xbf16>
    %cst = arith.constant 0.000000e+00 : f32
    %2 = vector.broadcast %cst : f32 to vector<256x32xf32>
    %3 = vector.extract_strided_slice %1 {offsets = [0, 0, 0], sizes = [16, 16, 32], strides = [1, 1, 1]} : vector<18x18x32xbf16> to vector<16x16x32xbf16>
    %4 = vector.shape_cast %3 : vector<16x16x32xbf16> to vector<256x32xbf16>
    %c0_4 = arith.constant 0 : index
    %c0_5 = arith.constant 0 : index
    %c0_6 = arith.constant 0 : index
    %5 = vector.load %arg2[%c0_4, %c0_5, %c0_6] : memref<9x32x32xbf16, #tpu.memory_space<vmem>>, vector<1x32x32xbf16>
    %6 = vector.shape_cast %5 : vector<1x32x32xbf16> to vector<32x32xbf16>
    %cst_7 = arith.constant dense<0.000000e+00> : vector<256x32xf32>
    %7 = tpu.matmul %4, %6, %cst_7 {dimension_numbers = #tpu.dot_dimension_numbers<[1], [0], [0], [1], [0, 0, 1, 1], [], []>} : vector<256x32xbf16>, vector<32x32xbf16>, vector<256x32xf32> -> vector<256x32xf32>
    %8 = arith.addf %2, %7 : vector<256x32xf32>
    %9 = vector.extract_strided_slice %1 {offsets = [0, 1, 0], sizes = [16, 16, 32], strides = [1, 1, 1]} : vector<18x18x32xbf16> to vector<16x16x32xbf16>
    %10 = vector.shape_cast %9 : vector<16x16x32xbf16> to vector<256x32xbf16>
    %c1 = arith.constant 1 : index
    %c0_8 = arith.constant 0 : index
    %c0_9 = arith.constant 0 : index
    %11 = vector.load %arg2[%c1, %c0_8, %c0_9] : memref<9x32x32xbf16, #tpu.memory_space<vmem>>, vector<1x32x32xbf16>
    %12 = vector.shape_cast %11 : vector<1x32x32xbf16> to vector<32x32xbf16>
    %cst_10 = arith.constant dense<0.000000e+00> : vector<256x32xf32>
    %13 = tpu.matmul %10, %12, %cst_10 {dimension_numbers = #tpu.dot_dimension_numbers<[1], [0], [0], [1], [0, 0, 1, 1], [], []>} : vector<256x32xbf16>, vector<32x32xbf16>, vector<256x32xf32> -> vector<256x32xf32>
    %14 = arith.addf %8, %13 : vector<256x32xf32>
    %15 = vector.extract_strided_slice %1 {offsets = [0, 2, 0], sizes = [16, 16, 32], strides = [1, 1, 1]} : vector<18x18x32xbf16> to vector<16x16x32xbf16>
    %16 = vector.shape_cast %15 : vector<16x16x32xbf16> to vector<256x32xbf16>
    %c2 = arith.constant 2 : index
    %c0_11 = arith.constant 0 : index
    %c0_12 = arith.constant 0 : index
    %17 = vector.load %arg2[%c2, %c0_11, %c0_12] : memref<9x32x32xbf16, #tpu.memory_space<vmem>>, vector<1x32x32xbf16>
    %18 = vector.shape_cast %17 : vector<1x32x32xbf16> to vector<32x32xbf16>
    %cst_13 = arith.constant dense<0.000000e+00> : vector<256x32xf32>
    %19 = tpu.matmul %16, %18, %cst_13 {dimension_numbers = #tpu.dot_dimension_numbers<[1], [0], [0], [1], [0, 0, 1, 1], [], []>} : vector<256x32xbf16>, vector<32x32xbf16>, vector<256x32xf32> -> vector<256x32xf32>
    %20 = arith.addf %14, %19 : vector<256x32xf32>
    %21 = vector.extract_strided_slice %1 {offsets = [1, 0, 0], sizes = [16, 16, 32], strides = [1, 1, 1]} : vector<18x18x32xbf16> to vector<16x16x32xbf16>
    %22 = vector.shape_cast %21 : vector<16x16x32xbf16> to vector<256x32xbf16>
    %c3 = arith.constant 3 : index
    %c0_14 = arith.constant 0 : index
    %c0_15 = arith.constant 0 : index
    %23 = vector.load %arg2[%c3, %c0_14, %c0_15] : memref<9x32x32xbf16, #tpu.memory_space<vmem>>, vector<1x32x32xbf16>
    %24 = vector.shape_cast %23 : vector<1x32x32xbf16> to vector<32x32xbf16>
    %cst_16 = arith.constant dense<0.000000e+00> : vector<256x32xf32>
    %25 = tpu.matmul %22, %24, %cst_16 {dimension_numbers = #tpu.dot_dimension_numbers<[1], [0], [0], [1], [0, 0, 1, 1], [], []>} : vector<256x32xbf16>, vector<32x32xbf16>, vector<256x32xf32> -> vector<256x32xf32>
    %26 = arith.addf %20, %25 : vector<256x32xf32>
    %27 = vector.extract_strided_slice %1 {offsets = [1, 1, 0], sizes = [16, 16, 32], strides = [1, 1, 1]} : vector<18x18x32xbf16> to vector<16x16x32xbf16>
    %28 = vector.shape_cast %27 : vector<16x16x32xbf16> to vector<256x32xbf16>
    %c4 = arith.constant 4 : index
    %c0_17 = arith.constant 0 : index
    %c0_18 = arith.constant 0 : index
    %29 = vector.load %arg2[%c4, %c0_17, %c0_18] : memref<9x32x32xbf16, #tpu.memory_space<vmem>>, vector<1x32x32xbf16>
    %30 = vector.shape_cast %29 : vector<1x32x32xbf16> to vector<32x32xbf16>
    %cst_19 = arith.constant dense<0.000000e+00> : vector<256x32xf32>
    %31 = tpu.matmul %28, %30, %cst_19 {dimension_numbers = #tpu.dot_dimension_numbers<[1], [0], [0], [1], [0, 0, 1, 1], [], []>} : vector<256x32xbf16>, vector<32x32xbf16>, vector<256x32xf32> -> vector<256x32xf32>
    %32 = arith.addf %26, %31 : vector<256x32xf32>
    %33 = vector.extract_strided_slice %1 {offsets = [1, 2, 0], sizes = [16, 16, 32], strides = [1, 1, 1]} : vector<18x18x32xbf16> to vector<16x16x32xbf16>
    %34 = vector.shape_cast %33 : vector<16x16x32xbf16> to vector<256x32xbf16>
    %c5 = arith.constant 5 : index
    %c0_20 = arith.constant 0 : index
    %c0_21 = arith.constant 0 : index
    %35 = vector.load %arg2[%c5, %c0_20, %c0_21] : memref<9x32x32xbf16, #tpu.memory_space<vmem>>, vector<1x32x32xbf16>
    %36 = vector.shape_cast %35 : vector<1x32x32xbf16> to vector<32x32xbf16>
    %cst_22 = arith.constant dense<0.000000e+00> : vector<256x32xf32>
    %37 = tpu.matmul %34, %36, %cst_22 {dimension_numbers = #tpu.dot_dimension_numbers<[1], [0], [0], [1], [0, 0, 1, 1], [], []>} : vector<256x32xbf16>, vector<32x32xbf16>, vector<256x32xf32> -> vector<256x32xf32>
    %38 = arith.addf %32, %37 : vector<256x32xf32>
    %39 = vector.extract_strided_slice %1 {offsets = [2, 0, 0], sizes = [16, 16, 32], strides = [1, 1, 1]} : vector<18x18x32xbf16> to vector<16x16x32xbf16>
    %40 = vector.shape_cast %39 : vector<16x16x32xbf16> to vector<256x32xbf16>
    %c6 = arith.constant 6 : index
    %c0_23 = arith.constant 0 : index
    %c0_24 = arith.constant 0 : index
    %41 = vector.load %arg2[%c6, %c0_23, %c0_24] : memref<9x32x32xbf16, #tpu.memory_space<vmem>>, vector<1x32x32xbf16>
    %42 = vector.shape_cast %41 : vector<1x32x32xbf16> to vector<32x32xbf16>
    %cst_25 = arith.constant dense<0.000000e+00> : vector<256x32xf32>
    %43 = tpu.matmul %40, %42, %cst_25 {dimension_numbers = #tpu.dot_dimension_numbers<[1], [0], [0], [1], [0, 0, 1, 1], [], []>} : vector<256x32xbf16>, vector<32x32xbf16>, vector<256x32xf32> -> vector<256x32xf32>
    %44 = arith.addf %38, %43 : vector<256x32xf32>
    %45 = vector.extract_strided_slice %1 {offsets = [2, 1, 0], sizes = [16, 16, 32], strides = [1, 1, 1]} : vector<18x18x32xbf16> to vector<16x16x32xbf16>
    %46 = vector.shape_cast %45 : vector<16x16x32xbf16> to vector<256x32xbf16>
    %c7 = arith.constant 7 : index
    %c0_26 = arith.constant 0 : index
    %c0_27 = arith.constant 0 : index
    %47 = vector.load %arg2[%c7, %c0_26, %c0_27] : memref<9x32x32xbf16, #tpu.memory_space<vmem>>, vector<1x32x32xbf16>
    %48 = vector.shape_cast %47 : vector<1x32x32xbf16> to vector<32x32xbf16>
    %cst_28 = arith.constant dense<0.000000e+00> : vector<256x32xf32>
    %49 = tpu.matmul %46, %48, %cst_28 {dimension_numbers = #tpu.dot_dimension_numbers<[1], [0], [0], [1], [0, 0, 1, 1], [], []>} : vector<256x32xbf16>, vector<32x32xbf16>, vector<256x32xf32> -> vector<256x32xf32>
    %50 = arith.addf %44, %49 : vector<256x32xf32>
    %51 = vector.extract_strided_slice %1 {offsets = [2, 2, 0], sizes = [16, 16, 32], strides = [1, 1, 1]} : vector<18x18x32xbf16> to vector<16x16x32xbf16>
    %52 = vector.shape_cast %51 : vector<16x16x32xbf16> to vector<256x32xbf16>
    %c8 = arith.constant 8 : index
    %c0_29 = arith.constant 0 : index
    %c0_30 = arith.constant 0 : index
    %53 = vector.load %arg2[%c8, %c0_29, %c0_30] : memref<9x32x32xbf16, #tpu.memory_space<vmem>>, vector<1x32x32xbf16>
    %54 = vector.shape_cast %53 : vector<1x32x32xbf16> to vector<32x32xbf16>
    %cst_31 = arith.constant dense<0.000000e+00> : vector<256x32xf32>
    %55 = tpu.matmul %52, %54, %cst_31 {dimension_numbers = #tpu.dot_dimension_numbers<[1], [0], [0], [1], [0, 0, 1, 1], [], []>} : vector<256x32xbf16>, vector<32x32xbf16>, vector<256x32xf32> -> vector<256x32xf32>
    %56 = arith.addf %50, %55 : vector<256x32xf32>
    %c0_32 = arith.constant 0 : index
    %c0_33 = arith.constant 0 : index
    %57 = vector.load %arg3[%c0_32, %c0_33] : memref<1x32xf32, #tpu.memory_space<vmem>>, vector<1x32xf32>
    %58 = vector.broadcast %57 : vector<1x32xf32> to vector<256x32xf32>
    %59 = arith.addf %56, %58 : vector<256x32xf32>
    %cst_34 = arith.constant 0.000000e+00 : f32
    %60 = vector.broadcast %cst_34 : f32 to vector<256x32xf32>
    %61 = arith.maximumf %59, %60 : vector<256x32xf32>
    %62 = vector.shape_cast %61 : vector<256x32xf32> to vector<1x16x16x32xf32>
    %63 = arith.truncf %62 : vector<1x16x16x32xf32> to vector<1x16x16x32xbf16>
    %c0_35 = arith.constant 0 : index
    %c0_36 = arith.constant 0 : index
    %c0_37 = arith.constant 0 : index
    %c0_38 = arith.constant 0 : index
    %64 = vector.load %arg4[%c0_35, %c0_36, %c0_37, %c0_38] : memref<1x16x16x32xbf16, #tpu.memory_space<vmem>>, vector<1x16x16x32xbf16>
    tpu.vector_store %arg4[%c0_35, %c0_36, %c0_37, %c0_38], %63 {strides = array<i32>} : memref<1x16x16x32xbf16, #tpu.memory_space<vmem>>, vector<1x16x16x32xbf16>,
    return
  }
  func.func @transform_0(%arg0: i32) -> (i32, i32, i32, i32, i32) {
    %c0_i32 = arith.constant 0 : i32
    %c0_i32_0 = arith.constant 0 : i32
    %c0_i32_1 = arith.constant 0 : i32
    %c0_i32_2 = arith.constant 0 : i32
    %c0_i32_3 = arith.constant 0 : i32
    return %arg0, %c0_i32, %c0_i32_0, %c0_i32_1, %c0_i32_2 : i32, i32, i32, i32, i32
  }
  func.func @transform_1(%arg0: i32) -> (i32, i32, i32) {
    %c0_i32 = arith.constant 0 : i32
    %c0_i32_0 = arith.constant 0 : i32
    %c0_i32_1 = arith.constant 0 : i32
    %c0_i32_2 = arith.constant 0 : i32
    return %c0_i32, %c0_i32_0, %c0_i32_1 : i32, i32, i32
  }
  func.func @transform_2(%arg0: i32) -> (i32, i32) {
    %c0_i32 = arith.constant 0 : i32
    %c0_i32_0 = arith.constant 0 : i32
    %c0_i32_1 = arith.constant 0 : i32
    return %c0_i32, %c0_i32_0 : i32, i32
  }
  func.func @transform_3(%arg0: i32) -> (i32, i32, i32, i32) {
    %c0_i32 = arith.constant 0 : i32
    %c0_i32_0 = arith.constant 0 : i32
    %c0_i32_1 = arith.constant 0 : i32
    %c0_i32_2 = arith.constant 0 : i32
    return %arg0, %c0_i32, %c0_i32_0, %c0_i32_1 : i32, i32, i32, i32
  }
}

module attributes {stable_mosaic.version = 11 : i64} {
  func.func @kernel(%arg0: i32, %arg1: memref<512x32xbf16, #tpu.memory_space<vmem>>, %arg2: memref<32x128xbf16, #tpu.memory_space<vmem>>, %arg3: memref<1x128xf32, #tpu.memory_space<vmem>>, %arg4: memref<512x128xf32, #tpu.memory_space<vmem>>, %arg5: memref<512x128xf32, #tpu.memory_space<vmem>>) attributes {dimension_semantics = [#tpu.dimension_semantics<parallel>], iteration_bounds = array<i64: 1>, scalar_prefetch = 0 : i64, scratch_operands = 0 : i64, tpu.core_type = #tpu.core_type<tc>, window_params = [{transform_indices = @transform_0, window_bounds = array<i64: 512, 32>}, {pipeline_mode = #tpu.pipeline_mode<synchronous>, transform_indices = @transform_1, window_bounds = array<i64: 32, 128>}, {pipeline_mode = #tpu.pipeline_mode<synchronous>, transform_indices = @transform_2, window_bounds = array<i64: 1, 128>}, {transform_indices = @transform_3, window_bounds = array<i64: 512, 128>}, {transform_indices = @transform_4, window_bounds = array<i64: 512, 128>}]} {
    %c0 = arith.constant 0 : index
    %c0_0 = arith.constant 0 : index
    %0 = vector.load %arg1[%c0, %c0_0] : memref<512x32xbf16, #tpu.memory_space<vmem>>, vector<512x32xbf16>
    %c0_1 = arith.constant 0 : index
    %c0_2 = arith.constant 0 : index
    %1 = vector.load %arg2[%c0_1, %c0_2] : memref<32x128xbf16, #tpu.memory_space<vmem>>, vector<32x128xbf16>
    %cst = arith.constant dense<0.000000e+00> : vector<512x128xf32>
    %2 = tpu.matmul %0, %1, %cst {dimension_numbers = #tpu.dot_dimension_numbers<[1], [0], [0], [1], [0, 0, 1, 1], [], []>} : vector<512x32xbf16>, vector<32x128xbf16>, vector<512x128xf32> -> vector<512x128xf32>
    %c0_3 = arith.constant 0 : index
    %c0_4 = arith.constant 0 : index
    %3 = vector.load %arg4[%c0_3, %c0_4] : memref<512x128xf32, #tpu.memory_space<vmem>>, vector<512x128xf32>
    %4 = arith.addf %2, %3 : vector<512x128xf32>
    %c0_5 = arith.constant 0 : index
    %c0_6 = arith.constant 0 : index
    %5 = vector.load %arg3[%c0_5, %c0_6] : memref<1x128xf32, #tpu.memory_space<vmem>>, vector<1x128xf32>
    %6 = vector.broadcast %5 : vector<1x128xf32> to vector<512x128xf32>
    %7 = arith.addf %4, %6 : vector<512x128xf32>
    %cst_7 = arith.constant 0.000000e+00 : f32
    %8 = vector.broadcast %cst_7 : f32 to vector<512x128xf32>
    %9 = arith.maximumf %7, %8 : vector<512x128xf32>
    %c0_8 = arith.constant 0 : index
    %c0_9 = arith.constant 0 : index
    %10 = vector.load %arg5[%c0_8, %c0_9] : memref<512x128xf32, #tpu.memory_space<vmem>>, vector<512x128xf32>
    tpu.vector_store %arg5[%c0_8, %c0_9], %9 {strides = array<i32>} : memref<512x128xf32, #tpu.memory_space<vmem>>, vector<512x128xf32>,
    return
  }
  func.func @transform_0(%arg0: i32) -> (i32, i32) {
    %c0_i32 = arith.constant 0 : i32
    %c0_i32_0 = arith.constant 0 : i32
    return %arg0, %c0_i32 : i32, i32
  }
  func.func @transform_1(%arg0: i32) -> (i32, i32) {
    %c0_i32 = arith.constant 0 : i32
    %c0_i32_0 = arith.constant 0 : i32
    %c0_i32_1 = arith.constant 0 : i32
    return %c0_i32, %c0_i32_0 : i32, i32
  }
  func.func @transform_2(%arg0: i32) -> (i32, i32) {
    %c0_i32 = arith.constant 0 : i32
    %c0_i32_0 = arith.constant 0 : i32
    %c0_i32_1 = arith.constant 0 : i32
    return %c0_i32, %c0_i32_0 : i32, i32
  }
  func.func @transform_3(%arg0: i32) -> (i32, i32) {
    %c0_i32 = arith.constant 0 : i32
    %c0_i32_0 = arith.constant 0 : i32
    return %arg0, %c0_i32 : i32, i32
  }
  func.func @transform_4(%arg0: i32) -> (i32, i32) {
    %c0_i32 = arith.constant 0 : i32
    %c0_i32_0 = arith.constant 0 : i32
    return %arg0, %c0_i32 : i32, i32
  }
}

</mosaic_0001>

<bundles_post_ra>
// kernel: bottleneck_forward.3
= control target key start
LH: loop header
LB: loop body
LE: loop exit
PB: predicated region body
PF: predicated region fallthrough
CT: control target
= control target key end

     0   :  { %vm635_vm0 = vcmask 257024   ;;  %s1394_s1 = inlined_call_operand.vmem [shape: bf16[128,32], index: 1, kind: input, shape index: {}]   ;;  %s1395_s2 = inlined_call_operand.vmem [shape: f32[1,32], index: 2, kind: input, shape index: {}]   ;;  %s1396_s0 = inlined_call_operand.vmem [shape: bf16[512,128], index: 0, kind: input, shape index: {}]   ;;  %s1397_s3 = inlined_call_operand.vmem [shape: bf16[512,32], index: 3, kind: output, shape index: {}]  }
   0x1   :  { %v903_v0 = vld [vmem:[%s1394_s1 + $0x38] sm:$0xff]  ;;  %v902_v1 = vld [vmem:[%s1394_s1 + $0x30] sm:$0xff]  ;;  %v901_v2 = vld [vmem:[%s1394_s1 + $0x28] sm:$0xff] }
   0x2   :  { %338 = vmatpush.bf16.msra.mxu0 %v903_v0  ;;  %904 = vmatpush.bf16.msra.mxu1 %v903_v0  ;;  %v900_v3 = vld [vmem:[%s1394_s1 + $0x20] sm:$0xff]  ;;  %v899_v4 = vld [vmem:[%s1394_s1 + $0x18] sm:$0xff]  ;;  %v898_v5 = vld [vmem:[%s1394_s1 + $0x10] sm:$0xff] }
   0x3   :  { %905 = vmatpush.bf16.msra.mxu2 %v903_v0  ;;  %906 = vmatpush.bf16.msra.mxu3 %v903_v0  ;;  %v897_v6 = vld [vmem:[%s1394_s1 + $0x8] sm:$0xff]  ;;  %v896_v7 = vld [vmem:[%s1394_s1] sm:$0xff]  ;;  %v866_v16 = vld [vmem:[%s1396_s0 + $0x10] sm:$0xff] }
   0x4   :  { %v864_v8 = vld [vmem:[%s1396_s0] sm:$0xff]  ;;  %v865_v12 = vld [vmem:[%s1396_s0 + $0x8] sm:$0xff]  ;;  %v874_v17 = vld [vmem:[%s1396_s0 + $0x50] sm:$0xff] }
   0x5   :  { %v872_v9 = vld [vmem:[%s1396_s0 + $0x40] sm:$0xff]  ;;  %v873_v13 = vld [vmem:[%s1396_s0 + $0x48] sm:$0xff]  ;;  %v882_v18 = vld [vmem:[%s1396_s0 + $0x90] sm:$0xff] }
   0x6   :  { %339 = vmatpush.bf16.msra.mxu0 %v902_v1  ;;  %907 = vmatpush.bf16.msra.mxu1 %v902_v1  ;;  %v880_v10 = vld [vmem:[%s1396_s0 + $0x80] sm:$0xff]  ;;  %v881_v14 = vld [vmem:[%s1396_s0 + $0x88] sm:$0xff]  ;;  %v890_v19 = vld [vmem:[%s1396_s0 + $0xd0] sm:$0xff] }
   0x7   :  { %908 = vmatpush.bf16.msra.mxu2 %v902_v1  ;;  %909 = vmatpush.bf16.msra.mxu3 %v902_v1  ;;  %v888_v11 = vld [vmem:[%s1396_s0 + $0xc0] sm:$0xff]  ;;  %v889_v15 = vld [vmem:[%s1396_s0 + $0xc8] sm:$0xff]  ;;  %v867_v20 = vld [vmem:[%s1396_s0 + $0x18] sm:$0xff] }
   0x8   :  { %v875_v21 = vld [vmem:[%s1396_s0 + $0x58] sm:$0xff]  ;;  %v868_v24 = vld [vmem:[%s1396_s0 + $0x20] sm:$0xff]  ;;  %v869_v28 = vld [vmem:[%s1396_s0 + $0x28] sm:$0xff] }
   0x9   :  { %v883_v22 = vld [vmem:[%s1396_s0 + $0x98] sm:$0xff]  ;;  %v876_v25 = vld [vmem:[%s1396_s0 + $0x60] sm:$0xff]  ;;  %v877_v29 = vld [vmem:[%s1396_s0 + $0x68] sm:$0xff] }
   0xa   :  { %340 = vmatpush.bf16.msra.mxu0 %v901_v2  ;;  %910 = vmatpush.bf16.msra.mxu1 %v901_v2  ;;  %v891_v23 = vld [vmem:[%s1396_s0 + $0xd8] sm:$0xff]  ;;  %v884_v26 = vld [vmem:[%s1396_s0 + $0xa0] sm:$0xff]  ;;  %v885_v30 = vld [vmem:[%s1396_s0 + $0xa8] sm:$0xff] }
   0xb   :  { %911 = vmatpush.bf16.msra.mxu2 %v901_v2  ;;  %912 = vmatpush.bf16.msra.mxu3 %v901_v2  ;;  %v892_v27 = vld [vmem:[%s1396_s0 + $0xe0] sm:$0xff]  ;;  %v893_v31 = vld [vmem:[%s1396_s0 + $0xe8] sm:$0xff]  ;;  %v870_v32 = vld [vmem:[%s1396_s0 + $0x30] sm:$0xff] }
   0xc   :  { %v878_v33 = vld [vmem:[%s1396_s0 + $0x70] sm:$0xff]  ;;  %v871_v36 = vld [vmem:[%s1396_s0 + $0x38] sm:$0xff]  ;;  %v1072_v40 = vld [vmem:[%s1395_s2] ss:$0 sm:$0xff] }
   0xd   :  { %v886_v34 = vld [vmem:[%s1396_s0 + $0xb0] sm:$0xff]  ;;  %v879_v37 = vld [vmem:[%s1396_s0 + $0x78] sm:$0xff] }
   0xe   :  { %341 = vmatpush.bf16.msra.mxu0 %v900_v3  ;;  %913 = vmatpush.bf16.msra.mxu1 %v900_v3  ;;  %v894_v35 = vld [vmem:[%s1396_s0 + $0xf0] sm:$0xff]  ;;  %v887_v38 = vld [vmem:[%s1396_s0 + $0xb8] sm:$0xff] }
   0xf   :  { %914 = vmatpush.bf16.msra.mxu2 %v900_v3  ;;  %915 = vmatpush.bf16.msra.mxu3 %v900_v3  ;;  %v895_v39 = vld [vmem:[%s1396_s0 + $0xf8] sm:$0xff] }
  0x12   :  { %342 = vmatpush.bf16.msra.mxu0 %v899_v4  ;;  %916 = vmatpush.bf16.msra.mxu1 %v899_v4 }
  0x13   :  { %917 = vmatpush.bf16.msra.mxu2 %v899_v4  ;;  %918 = vmatpush.bf16.msra.mxu3 %v899_v4 }
  0x16   :  { %343 = vmatpush.bf16.msra.mxu0 %v898_v5  ;;  %919 = vmatpush.bf16.msra.mxu1 %v898_v5 }
  0x17   :  { %920 = vmatpush.bf16.msra.mxu2 %v898_v5  ;;  %921 = vmatpush.bf16.msra.mxu3 %v898_v5 }
  0x1a   :  { %344 = vmatpush.bf16.msra.mxu0 %v897_v6  ;;  %922 = vmatpush.bf16.msra.mxu1 %v897_v6 }
  0x1b   :  { %923 = vmatpush.bf16.msra.mxu2 %v897_v6  ;;  %924 = vmatpush.bf16.msra.mxu3 %v897_v6 }
  0x1e   :  { %345 = vmatpush.bf16.msra.mxu0 %v896_v7  ;;  %925 = vmatpush.bf16.msra.mxu1 %v896_v7 }
  0x1f   :  { %926 = vmatpush.bf16.msra.mxu2 %v896_v7  ;;  %927 = vmatpush.bf16.msra.mxu3 %v896_v7 }
  0x21   :  { %346 = vmatmul.bf16.vlgmr.msra.gmra.mxu0 %v864_v8  ;;  %386 = vmatmul.bf16.vlgmr.msra.gmra.mxu1 %v872_v9 }
  0x22   :  { %426 = vmatmul.bf16.vlgmr.msra.gmra.mxu2 %v880_v10  ;;  %466 = vmatmul.bf16.vlgmr.msra.gmra.mxu3 %v888_v11 }
  0x31   :  { %351 = vmatmul.bf16.gmra.mxu0 %v865_v12  ;;  %391 = vmatmul.bf16.gmra.mxu1 %v873_v13 }
  0x32   :  { %431 = vmatmul.bf16.gmra.mxu2 %v881_v14  ;;  %471 = vmatmul.bf16.gmra.mxu3 %v889_v15 }
  0x41   :  { %356 = vmatmul.bf16.gmra.mxu0 %v866_v16  ;;  %396 = vmatmul.bf16.gmra.mxu1 %v874_v17 }
  0x42   :  { %436 = vmatmul.bf16.gmra.mxu2 %v882_v18  ;;  %476 = vmatmul.bf16.gmra.mxu3 %v890_v19 }
  0x51   :  { %361 = vmatmul.bf16.gmra.mxu0 %v867_v20  ;;  %401 = vmatmul.bf16.gmra.mxu1 %v875_v21 }
  0x52   :  { %441 = vmatmul.bf16.gmra.mxu2 %v883_v22  ;;  %481 = vmatmul.bf16.gmra.mxu3 %v891_v23 }
  0x61   :  { %366 = vmatmul.bf16.gmra.mxu0 %v868_v24  ;;  %406 = vmatmul.bf16.gmra.mxu1 %v876_v25 }
  0x62   :  { %446 = vmatmul.bf16.gmra.mxu2 %v884_v26  ;;  %486 = vmatmul.bf16.gmra.mxu3 %v892_v27 }
  0x71   :  { %371 = vmatmul.bf16.gmra.mxu0 %v869_v28  ;;  %411 = vmatmul.bf16.gmra.mxu1 %v877_v29 }
  0x72   :  { %451 = vmatmul.bf16.gmra.mxu2 %v885_v30  ;;  %491 = vmatmul.bf16.gmra.mxu3 %v893_v31 }
  0x81   :  { %376 = vmatmul.bf16.gmra.mxu0 %v870_v32  ;;  %416 = vmatmul.bf16.gmra.mxu1 %v878_v33 }
  0x82   :  { %456 = vmatmul.bf16.gmra.mxu2 %v886_v34  ;;  %496 = vmatmul.bf16.gmra.mxu3 %v894_v35 }
  0x91   :  { %381 = vmatmul.bf16.gmra.mxu0 %v871_v36  ;;  %421 = vmatmul.bf16.gmra.mxu1 %v879_v37 }
  0x92   :  { %461 = vmatmul.bf16.gmra.mxu2 %v887_v38  ;;  %501 = vmatmul.bf16.gmra.mxu3 %v895_v39 }
  0x9e   :  { %v347_v41 = vpop.f32.mrf.mxu0  ;;  %v387_v42 = vpop.f32.mrf.mxu1 }
  0x9f   :  { %v348_v43 = vadd.f32 %v1072_v40, %v347_v41  ;;  %v388_v44 = vadd.f32 %v1072_v40, %v387_v42 }
  0xa1   :  { %v507_v45 = vmax.f32 %v348_v43, 0.0  ;;  %v523_v46 = vmax.f32 %v388_v44, 0.0 }
  0xa3   :  { %v571_v47 = vpack.c.bf16 %v507_v45, %v507_v45  ;;  %v587_v48 = vpack.c.bf16 %v523_v46, %v523_v46 }
  0xa5   :  { %636 = vst.msk [vmem:[%s1397_s3] sm:$0xf] %vm635_vm0, %v571_v47  ;;  %v427_v49 = vpop.f32.mrf.mxu2  ;;  %v467_v50 = vpop.f32.mrf.mxu3 }
  0xa6   :  { %652 = vst.msk [vmem:[%s1397_s3 + $0x40] sm:$0xf] %vm635_vm0, %v587_v48  ;;  %v428_v51 = vadd.f32 %v1072_v40, %v427_v49  ;;  %v468_v52 = vadd.f32 %v1072_v40, %v467_v50  ;;  %v349_v53 = vpop.f32.mrf.mxu0  ;;  %v389_v54 = vpop.f32.mrf.mxu1 }
  0xa7   :  { %v350_v55 = vadd.f32 %v1072_v40, %v349_v53  ;;  %v390_v56 = vadd.f32 %v1072_v40, %v389_v54 }
  0xa8   :  { %v539_v57 = vmax.f32 %v428_v51, 0.0  ;;  %v555_v58 = vmax.f32 %v468_v52, 0.0 }
  0xa9   :  { %v508_v59 = vmax.f32 %v350_v55, 0.0  ;;  %v524_v60 = vmax.f32 %v390_v56, 0.0 }
  0xaa   :  { %v603_v61 = vpack.c.bf16 %v539_v57, %v539_v57  ;;  %v619_v62 = vpack.c.bf16 %v555_v58, %v555_v58 }
  0xab   :  { %v572_v63 = vpack.c.bf16 %v508_v59, %v508_v59  ;;  %v588_v0 = vpack.c.bf16 %v524_v60, %v524_v60 }
  0xac   :  { %668 = vst.msk [vmem:[%s1397_s3 + $0x80] sm:$0xf] %vm635_vm0, %v603_v61 }
  0xad   :  { %684 = vst.msk [vmem:[%s1397_s3 + $0xc0] sm:$0xf] %vm635_vm0, %v619_v62  ;;  %v429_v1 = vpop.f32.mrf.mxu2  ;;  %v469_v2 = vpop.f32.mrf.mxu3 }
  0xae   :  { %637 = vst.msk [vmem:[%s1397_s3 + $0x4] sm:$0xf] %vm635_vm0, %v572_v63  ;;  %v430_v3 = vadd.f32 %v1072_v40, %v429_v1  ;;  %v470_v4 = vadd.f32 %v1072_v40, %v469_v2  ;;  %v352_v5 = vpop.f32.mrf.mxu0  ;;  %v392_v6 = vpop.f32.mrf.mxu1 }
  0xaf   :  { %653 = vst.msk [vmem:[%s1397_s3 + $0x44] sm:$0xf] %vm635_vm0, %v588_v0  ;;  %v353_v7 = vadd.f32 %v1072_v40, %v352_v5  ;;  %v393_v8 = vadd.f32 %v1072_v40, %v392_v6 }
  0xb0   :  { %v540_v9 = vmax.f32 %v430_v3, 0.0  ;;  %v556_v10 = vmax.f32 %v470_v4, 0.0 }
  0xb1   :  { %v509_v11 = vmax.f32 %v353_v7, 0.0  ;;  %v525_v12 = vmax.f32 %v393_v8, 0.0 }
  0xb2   :  { %v604_v13 = vpack.c.bf16 %v540_v9, %v540_v9  ;;  %v620_v14 = vpack.c.bf16 %v556_v10, %v556_v10 }
  0xb3   :  { %v573_v15 = vpack.c.bf16 %v509_v11, %v509_v11  ;;  %v589_v16 = vpack.c.bf16 %v525_v12, %v525_v12 }
  0xb4   :  { %669 = vst.msk [vmem:[%s1397_s3 + $0x84] sm:$0xf] %vm635_vm0, %v604_v13 }
  0xb5   :  { %685 = vst.msk [vmem:[%s1397_s3 + $0xc4] sm:$0xf] %vm635_vm0, %v620_v14  ;;  %v432_v17 = vpop.f32.mrf.mxu2  ;;  %v472_v18 = vpop.f32.mrf.mxu3 }
  0xb6   :  { %638 = vst.msk [vmem:[%s1397_s3 + $0x8] sm:$0xf] %vm635_vm0, %v573_v15  ;;  %v433_v19 = vadd.f32 %v1072_v40, %v432_v17  ;;  %v473_v20 = vadd.f32 %v1072_v40, %v472_v18  ;;  %v354_v21 = vpop.f32.mrf.mxu0  ;;  %v394_v22 = vpop.f32.mrf.mxu1 }
  0xb7   :  { %654 = vst.msk [vmem:[%s1397_s3 + $0x48] sm:$0xf] %vm635_vm0, %v589_v16  ;;  %v355_v23 = vadd.f32 %v1072_v40, %v354_v21  ;;  %v395_v24 = vadd.f32 %v1072_v40, %v394_v22 }
  0xb8   :  { %v541_v25 = vmax.f32 %v433_v19, 0.0  ;;  %v557_v26 = vmax.f32 %v473_v20, 0.0 }
  0xb9   :  { %v510_v27 = vmax.f32 %v355_v23, 0.0  ;;  %v526_v28 = vmax.f32 %v395_v24, 0.0 }
  0xba   :  { %v605_v29 = vpack.c.bf16 %v541_v25, %v541_v25  ;;  %v621_v30 = vpack.c.bf16 %v557_v26, %v557_v26 }
  0xbb   :  { %v574_v31 = vpack.c.bf16 %v510_v27, %v510_v27  ;;  %v590_v32 = vpack.c.bf16 %v526_v28, %v526_v28 }
  0xbc   :  { %670 = vst.msk [vmem:[%s1397_s3 + $0x88] sm:$0xf] %vm635_vm0, %v605_v29 }
  0xbd   :  { %686 = vst.msk [vmem:[%s1397_s3 + $0xc8] sm:$0xf] %vm635_vm0, %v621_v30  ;;  %v434_v33 = vpop.f32.mrf.mxu2  ;;  %v474_v34 = vpop.f32.mrf.mxu3 }
  0xbe   :  { %639 = vst.msk [vmem:[%s1397_s3 + $0xc] sm:$0xf] %vm635_vm0, %v574_v31  ;;  %v435_v35 = vadd.f32 %v1072_v40, %v434_v33  ;;  %v475_v36 = vadd.f32 %v1072_v40, %v474_v34  ;;  %v357_v37 = vpop.f32.mrf.mxu0  ;;  %v397_v38 = vpop.f32.mrf.mxu1 }
  0xbf   :  { %655 = vst.msk [vmem:[%s1397_s3 + $0x4c] sm:$0xf] %vm635_vm0, %v590_v32  ;;  %v358_v39 = vadd.f32 %v1072_v40, %v357_v37  ;;  %v398_v41 = vadd.f32 %v1072_v40, %v397_v38 }
  0xc0   :  { %v542_v42 = vmax.f32 %v435_v35, 0.0  ;;  %v558_v43 = vmax.f32 %v475_v36, 0.0 }
  0xc1   :  { %v511_v44 = vmax.f32 %v358_v39, 0.0  ;;  %v527_v45 = vmax.f32 %v398_v41, 0.0 }
  0xc2   :  { %v606_v46 = vpack.c.bf16 %v542_v42, %v542_v42  ;;  %v622_v47 = vpack.c.bf16 %v558_v43, %v558_v43 }
  0xc3   :  { %v575_v48 = vpack.c.bf16 %v511_v44, %v511_v44  ;;  %v591_v49 = vpack.c.bf16 %v527_v45, %v527_v45 }
  0xc4   :  { %671 = vst.msk [vmem:[%s1397_s3 + $0x8c] sm:$0xf] %vm635_vm0, %v606_v46 }
  0xc5   :  { %687 = vst.msk [vmem:[%s1397_s3 + $0xcc] sm:$0xf] %vm635_vm0, %v622_v47  ;;  %v437_v50 = vpop.f32.mrf.mxu2  ;;  %v477_v51 = vpop.f32.mrf.mxu3 }
  0xc6   :  { %640 = vst.msk [vmem:[%s1397_s3 + $0x10] sm:$0xf] %vm635_vm0, %v575_v48  ;;  %v438_v52 = vadd.f32 %v1072_v40, %v437_v50  ;;  %v478_v53 = vadd.f32 %v1072_v40, %v477_v51  ;;  %v359_v54 = vpop.f32.mrf.mxu0  ;;  %v399_v55 = vpop.f32.mrf.mxu1 }
  0xc7   :  { %656 = vst.msk [vmem:[%s1397_s3 + $0x50] sm:$0xf] %vm635_vm0, %v591_v49  ;;  %v360_v56 = vadd.f32 %v1072_v40, %v359_v54  ;;  %v400_v57 = vadd.f32 %v1072_v40, %v399_v55 }
  0xc8   :  { %v543_v58 = vmax.f32 %v438_v52, 0.0  ;;  %v559_v59 = vmax.f32 %v478_v53, 0.0 }
  0xc9   :  { %v512_v60 = vmax.f32 %v360_v56, 0.0  ;;  %v528_v61 = vmax.f32 %v400_v57, 0.0 }
  0xca   :  { %v607_v62 = vpack.c.bf16 %v543_v58, %v543_v58  ;;  %v623_v63 = vpack.c.bf16 %v559_v59, %v559_v59 }
  0xcb   :  { %v576_v0 = vpack.c.bf16 %v512_v60, %v512_v60  ;;  %v592_v1 = vpack.c.bf16 %v528_v61, %v528_v61 }
  0xcc   :  { %672 = vst.msk [vmem:[%s1397_s3 + $0x90] sm:$0xf] %vm635_vm0, %v607_v62 }
  0xcd   :  { %688 = vst.msk [vmem:[%s1397_s3 + $0xd0] sm:$0xf] %vm635_vm0, %v623_v63  ;;  %v439_v2 = vpop.f32.mrf.mxu2  ;;  %v479_v3 = vpop.f32.mrf.mxu3 }
  0xce   :  { %641 = vst.msk [vmem:[%s1397_s3 + $0x14] sm:$0xf] %vm635_vm0, %v576_v0  ;;  %v440_v4 = vadd.f32 %v1072_v40, %v439_v2  ;;  %v480_v5 = vadd.f32 %v1072_v40, %v479_v3  ;;  %v362_v6 = vpop.f32.mrf.mxu0  ;;  %v402_v7 = vpop.f32.mrf.mxu1 }
  0xcf   :  { %657 = vst.msk [vmem:[%s1397_s3 + $0x54] sm:$0xf] %vm635_vm0, %v592_v1  ;;  %v363_v8 = vadd.f32 %v1072_v40, %v362_v6  ;;  %v403_v9 = vadd.f32 %v1072_v40, %v402_v7 }
  0xd0   :  { %v544_v10 = vmax.f32 %v440_v4, 0.0  ;;  %v560_v11 = vmax.f32 %v480_v5, 0.0 }
  0xd1   :  { %v513_v12 = vmax.f32 %v363_v8, 0.0  ;;  %v529_v13 = vmax.f32 %v403_v9, 0.0 }
  0xd2   :  { %v608_v14 = vpack.c.bf16 %v544_v10, %v544_v10  ;;  %v624_v15 = vpack.c.bf16 %v560_v11, %v560_v11 }
  0xd3   :  { %v577_v16 = vpack.c.bf16 %v513_v12, %v513_v12  ;;  %v593_v17 = vpack.c.bf16 %v529_v13, %v529_v13 }
  0xd4   :  { %673 = vst.msk [vmem:[%s1397_s3 + $0x94] sm:$0xf] %vm635_vm0, %v608_v14 }
  0xd5   :  { %689 = vst.msk [vmem:[%s1397_s3 + $0xd4] sm:$0xf] %vm635_vm0, %v624_v15  ;;  %v442_v18 = vpop.f32.mrf.mxu2  ;;  %v482_v19 = vpop.f32.mrf.mxu3 }
  0xd6   :  { %642 = vst.msk [vmem:[%s1397_s3 + $0x18] sm:$0xf] %vm635_vm0, %v577_v16  ;;  %v443_v20 = vadd.f32 %v1072_v40, %v442_v18  ;;  %v483_v21 = vadd.f32 %v1072_v40, %v482_v19  ;;  %v364_v22 = vpop.f32.mrf.mxu0  ;;  %v404_v23 = vpop.f32.mrf.mxu1 }
  0xd7   :  { %658 = vst.msk [vmem:[%s1397_s3 + $0x58] sm:$0xf] %vm635_vm0, %v593_v17  ;;  %v365_v24 = vadd.f32 %v1072_v40, %v364_v22  ;;  %v405_v25 = vadd.f32 %v1072_v40, %v404_v23 }
  0xd8   :  { %v545_v26 = vmax.f32 %v443_v20, 0.0  ;;  %v561_v27 = vmax.f32 %v483_v21, 0.0 }
  0xd9   :  { %v514_v28 = vmax.f32 %v365_v24, 0.0  ;;  %v530_v29 = vmax.f32 %v405_v25, 0.0 }
  0xda   :  { %v609_v30 = vpack.c.bf16 %v545_v26, %v545_v26  ;;  %v625_v31 = vpack.c.bf16 %v561_v27, %v561_v27 }
  0xdb   :  { %v578_v32 = vpack.c.bf16 %v514_v28, %v514_v28  ;;  %v594_v33 = vpack.c.bf16 %v530_v29, %v530_v29 }
  0xdc   :  { %674 = vst.msk [vmem:[%s1397_s3 + $0x98] sm:$0xf] %vm635_vm0, %v609_v30 }
  0xdd   :  { %690 = vst.msk [vmem:[%s1397_s3 + $0xd8] sm:$0xf] %vm635_vm0, %v625_v31  ;;  %v444_v34 = vpop.f32.mrf.mxu2  ;;  %v484_v35 = vpop.f32.mrf.mxu3 }
  0xde   :  { %643 = vst.msk [vmem:[%s1397_s3 + $0x1c] sm:$0xf] %vm635_vm0, %v578_v32  ;;  %v445_v36 = vadd.f32 %v1072_v40, %v444_v34  ;;  %v485_v37 = vadd.f32 %v1072_v40, %v484_v35  ;;  %v367_v38 = vpop.f32.mrf.mxu0  ;;  %v407_v39 = vpop.f32.mrf.mxu1 }
  0xdf   :  { %659 = vst.msk [vmem:[%s1397_s3 + $0x5c] sm:$0xf] %vm635_vm0, %v594_v33  ;;  %v368_v41 = vadd.f32 %v1072_v40, %v367_v38  ;;  %v408_v42 = vadd.f32 %v1072_v40, %v407_v39 }
  0xe0   :  { %v546_v43 = vmax.f32 %v445_v36, 0.0  ;;  %v562_v44 = vmax.f32 %v485_v37, 0.0 }
  0xe1   :  { %v515_v45 = vmax.f32 %v368_v41, 0.0  ;;  %v531_v46 = vmax.f32 %v408_v42, 0.0 }
  0xe2   :  { %v610_v47 = vpack.c.bf16 %v546_v43, %v546_v43  ;;  %v626_v48 = vpack.c.bf16 %v562_v44, %v562_v44 }
  0xe3   :  { %v579_v49 = vpack.c.bf16 %v515_v45, %v515_v45  ;;  %v595_v50 = vpack.c.bf16 %v531_v46, %v531_v46 }
  0xe4   :  { %675 = vst.msk [vmem:[%s1397_s3 + $0x9c] sm:$0xf] %vm635_vm0, %v610_v47 }
  0xe5   :  { %691 = vst.msk [vmem:[%s1397_s3 + $0xdc] sm:$0xf] %vm635_vm0, %v626_v48  ;;  %v447_v51 = vpop.f32.mrf.mxu2  ;;  %v487_v52 = vpop.f32.mrf.mxu3 }
  0xe6   :  { %644 = vst.msk [vmem:[%s1397_s3 + $0x20] sm:$0xf] %vm635_vm0, %v579_v49  ;;  %v448_v53 = vadd.f32 %v1072_v40, %v447_v51  ;;  %v488_v54 = vadd.f32 %v1072_v40, %v487_v52  ;;  %v369_v55 = vpop.f32.mrf.mxu0  ;;  %v409_v56 = vpop.f32.mrf.mxu1 }
  0xe7   :  { %660 = vst.msk [vmem:[%s1397_s3 + $0x60] sm:$0xf] %vm635_vm0, %v595_v50  ;;  %v370_v57 = vadd.f32 %v1072_v40, %v369_v55  ;;  %v410_v58 = vadd.f32 %v1072_v40, %v409_v56 }
  0xe8   :  { %v547_v59 = vmax.f32 %v448_v53, 0.0  ;;  %v563_v60 = vmax.f32 %v488_v54, 0.0 }
  0xe9   :  { %v516_v61 = vmax.f32 %v370_v57, 0.0  ;;  %v532_v62 = vmax.f32 %v410_v58, 0.0 }
  0xea   :  { %v611_v63 = vpack.c.bf16 %v547_v59, %v547_v59  ;;  %v627_v0 = vpack.c.bf16 %v563_v60, %v563_v60 }
  0xeb   :  { %v580_v1 = vpack.c.bf16 %v516_v61, %v516_v61  ;;  %v596_v2 = vpack.c.bf16 %v532_v62, %v532_v62 }
  0xec   :  { %676 = vst.msk [vmem:[%s1397_s3 + $0xa0] sm:$0xf] %vm635_vm0, %v611_v63 }
  0xed   :  { %692 = vst.msk [vmem:[%s1397_s3 + $0xe0] sm:$0xf] %vm635_vm0, %v627_v0  ;;  %v449_v3 = vpop.f32.mrf.mxu2  ;;  %v489_v4 = vpop.f32.mrf.mxu3 }
  0xee   :  { %645 = vst.msk [vmem:[%s1397_s3 + $0x24] sm:$0xf] %vm635_vm0, %v580_v1  ;;  %v450_v5 = vadd.f32 %v1072_v40, %v449_v3  ;;  %v490_v6 = vadd.f32 %v1072_v40, %v489_v4  ;;  %v372_v7 = vpop.f32.mrf.mxu0  ;;  %v412_v8 = vpop.f32.mrf.mxu1 }
  0xef   :  { %661 = vst.msk [vmem:[%s1397_s3 + $0x64] sm:$0xf] %vm635_vm0, %v596_v2  ;;  %v373_v9 = vadd.f32 %v1072_v40, %v372_v7  ;;  %v413_v10 = vadd.f32 %v1072_v40, %v412_v8 }
  0xf0   :  { %v548_v11 = vmax.f32 %v450_v5, 0.0  ;;  %v564_v12 = vmax.f32 %v490_v6, 0.0 }
  0xf1   :  { %v517_v13 = vmax.f32 %v373_v9, 0.0  ;;  %v533_v14 = vmax.f32 %v413_v10, 0.0 }
  0xf2   :  { %v612_v15 = vpack.c.bf16 %v548_v11, %v548_v11  ;;  %v628_v16 = vpack.c.bf16 %v564_v12, %v564_v12 }
  0xf3   :  { %v581_v17 = vpack.c.bf16 %v517_v13, %v517_v13  ;;  %v597_v18 = vpack.c.bf16 %v533_v14, %v533_v14 }
  0xf4   :  { %677 = vst.msk [vmem:[%s1397_s3 + $0xa4] sm:$0xf] %vm635_vm0, %v612_v15 }
  0xf5   :  { %693 = vst.msk [vmem:[%s1397_s3 + $0xe4] sm:$0xf] %vm635_vm0, %v628_v16  ;;  %v452_v19 = vpop.f32.mrf.mxu2  ;;  %v492_v20 = vpop.f32.mrf.mxu3 }
  0xf6   :  { %646 = vst.msk [vmem:[%s1397_s3 + $0x28] sm:$0xf] %vm635_vm0, %v581_v17  ;;  %v453_v21 = vadd.f32 %v1072_v40, %v452_v19  ;;  %v493_v22 = vadd.f32 %v1072_v40, %v492_v20  ;;  %v374_v23 = vpop.f32.mrf.mxu0  ;;  %v414_v24 = vpop.f32.mrf.mxu1 }
  0xf7   :  { %662 = vst.msk [vmem:[%s1397_s3 + $0x68] sm:$0xf] %vm635_vm0, %v597_v18  ;;  %v375_v25 = vadd.f32 %v1072_v40, %v374_v23  ;;  %v415_v26 = vadd.f32 %v1072_v40, %v414_v24 }
  0xf8   :  { %v549_v27 = vmax.f32 %v453_v21, 0.0  ;;  %v565_v28 = vmax.f32 %v493_v22, 0.0 }
  0xf9   :  { %v518_v29 = vmax.f32 %v375_v25, 0.0  ;;  %v534_v30 = vmax.f32 %v415_v26, 0.0 }
  0xfa   :  { %v613_v31 = vpack.c.bf16 %v549_v27, %v549_v27  ;;  %v629_v32 = vpack.c.bf16 %v565_v28, %v565_v28 }
  0xfb   :  { %v582_v33 = vpack.c.bf16 %v518_v29, %v518_v29  ;;  %v598_v34 = vpack.c.bf16 %v534_v30, %v534_v30 }
  0xfc   :  { %678 = vst.msk [vmem:[%s1397_s3 + $0xa8] sm:$0xf] %vm635_vm0, %v613_v31 }
  0xfd   :  { %694 = vst.msk [vmem:[%s1397_s3 + $0xe8] sm:$0xf] %vm635_vm0, %v629_v32  ;;  %v454_v35 = vpop.f32.mrf.mxu2  ;;  %v494_v36 = vpop.f32.mrf.mxu3 }
  0xfe   :  { %647 = vst.msk [vmem:[%s1397_s3 + $0x2c] sm:$0xf] %vm635_vm0, %v582_v33  ;;  %v455_v37 = vadd.f32 %v1072_v40, %v454_v35  ;;  %v495_v38 = vadd.f32 %v1072_v40, %v494_v36  ;;  %v377_v39 = vpop.f32.mrf.mxu0  ;;  %v417_v41 = vpop.f32.mrf.mxu1 }
  0xff   :  { %663 = vst.msk [vmem:[%s1397_s3 + $0x6c] sm:$0xf] %vm635_vm0, %v598_v34  ;;  %v378_v42 = vadd.f32 %v1072_v40, %v377_v39  ;;  %v418_v43 = vadd.f32 %v1072_v40, %v417_v41 }
 0x100   :  { %v550_v44 = vmax.f32 %v455_v37, 0.0  ;;  %v566_v45 = vmax.f32 %v495_v38, 0.0 }
 0x101   :  { %v519_v46 = vmax.f32 %v378_v42, 0.0  ;;  %v535_v47 = vmax.f32 %v418_v43, 0.0 }
 0x102   :  { %v614_v48 = vpack.c.bf16 %v550_v44, %v550_v44  ;;  %v630_v49 = vpack.c.bf16 %v566_v45, %v566_v45 }
 0x103   :  { %v583_v50 = vpack.c.bf16 %v519_v46, %v519_v46  ;;  %v599_v51 = vpack.c.bf16 %v535_v47, %v535_v47 }
 0x104   :  { %679 = vst.msk [vmem:[%s1397_s3 + $0xac] sm:$0xf] %vm635_vm0, %v614_v48 }
 0x105   :  { %695 = vst.msk [vmem:[%s1397_s3 + $0xec] sm:$0xf] %vm635_vm0, %v630_v49  ;;  %v457_v52 = vpop.f32.mrf.mxu2  ;;  %v497_v53 = vpop.f32.mrf.mxu3 }
 0x106   :  { %648 = vst.msk [vmem:[%s1397_s3 + $0x30] sm:$0xf] %vm635_vm0, %v583_v50  ;;  %v458_v54 = vadd.f32 %v1072_v40, %v457_v52  ;;  %v498_v55 = vadd.f32 %v1072_v40, %v497_v53  ;;  %v379_v56 = vpop.f32.mrf.mxu0  ;;  %v419_v57 = vpop.f32.mrf.mxu1 }
 0x107   :  { %664 = vst.msk [vmem:[%s1397_s3 + $0x70] sm:$0xf] %vm635_vm0, %v599_v51  ;;  %v380_v58 = vadd.f32 %v1072_v40, %v379_v56  ;;  %v420_v59 = vadd.f32 %v1072_v40, %v419_v57 }
 0x108   :  { %v551_v60 = vmax.f32 %v458_v54, 0.0  ;;  %v567_v61 = vmax.f32 %v498_v55, 0.0 }
 0x109   :  { %v520_v62 = vmax.f32 %v380_v58, 0.0  ;;  %v536_v63 = vmax.f32 %v420_v59, 0.0 }
 0x10a   :  { %v615_v0 = vpack.c.bf16 %v551_v60, %v551_v60  ;;  %v631_v1 = vpack.c.bf16 %v567_v61, %v567_v61 }
 0x10b   :  { %v584_v2 = vpack.c.bf16 %v520_v62, %v520_v62  ;;  %v600_v3 = vpack.c.bf16 %v536_v63, %v536_v63 }
 0x10c   :  { %680 = vst.msk [vmem:[%s1397_s3 + $0xb0] sm:$0xf] %vm635_vm0, %v615_v0 }
 0x10d   :  { %696 = vst.msk [vmem:[%s1397_s3 + $0xf0] sm:$0xf] %vm635_vm0, %v631_v1  ;;  %v459_v4 = vpop.f32.mrf.mxu2  ;;  %v499_v5 = vpop.f32.mrf.mxu3 }
 0x10e   :  { %649 = vst.msk [vmem:[%s1397_s3 + $0x34] sm:$0xf] %vm635_vm0, %v584_v2  ;;  %v460_v6 = vadd.f32 %v1072_v40, %v459_v4  ;;  %v500_v7 = vadd.f32 %v1072_v40, %v499_v5  ;;  %v382_v8 = vpop.f32.mrf.mxu0  ;;  %v422_v9 = vpop.f32.mrf.mxu1 }
 0x10f   :  { %665 = vst.msk [vmem:[%s1397_s3 + $0x74] sm:$0xf] %vm635_vm0, %v600_v3  ;;  %v383_v10 = vadd.f32 %v1072_v40, %v382_v8  ;;  %v423_v11 = vadd.f32 %v1072_v40, %v422_v9 }
 0x110   :  { %v552_v12 = vmax.f32 %v460_v6, 0.0  ;;  %v568_v13 = vmax.f32 %v500_v7, 0.0 }
 0x111   :  { %v521_v14 = vmax.f32 %v383_v10, 0.0  ;;  %v537_v15 = vmax.f32 %v423_v11, 0.0 }
 0x112   :  { %v616_v16 = vpack.c.bf16 %v552_v12, %v552_v12  ;;  %v632_v17 = vpack.c.bf16 %v568_v13, %v568_v13 }
 0x113   :  { %v585_v18 = vpack.c.bf16 %v521_v14, %v521_v14  ;;  %v601_v19 = vpack.c.bf16 %v537_v15, %v537_v15 }
 0x114   :  { %681 = vst.msk [vmem:[%s1397_s3 + $0xb4] sm:$0xf] %vm635_vm0, %v616_v16 }
 0x115   :  { %697 = vst.msk [vmem:[%s1397_s3 + $0xf4] sm:$0xf] %vm635_vm0, %v632_v17  ;;  %v462_v20 = vpop.f32.mrf.mxu2  ;;  %v502_v21 = vpop.f32.mrf.mxu3 }
 0x116   :  { %650 = vst.msk [vmem:[%s1397_s3 + $0x38] sm:$0xf] %vm635_vm0, %v585_v18  ;;  %v463_v22 = vadd.f32 %v1072_v40, %v462_v20  ;;  %v503_v23 = vadd.f32 %v1072_v40, %v502_v21  ;;  %v384_v24 = vpop.f32.mrf.mxu0  ;;  %v424_v25 = vpop.f32.mrf.mxu1 }
 0x117   :  { %666 = vst.msk [vmem:[%s1397_s3 + $0x78] sm:$0xf] %vm635_vm0, %v601_v19  ;;  %v385_v26 = vadd.f32 %v1072_v40, %v384_v24  ;;  %v425_v27 = vadd.f32 %v1072_v40, %v424_v25 }
 0x118   :  { %v553_v28 = vmax.f32 %v463_v22, 0.0  ;;  %v569_v29 = vmax.f32 %v503_v23, 0.0 }
 0x119   :  { %v522_v30 = vmax.f32 %v385_v26, 0.0  ;;  %v538_v31 = vmax.f32 %v425_v27, 0.0 }
 0x11a   :  { %v617_v32 = vpack.c.bf16 %v553_v28, %v553_v28  ;;  %v633_v33 = vpack.c.bf16 %v569_v29, %v569_v29 }
 0x11b   :  { %v586_v34 = vpack.c.bf16 %v522_v30, %v522_v30  ;;  %v602_v35 = vpack.c.bf16 %v538_v31, %v538_v31 }
 0x11c   :  { %682 = vst.msk [vmem:[%s1397_s3 + $0xb8] sm:$0xf] %vm635_vm0, %v617_v32 }
 0x11d   :  { %698 = vst.msk [vmem:[%s1397_s3 + $0xf8] sm:$0xf] %vm635_vm0, %v633_v33  ;;  %v464_v36 = vpop.f32.mrf.mxu2  ;;  %v504_v37 = vpop.f32.mrf.mxu3 }
 0x11e   :  { %651 = vst.msk [vmem:[%s1397_s3 + $0x3c] sm:$0xf] %vm635_vm0, %v586_v34  ;;  %v465_v38 = vadd.f32 %v1072_v40, %v464_v36  ;;  %v505_v39 = vadd.f32 %v1072_v40, %v504_v37 }
 0x11f   :  { %667 = vst.msk [vmem:[%s1397_s3 + $0x7c] sm:$0xf] %vm635_vm0, %v602_v35 }
 0x120   :  { %v554_v41 = vmax.f32 %v465_v38, 0.0  ;;  %v570_v42 = vmax.f32 %v505_v39, 0.0 }
 0x122   :  { %v618_v43 = vpack.c.bf16 %v554_v41, %v554_v41  ;;  %v634_v44 = vpack.c.bf16 %v570_v42, %v570_v42 }
 0x124   :  { %683 = vst.msk [vmem:[%s1397_s3 + $0xbc] sm:$0xf] %vm635_vm0, %v618_v43 }
 0x125   :  { %699 = vst.msk [vmem:[%s1397_s3 + $0xfc] sm:$0xf] %vm635_vm0, %v634_v44 }

// kernel: bottleneck_forward.5
= control target key start
LH: loop header
LB: loop body
LE: loop exit
PB: predicated region body
PF: predicated region fallthrough
CT: control target
= control target key end

     0   :  { %s1467_s0 = inlined_call_operand.vmem [shape: bf16[512,32], index: 0, kind: input, shape index: {}]   ;;  %s1468_s1 = inlined_call_operand.vmem [shape: bf16[32,128], index: 1, kind: input, shape index: {}]   ;;  %s1469_s2 = inlined_call_operand.vmem [shape: f32[1,128], index: 2, kind: input, shape index: {}]   ;;  %s1470_s3 = inlined_call_operand.vmem [shape: f32[512,128], index: 3, kind: input, shape index: {}]   ;;  %s1471_s4 = inlined_call_operand.hbm [shape: f32[512,128], index: 4, kind: output, shape index: {}]  }
   0x1   :  { %v1004_v0 = vld [vmem:[%s1468_s1 + $0x8] sm:$0xff]  ;;  %v1003_v1 = vld [vmem:[%s1468_s1] sm:$0xff] }
   0x2   :  { %426 = vmatpush.bf16.msra.mxu0 %v1004_v0  ;;  %1005 = vmatpush.bf16.msra.mxu1 %v1004_v0 }
   0x3   :  { %1006 = vmatpush.bf16.msra.mxu2 %v1004_v0  ;;  %1007 = vmatpush.bf16.msra.mxu3 %v1004_v0 }
   0x4   :  { %9 = vsyncpa [#allocation3], 0  ;;  %v971_v2 = vld [vmem:[%s1467_s0] sm:$0xff]  ;;  %vm323_vm0 = vcmask 261120   ;;  %v972_v6 = vld [vmem:[%s1467_s0 + $0x8] sm:$0xff]  ;;  %s1041_s14 = smov [#allocation2]  }
   0x5   :  { %v979_v3 = vld [vmem:[%s1467_s0 + $0x40] sm:$0xff]  ;;  %v980_v7 = vld [vmem:[%s1467_s0 + $0x48] sm:$0xff]  ;;  %v973_v10 = vld [vmem:[%s1467_s0 + $0x10] sm:$0xff]  ;;  %s789_s15 = sshll.u32 %s1041_s14, 4  ;;  %s791_s18 = sshll.u32 %s1471_s4, 4  ;;  %s790_s15 = int_to_ptr.vmem [resolvable:$true] %s789_s15  ;;  %s792_s18 = int_to_ptr.hbm [resolvable:$true] %s791_s18 }
   0x6   :  { %427 = vmatpush.bf16.msra.mxu0 %v1003_v1  ;;  %1008 = vmatpush.bf16.msra.mxu1 %v1003_v1  ;;  %v987_v4 = vld [vmem:[%s1467_s0 + $0x80] sm:$0xff]  ;;  %v988_v8 = vld [vmem:[%s1467_s0 + $0x88] sm:$0xff]  ;;  %v981_v11 = vld [vmem:[%s1467_s0 + $0x50] sm:$0xff]  ;;  %s1043_s19 = smov 8  }
   0x7   :  { %v995_v5 = vld [vmem:[%s1467_s0 + $0xc0] sm:$0xff]  ;;  %1009 = vmatpush.bf16.msra.mxu2 %v1003_v1  ;;  %1010 = vmatpush.bf16.msra.mxu3 %v1003_v1  ;;  %v996_v9 = vld [vmem:[%s1467_s0 + $0xc8] sm:$0xff]  ;;  %v989_v12 = vld [vmem:[%s1467_s0 + $0x90] sm:$0xff] }
   0x8   :  { %v997_v13 = vld [vmem:[%s1467_s0 + $0xd0] sm:$0xff]  ;;  %v974_v14 = vld [vmem:[%s1467_s0 + $0x18] sm:$0xff]  ;;  %v975_v18 = vld [vmem:[%s1467_s0 + $0x20] sm:$0xff] }
   0x9   :  { %939 = vmatmul.msk.bf16.vlgmr.msra.gmra.mxu0 %vm323_vm0, %v971_v2  ;;  %947 = vmatmul.msk.bf16.vlgmr.msra.gmra.mxu1 %vm323_vm0, %v979_v3  ;;  %v982_v15 = vld [vmem:[%s1467_s0 + $0x58] sm:$0xff]  ;;  %v983_v19 = vld [vmem:[%s1467_s0 + $0x60] sm:$0xff]  ;;  %v976_v22 = vld [vmem:[%s1467_s0 + $0x28] sm:$0xff] }
   0xa   :  { %955 = vmatmul.msk.bf16.vlgmr.msra.gmra.mxu2 %vm323_vm0, %v987_v4  ;;  %963 = vmatmul.msk.bf16.vlgmr.msra.gmra.mxu3 %vm323_vm0, %v995_v5  ;;  %v990_v16 = vld [vmem:[%s1467_s0 + $0x98] sm:$0xff]  ;;  %v991_v20 = vld [vmem:[%s1467_s0 + $0xa0] sm:$0xff]  ;;  %v984_v23 = vld [vmem:[%s1467_s0 + $0x68] sm:$0xff] }
   0xb   :  { %v998_v17 = vld [vmem:[%s1467_s0 + $0xd8] sm:$0xff]  ;;  %v999_v21 = vld [vmem:[%s1467_s0 + $0xe0] sm:$0xff]  ;;  %v992_v24 = vld [vmem:[%s1467_s0 + $0xa8] sm:$0xff] }
   0xc   :  { %v1000_v25 = vld [vmem:[%s1467_s0 + $0xe8] sm:$0xff]  ;;  %v977_v26 = vld [vmem:[%s1467_s0 + $0x30] sm:$0xff]  ;;  %v978_v30 = vld [vmem:[%s1467_s0 + $0x38] sm:$0xff] }
   0xd   :  { %v985_v27 = vld [vmem:[%s1467_s0 + $0x70] sm:$0xff]  ;;  %v986_v31 = vld [vmem:[%s1467_s0 + $0x78] sm:$0xff]  ;;  %v87_v34 = vld [vmem:[%s1470_s3] sm:$0xff] }
   0xe   :  { %v993_v28 = vld [vmem:[%s1467_s0 + $0xb0] sm:$0xff]  ;;  %v994_v32 = vld [vmem:[%s1467_s0 + $0xb8] sm:$0xff]  ;;  %v103_v35 = vld [vmem:[%s1470_s3 + $0x80] sm:$0xff] }
   0xf   :  { %v1001_v29 = vld [vmem:[%s1467_s0 + $0xf0] sm:$0xff]  ;;  %v1002_v33 = vld [vmem:[%s1467_s0 + $0xf8] sm:$0xff]  ;;  %v1212_v36 = vld [vmem:[%s1469_s2] ss:$0 sm:$0xff] }
  0x10   :  { %v119_v45 = vld [vmem:[%s1470_s3 + $0x100] sm:$0xff]  ;;  %v88_v47 = vld [vmem:[%s1470_s3 + $0x8] sm:$0xff]  ;;  %v89_v3 = vld [vmem:[%s1470_s3 + $0x10] sm:$0xff] }
  0x11   :  { %v135_v46 = vld [vmem:[%s1470_s3 + $0x180] sm:$0xff]  ;;  %v104_v48 = vld [vmem:[%s1470_s3 + $0x88] sm:$0xff]  ;;  %v105_v4 = vld [vmem:[%s1470_s3 + $0x90] sm:$0xff] }
  0x12   :  { %v120_v1 = vld [vmem:[%s1470_s3 + $0x108] sm:$0xff] }
  0x13   :  { %v136_v2 = vld [vmem:[%s1470_s3 + $0x188] sm:$0xff] }
  0x19   :  { %940 = vmatmul.msk.bf16.gmra.mxu0 %vm323_vm0, %v972_v6  ;;  %948 = vmatmul.msk.bf16.gmra.mxu1 %vm323_vm0, %v980_v7 }
  0x1a   :  { %956 = vmatmul.msk.bf16.gmra.mxu2 %vm323_vm0, %v988_v8  ;;  %964 = vmatmul.msk.bf16.gmra.mxu3 %vm323_vm0, %v996_v9 }
  0x29   :  { %941 = vmatmul.msk.bf16.gmra.mxu0 %vm323_vm0, %v973_v10  ;;  %949 = vmatmul.msk.bf16.gmra.mxu1 %vm323_vm0, %v981_v11 }
  0x2a   :  { %957 = vmatmul.msk.bf16.gmra.mxu2 %vm323_vm0, %v989_v12  ;;  %965 = vmatmul.msk.bf16.gmra.mxu3 %vm323_vm0, %v997_v13 }
  0x39   :  { %942 = vmatmul.msk.bf16.gmra.mxu0 %vm323_vm0, %v974_v14  ;;  %950 = vmatmul.msk.bf16.gmra.mxu1 %vm323_vm0, %v982_v15 }
  0x3a   :  { %958 = vmatmul.msk.bf16.gmra.mxu2 %vm323_vm0, %v990_v16  ;;  %966 = vmatmul.msk.bf16.gmra.mxu3 %vm323_vm0, %v998_v17 }
  0x49   :  { %943 = vmatmul.msk.bf16.gmra.mxu0 %vm323_vm0, %v975_v18  ;;  %951 = vmatmul.msk.bf16.gmra.mxu1 %vm323_vm0, %v983_v19 }
  0x4a   :  { %959 = vmatmul.msk.bf16.gmra.mxu2 %vm323_vm0, %v991_v20  ;;  %967 = vmatmul.msk.bf16.gmra.mxu3 %vm323_vm0, %v999_v21  ;;  %v121_v21 = vld [vmem:[%s1470_s3 + $0x110] sm:$0xff] }
  0x59   :  { %944 = vmatmul.msk.bf16.gmra.mxu0 %vm323_vm0, %v976_v22  ;;  %952 = vmatmul.msk.bf16.gmra.mxu1 %vm323_vm0, %v984_v23  ;;  %v137_v22 = vld [vmem:[%s1470_s3 + $0x190] sm:$0xff]  ;;  %v90_v23 = vld [vmem:[%s1470_s3 + $0x18] sm:$0xff] }
  0x5a   :  { %960 = vmatmul.msk.bf16.gmra.mxu2 %vm323_vm0, %v992_v24  ;;  %968 = vmatmul.msk.bf16.gmra.mxu3 %vm323_vm0, %v1000_v25  ;;  %v106_v24 = vld [vmem:[%s1470_s3 + $0x98] sm:$0xff] }
  0x69   :  { %945 = vmatmul.msk.bf16.gmra.mxu0 %vm323_vm0, %v977_v26  ;;  %953 = vmatmul.msk.bf16.gmra.mxu1 %vm323_vm0, %v985_v27 }
  0x6a   :  { %961 = vmatmul.msk.bf16.gmra.mxu2 %vm323_vm0, %v993_v28  ;;  %969 = vmatmul.msk.bf16.gmra.mxu3 %vm323_vm0, %v1001_v29 }
  0x79   :  { %946 = vmatmul.msk.bf16.gmra.mxu0 %vm323_vm0, %v978_v30  ;;  %954 = vmatmul.msk.bf16.gmra.mxu1 %vm323_vm0, %v986_v31 }
  0x7a   :  { %962 = vmatmul.msk.bf16.gmra.mxu2 %vm323_vm0, %v994_v32  ;;  %970 = vmatmul.msk.bf16.gmra.mxu3 %vm323_vm0, %v1002_v33 }
  0x86   :  { %v429_v37 = vpop.f32.mrf.mxu0  ;;  %v469_v38 = vpop.f32.mrf.mxu1 }
  0x87   :  { %v430_v39 = vadd.f32 %v429_v37, %v87_v34  ;;  %v470_v40 = vadd.f32 %v469_v38, %v103_v35 }
  0x89   :  { %v593_v41 = vadd.f32 %v1212_v36, %v430_v39  ;;  %v609_v42 = vadd.f32 %v1212_v36, %v470_v40 }
  0x8b   :  { %v657_v43 = vmax.f32 %v593_v41, 0.0  ;;  %v673_v44 = vmax.f32 %v609_v42, 0.0  ;;  %v122_v42 = vld [vmem:[%s1470_s3 + $0x118] sm:$0xff] }
  0x8d   :  { %721 = vst [vmem:[#allocation2] sm:$0xff] %v657_v43  ;;  %v509_v49 = vpop.f32.mrf.mxu2  ;;  %v549_v50 = vpop.f32.mrf.mxu3  ;;  %v138_v43 = vld [vmem:[%s1470_s3 + $0x198] sm:$0xff] }
  0x8e   :  { %737 = vst [vmem:[#allocation2 + $0x80] sm:$0xff] %v673_v44  ;;  %v510_v51 = vadd.f32 %v509_v49, %v119_v45  ;;  %v550_v52 = vadd.f32 %v549_v50, %v135_v46  ;;  %v431_v53 = vpop.f32.mrf.mxu0  ;;  %v471_v54 = vpop.f32.mrf.mxu1  ;;  %v91_v44 = vld [vmem:[%s1470_s3 + $0x20] sm:$0xff] }
  0x8f   :  { %v432_v55 = vadd.f32 %v431_v53, %v88_v47  ;;  %v472_v56 = vadd.f32 %v471_v54, %v104_v48  ;;  %v107_v45 = vld [vmem:[%s1470_s3 + $0xa0] sm:$0xff] }
  0x90   :  { %v625_v57 = vadd.f32 %v1212_v36, %v510_v51  ;;  %v641_v58 = vadd.f32 %v1212_v36, %v550_v52 }
  0x91   :  { %v594_v59 = vadd.f32 %v1212_v36, %v432_v55  ;;  %v610_v60 = vadd.f32 %v1212_v36, %v472_v56 }
  0x92   :  { %v689_v61 = vmax.f32 %v625_v57, 0.0  ;;  %v705_v62 = vmax.f32 %v641_v58, 0.0 }
  0x93   :  { %v658_v63 = vmax.f32 %v594_v59, 0.0  ;;  %v674_v0 = vmax.f32 %v610_v60, 0.0 }
  0x94   :  { %753 = vst [vmem:[#allocation2 + $0x100] sm:$0xff] %v689_v61 }
  0x95   :  { %769 = vst [vmem:[#allocation2 + $0x180] sm:$0xff] %v705_v62  ;;  %v511_v5 = vpop.f32.mrf.mxu2  ;;  %v551_v6 = vpop.f32.mrf.mxu3  ;;  %v123_v62 = vld [vmem:[%s1470_s3 + $0x120] sm:$0xff] }
  0x96   :  { %722 = vst [vmem:[#allocation2 + $0x8] sm:$0xff] %v658_v63  ;;  %v512_v7 = vadd.f32 %v511_v5, %v120_v1  ;;  %v552_v8 = vadd.f32 %v551_v6, %v136_v2  ;;  %v434_v9 = vpop.f32.mrf.mxu0  ;;  %v474_v10 = vpop.f32.mrf.mxu1  ;;  %v139_v63 = vld [vmem:[%s1470_s3 + $0x1a0] sm:$0xff]  ;;  %v108_v1 = vld [vmem:[%s1470_s3 + $0xa8] sm:$0xff] }
  0x97   :  { %738 = vst [vmem:[#allocation2 + $0x88] sm:$0xff] %v674_v0  ;;  %v435_v11 = vadd.f32 %v434_v9, %v89_v3  ;;  %v475_v12 = vadd.f32 %v474_v10, %v105_v4  ;;  %v92_v0 = vld [vmem:[%s1470_s3 + $0x28] sm:$0xff] }
  0x98   :  { %v626_v13 = vadd.f32 %v1212_v36, %v512_v7  ;;  %v642_v14 = vadd.f32 %v1212_v36, %v552_v8 }
  0x99   :  { %v595_v15 = vadd.f32 %v1212_v36, %v435_v11  ;;  %v611_v16 = vadd.f32 %v1212_v36, %v475_v12 }
  0x9a   :  { %v690_v17 = vmax.f32 %v626_v13, 0.0  ;;  %v706_v18 = vmax.f32 %v642_v14, 0.0 }
  0x9b   :  { %v659_v19 = vmax.f32 %v595_v15, 0.0  ;;  %v675_v20 = vmax.f32 %v611_v16, 0.0 }
  0x9c   :  { %754 = vst [vmem:[#allocation2 + $0x108] sm:$0xff] %v690_v17 }
  0x9d   :  { %770 = vst [vmem:[#allocation2 + $0x188] sm:$0xff] %v706_v18  ;;  %v514_v25 = vpop.f32.mrf.mxu2  ;;  %v554_v26 = vpop.f32.mrf.mxu3  ;;  %v124_v18 = vld [vmem:[%s1470_s3 + $0x128] sm:$0xff] }
  0x9e   :  { %723 = vst [vmem:[#allocation2 + $0x10] sm:$0xff] %v659_v19  ;;  %v515_v27 = vadd.f32 %v514_v25, %v121_v21  ;;  %v555_v28 = vadd.f32 %v554_v26, %v137_v22  ;;  %v436_v29 = vpop.f32.mrf.mxu0  ;;  %v476_v30 = vpop.f32.mrf.mxu1  ;;  %v140_v19 = vld [vmem:[%s1470_s3 + $0x1a8] sm:$0xff]  ;;  %v109_v21 = vld [vmem:[%s1470_s3 + $0xb0] sm:$0xff] }
  0x9f   :  { %739 = vst [vmem:[#allocation2 + $0x90] sm:$0xff] %v675_v20  ;;  %v437_v31 = vadd.f32 %v436_v29, %v90_v23  ;;  %v477_v32 = vadd.f32 %v476_v30, %v106_v24  ;;  %v93_v20 = vld [vmem:[%s1470_s3 + $0x30] sm:$0xff] }
  0xa0   :  { %v627_v33 = vadd.f32 %v1212_v36, %v515_v27  ;;  %v643_v34 = vadd.f32 %v1212_v36, %v555_v28 }
  0xa1   :  { %v596_v35 = vadd.f32 %v1212_v36, %v437_v31  ;;  %v612_v37 = vadd.f32 %v1212_v36, %v477_v32 }
  0xa2   :  { %v691_v38 = vmax.f32 %v627_v33, 0.0  ;;  %v707_v39 = vmax.f32 %v643_v34, 0.0 }
  0xa3   :  { %v660_v40 = vmax.f32 %v596_v35, 0.0  ;;  %v676_v41 = vmax.f32 %v612_v37, 0.0 }
  0xa4   :  { %755 = vst [vmem:[#allocation2 + $0x110] sm:$0xff] %v691_v38 }
  0xa5   :  { %771 = vst [vmem:[#allocation2 + $0x190] sm:$0xff] %v707_v39  ;;  %v516_v46 = vpop.f32.mrf.mxu2  ;;  %v556_v47 = vpop.f32.mrf.mxu3  ;;  %v125_v39 = vld [vmem:[%s1470_s3 + $0x130] sm:$0xff] }
  0xa6   :  { %724 = vst [vmem:[#allocation2 + $0x18] sm:$0xff] %v660_v40  ;;  %v517_v48 = vadd.f32 %v516_v46, %v122_v42  ;;  %v557_v49 = vadd.f32 %v556_v47, %v138_v43  ;;  %v439_v50 = vpop.f32.mrf.mxu0  ;;  %v479_v51 = vpop.f32.mrf.mxu1  ;;  %v141_v40 = vld [vmem:[%s1470_s3 + $0x1b0] sm:$0xff]  ;;  %v110_v42 = vld [vmem:[%s1470_s3 + $0xb8] sm:$0xff] }
  0xa7   :  { %740 = vst [vmem:[#allocation2 + $0x98] sm:$0xff] %v676_v41  ;;  %v440_v52 = vadd.f32 %v439_v50, %v91_v44  ;;  %v480_v53 = vadd.f32 %v479_v51, %v107_v45  ;;  %v94_v41 = vld [vmem:[%s1470_s3 + $0x38] sm:$0xff] }
  0xa8   :  { %v628_v54 = vadd.f32 %v1212_v36, %v517_v48  ;;  %v644_v55 = vadd.f32 %v1212_v36, %v557_v49 }
  0xa9   :  { %v597_v56 = vadd.f32 %v1212_v36, %v440_v52  ;;  %v613_v57 = vadd.f32 %v1212_v36, %v480_v53 }
  0xaa   :  { %v692_v58 = vmax.f32 %v628_v54, 0.0  ;;  %v708_v59 = vmax.f32 %v644_v55, 0.0 }
  0xab   :  { %v661_v60 = vmax.f32 %v597_v56, 0.0  ;;  %v677_v61 = vmax.f32 %v613_v57, 0.0 }
  0xac   :  { %756 = vst [vmem:[#allocation2 + $0x118] sm:$0xff] %v692_v58 }
  0xad   :  { %772 = vst [vmem:[#allocation2 + $0x198] sm:$0xff] %v708_v59  ;;  %v519_v2 = vpop.f32.mrf.mxu2  ;;  %v559_v3 = vpop.f32.mrf.mxu3  ;;  %v126_v59 = vld [vmem:[%s1470_s3 + $0x138] sm:$0xff] }
  0xae   :  { %725 = vst [vmem:[#allocation2 + $0x20] sm:$0xff] %v661_v60  ;;  %v520_v4 = vadd.f32 %v519_v2, %v123_v62  ;;  %v560_v5 = vadd.f32 %v559_v3, %v139_v63  ;;  %v441_v6 = vpop.f32.mrf.mxu0  ;;  %v481_v7 = vpop.f32.mrf.mxu1  ;;  %v142_v60 = vld [vmem:[%s1470_s3 + $0x1b8] sm:$0xff]  ;;  %v111_v62 = vld [vmem:[%s1470_s3 + $0xc0] sm:$0xff] }
  0xaf   :  { %741 = vst [vmem:[#allocation2 + $0xa0] sm:$0xff] %v677_v61  ;;  %v442_v8 = vadd.f32 %v441_v6, %v92_v0  ;;  %v482_v9 = vadd.f32 %v481_v7, %v108_v1  ;;  %v95_v61 = vld [vmem:[%s1470_s3 + $0x40] sm:$0xff] }
  0xb0   :  { %v629_v10 = vadd.f32 %v1212_v36, %v520_v4  ;;  %v645_v11 = vadd.f32 %v1212_v36, %v560_v5 }
  0xb1   :  { %v598_v12 = vadd.f32 %v1212_v36, %v442_v8  ;;  %v614_v13 = vadd.f32 %v1212_v36, %v482_v9 }
  0xb2   :  { %v693_v14 = vmax.f32 %v629_v10, 0.0  ;;  %v709_v15 = vmax.f32 %v645_v11, 0.0 }
  0xb3   :  { %v662_v16 = vmax.f32 %v598_v12, 0.0  ;;  %v678_v17 = vmax.f32 %v614_v13, 0.0 }
  0xb4   :  { %757 = vst [vmem:[#allocation2 + $0x120] sm:$0xff] %v693_v14 }
  0xb5   :  { %773 = vst [vmem:[#allocation2 + $0x1a0] sm:$0xff] %v709_v15  ;;  %v521_v22 = vpop.f32.mrf.mxu2  ;;  %v561_v23 = vpop.f32.mrf.mxu3  ;;  %v127_v15 = vld [vmem:[%s1470_s3 + $0x140] sm:$0xff] }
  0xb6   :  { %726 = vst [vmem:[#allocation2 + $0x28] sm:$0xff] %v662_v16  ;;  %v522_v24 = vadd.f32 %v521_v22, %v124_v18  ;;  %v562_v25 = vadd.f32 %v561_v23, %v140_v19  ;;  %v444_v26 = vpop.f32.mrf.mxu0  ;;  %v484_v27 = vpop.f32.mrf.mxu1  ;;  %v143_v16 = vld [vmem:[%s1470_s3 + $0x1c0] sm:$0xff]  ;;  %v112_v18 = vld [vmem:[%s1470_s3 + $0xc8] sm:$0xff] }
  0xb7   :  { %742 = vst [vmem:[#allocation2 + $0xa8] sm:$0xff] %v678_v17  ;;  %v445_v28 = vadd.f32 %v444_v26, %v93_v20  ;;  %v485_v29 = vadd.f32 %v484_v27, %v109_v21  ;;  %v96_v17 = vld [vmem:[%s1470_s3 + $0x48] sm:$0xff] }
  0xb8   :  { %v630_v30 = vadd.f32 %v1212_v36, %v522_v24  ;;  %v646_v31 = vadd.f32 %v1212_v36, %v562_v25 }
  0xb9   :  { %v599_v32 = vadd.f32 %v1212_v36, %v445_v28  ;;  %v615_v33 = vadd.f32 %v1212_v36, %v485_v29 }
  0xba   :  { %v694_v34 = vmax.f32 %v630_v30, 0.0  ;;  %v710_v35 = vmax.f32 %v646_v31, 0.0 }
  0xbb   :  { %v663_v37 = vmax.f32 %v599_v32, 0.0  ;;  %v679_v38 = vmax.f32 %v615_v33, 0.0 }
  0xbc   :  { %758 = vst [vmem:[#allocation2 + $0x128] sm:$0xff] %v694_v34 }
  0xbd   :  { %774 = vst [vmem:[#allocation2 + $0x1a8] sm:$0xff] %v710_v35  ;;  %v524_v43 = vpop.f32.mrf.mxu2  ;;  %v564_v44 = vpop.f32.mrf.mxu3  ;;  %v128_v35 = vld [vmem:[%s1470_s3 + $0x148] sm:$0xff] }
  0xbe   :  { %727 = vst [vmem:[#allocation2 + $0x30] sm:$0xff] %v663_v37  ;;  %v525_v45 = vadd.f32 %v524_v43, %v125_v39  ;;  %v565_v46 = vadd.f32 %v564_v44, %v141_v40  ;;  %v446_v47 = vpop.f32.mrf.mxu0  ;;  %v486_v48 = vpop.f32.mrf.mxu1  ;;  %v144_v37 = vld [vmem:[%s1470_s3 + $0x1c8] sm:$0xff]  ;;  %v113_v39 = vld [vmem:[%s1470_s3 + $0xd0] sm:$0xff] }
  0xbf   :  { %743 = vst [vmem:[#allocation2 + $0xb0] sm:$0xff] %v679_v38  ;;  %v447_v49 = vadd.f32 %v446_v47, %v94_v41  ;;  %v487_v50 = vadd.f32 %v486_v48, %v110_v42  ;;  %v97_v38 = vld [vmem:[%s1470_s3 + $0x50] sm:$0xff] }
  0xc0   :  { %v631_v51 = vadd.f32 %v1212_v36, %v525_v45  ;;  %v647_v52 = vadd.f32 %v1212_v36, %v565_v46 }
  0xc1   :  { %v600_v53 = vadd.f32 %v1212_v36, %v447_v49  ;;  %v616_v54 = vadd.f32 %v1212_v36, %v487_v50 }
  0xc2   :  { %v695_v55 = vmax.f32 %v631_v51, 0.0  ;;  %v711_v56 = vmax.f32 %v647_v52, 0.0 }
  0xc3   :  { %v664_v57 = vmax.f32 %v600_v53, 0.0  ;;  %v680_v58 = vmax.f32 %v616_v54, 0.0 }
  0xc4   :  { %759 = vst [vmem:[#allocation2 + $0x130] sm:$0xff] %v695_v55 }
  0xc5   :  { %775 = vst [vmem:[#allocation2 + $0x1b0] sm:$0xff] %v711_v56  ;;  %v526_v63 = vpop.f32.mrf.mxu2  ;;  %v566_v0 = vpop.f32.mrf.mxu3  ;;  %v129_v56 = vld [vmem:[%s1470_s3 + $0x150] sm:$0xff] }
  0xc6   :  { %728 = vst [vmem:[#allocation2 + $0x38] sm:$0xff] %v664_v57  ;;  %v527_v1 = vadd.f32 %v526_v63, %v126_v59  ;;  %v567_v2 = vadd.f32 %v566_v0, %v142_v60  ;;  %v449_v3 = vpop.f32.mrf.mxu0  ;;  %v489_v4 = vpop.f32.mrf.mxu1  ;;  %v145_v57 = vld [vmem:[%s1470_s3 + $0x1d0] sm:$0xff]  ;;  %v114_v59 = vld [vmem:[%s1470_s3 + $0xd8] sm:$0xff] }
  0xc7   :  { %744 = vst [vmem:[#allocation2 + $0xb8] sm:$0xff] %v680_v58  ;;  %v450_v5 = vadd.f32 %v449_v3, %v95_v61  ;;  %v490_v6 = vadd.f32 %v489_v4, %v111_v62  ;;  %v98_v58 = vld [vmem:[%s1470_s3 + $0x58] sm:$0xff] }
  0xc8   :  { %v632_v7 = vadd.f32 %v1212_v36, %v527_v1  ;;  %v648_v8 = vadd.f32 %v1212_v36, %v567_v2 }
  0xc9   :  { %v601_v9 = vadd.f32 %v1212_v36, %v450_v5  ;;  %v617_v10 = vadd.f32 %v1212_v36, %v490_v6 }
  0xca   :  { %v696_v11 = vmax.f32 %v632_v7, 0.0  ;;  %v712_v12 = vmax.f32 %v648_v8, 0.0 }
  0xcb   :  { %v665_v13 = vmax.f32 %v601_v9, 0.0  ;;  %v681_v14 = vmax.f32 %v617_v10, 0.0 }
  0xcc   :  { %760 = vst [vmem:[#allocation2 + $0x138] sm:$0xff] %v696_v11 }
  0xcd   :  { %776 = vst [vmem:[#allocation2 + $0x1b8] sm:$0xff] %v712_v12  ;;  %v529_v19 = vpop.f32.mrf.mxu2  ;;  %v569_v20 = vpop.f32.mrf.mxu3  ;;  %v130_v12 = vld [vmem:[%s1470_s3 + $0x158] sm:$0xff] }
  0xce   :  { %729 = vst [vmem:[#allocation2 + $0x40] sm:$0xff] %v665_v13  ;;  %v530_v21 = vadd.f32 %v529_v19, %v127_v15  ;;  %v570_v22 = vadd.f32 %v569_v20, %v143_v16  ;;  %v451_v23 = vpop.f32.mrf.mxu0  ;;  %v491_v24 = vpop.f32.mrf.mxu1  ;;  %v146_v13 = vld [vmem:[%s1470_s3 + $0x1d8] sm:$0xff]  ;;  %v115_v15 = vld [vmem:[%s1470_s3 + $0xe0] sm:$0xff] }
  0xcf   :  { %745 = vst [vmem:[#allocation2 + $0xc0] sm:$0xff] %v681_v14  ;;  %v452_v25 = vadd.f32 %v451_v23, %v96_v17  ;;  %v492_v26 = vadd.f32 %v491_v24, %v112_v18  ;;  %v99_v14 = vld [vmem:[%s1470_s3 + $0x60] sm:$0xff] }
  0xd0   :  { %v633_v27 = vadd.f32 %v1212_v36, %v530_v21  ;;  %v649_v28 = vadd.f32 %v1212_v36, %v570_v22 }
  0xd1   :  { %v602_v29 = vadd.f32 %v1212_v36, %v452_v25  ;;  %v618_v30 = vadd.f32 %v1212_v36, %v492_v26 }
  0xd2   :  { %v697_v31 = vmax.f32 %v633_v27, 0.0  ;;  %v713_v32 = vmax.f32 %v649_v28, 0.0 }
  0xd3   :  { %v666_v33 = vmax.f32 %v602_v29, 0.0  ;;  %v682_v34 = vmax.f32 %v618_v30, 0.0 }
  0xd4   :  { %761 = vst [vmem:[#allocation2 + $0x140] sm:$0xff] %v697_v31 }
  0xd5   :  { %777 = vst [vmem:[#allocation2 + $0x1c0] sm:$0xff] %v713_v32  ;;  %v531_v40 = vpop.f32.mrf.mxu2  ;;  %v571_v41 = vpop.f32.mrf.mxu3  ;;  %v131_v32 = vld [vmem:[%s1470_s3 + $0x160] sm:$0xff] }
  0xd6   :  { %730 = vst [vmem:[#allocation2 + $0x48] sm:$0xff] %v666_v33  ;;  %v532_v42 = vadd.f32 %v531_v40, %v128_v35  ;;  %v572_v43 = vadd.f32 %v571_v41, %v144_v37  ;;  %v454_v44 = vpop.f32.mrf.mxu0  ;;  %v494_v45 = vpop.f32.mrf.mxu1  ;;  %v147_v33 = vld [vmem:[%s1470_s3 + $0x1e0] sm:$0xff]  ;;  %v116_v35 = vld [vmem:[%s1470_s3 + $0xe8] sm:$0xff] }
  0xd7   :  { %746 = vst [vmem:[#allocation2 + $0xc8] sm:$0xff] %v682_v34  ;;  %v455_v46 = vadd.f32 %v454_v44, %v97_v38  ;;  %v495_v47 = vadd.f32 %v494_v45, %v113_v39  ;;  %v100_v34 = vld [vmem:[%s1470_s3 + $0x68] sm:$0xff] }
  0xd8   :  { %v634_v48 = vadd.f32 %v1212_v36, %v532_v42  ;;  %v650_v49 = vadd.f32 %v1212_v36, %v572_v43 }
  0xd9   :  { %v603_v50 = vadd.f32 %v1212_v36, %v455_v46  ;;  %v619_v51 = vadd.f32 %v1212_v36, %v495_v47 }
  0xda   :  { %v698_v52 = vmax.f32 %v634_v48, 0.0  ;;  %v714_v53 = vmax.f32 %v650_v49, 0.0 }
  0xdb   :  { %v667_v54 = vmax.f32 %v603_v50, 0.0  ;;  %v683_v55 = vmax.f32 %v619_v51, 0.0 }
  0xdc   :  { %762 = vst [vmem:[#allocation2 + $0x148] sm:$0xff] %v698_v52 }
  0xdd   :  { %778 = vst [vmem:[#allocation2 + $0x1c8] sm:$0xff] %v714_v53  ;;  %v534_v60 = vpop.f32.mrf.mxu2  ;;  %v574_v61 = vpop.f32.mrf.mxu3  ;;  %v132_v53 = vld [vmem:[%s1470_s3 + $0x168] sm:$0xff] }
  0xde   :  { %731 = vst [vmem:[#allocation2 + $0x50] sm:$0xff] %v667_v54  ;;  %v535_v62 = vadd.f32 %v534_v60, %v129_v56  ;;  %v575_v63 = vadd.f32 %v574_v61, %v145_v57  ;;  %v456_v0 = vpop.f32.mrf.mxu0  ;;  %v496_v1 = vpop.f32.mrf.mxu1  ;;  %v148_v54 = vld [vmem:[%s1470_s3 + $0x1e8] sm:$0xff]  ;;  %v117_v56 = vld [vmem:[%s1470_s3 + $0xf0] sm:$0xff] }
  0xdf   :  { %747 = vst [vmem:[#allocation2 + $0xd0] sm:$0xff] %v683_v55  ;;  %v457_v2 = vadd.f32 %v456_v0, %v98_v58  ;;  %v497_v3 = vadd.f32 %v496_v1, %v114_v59  ;;  %v101_v55 = vld [vmem:[%s1470_s3 + $0x70] sm:$0xff] }
  0xe0   :  { %v635_v4 = vadd.f32 %v1212_v36, %v535_v62  ;;  %v651_v5 = vadd.f32 %v1212_v36, %v575_v63 }
  0xe1   :  { %v604_v6 = vadd.f32 %v1212_v36, %v457_v2  ;;  %v620_v7 = vadd.f32 %v1212_v36, %v497_v3 }
  0xe2   :  { %v699_v8 = vmax.f32 %v635_v4, 0.0  ;;  %v715_v9 = vmax.f32 %v651_v5, 0.0 }
  0xe3   :  { %v668_v10 = vmax.f32 %v604_v6, 0.0  ;;  %v684_v11 = vmax.f32 %v620_v7, 0.0 }
  0xe4   :  { %763 = vst [vmem:[#allocation2 + $0x150] sm:$0xff] %v699_v8 }
  0xe5   :  { %779 = vst [vmem:[#allocation2 + $0x1d0] sm:$0xff] %v715_v9  ;;  %v536_v16 = vpop.f32.mrf.mxu2  ;;  %v576_v17 = vpop.f32.mrf.mxu3  ;;  %v133_v9 = vld [vmem:[%s1470_s3 + $0x170] sm:$0xff] }
  0xe6   :  { %732 = vst [vmem:[#allocation2 + $0x58] sm:$0xff] %v668_v10  ;;  %v537_v18 = vadd.f32 %v536_v16, %v130_v12  ;;  %v577_v19 = vadd.f32 %v576_v17, %v146_v13  ;;  %v459_v20 = vpop.f32.mrf.mxu0  ;;  %v499_v21 = vpop.f32.mrf.mxu1  ;;  %v149_v10 = vld [vmem:[%s1470_s3 + $0x1f0] sm:$0xff]  ;;  %v118_v12 = vld [vmem:[%s1470_s3 + $0xf8] sm:$0xff] }
  0xe7   :  { %748 = vst [vmem:[#allocation2 + $0xd8] sm:$0xff] %v684_v11  ;;  %v460_v22 = vadd.f32 %v459_v20, %v99_v14  ;;  %v500_v23 = vadd.f32 %v499_v21, %v115_v15  ;;  %v102_v11 = vld [vmem:[%s1470_s3 + $0x78] sm:$0xff] }
  0xe8   :  { %v636_v24 = vadd.f32 %v1212_v36, %v537_v18  ;;  %v652_v25 = vadd.f32 %v1212_v36, %v577_v19 }
  0xe9   :  { %v605_v26 = vadd.f32 %v1212_v36, %v460_v22  ;;  %v621_v27 = vadd.f32 %v1212_v36, %v500_v23 }
  0xea   :  { %v700_v28 = vmax.f32 %v636_v24, 0.0  ;;  %v716_v29 = vmax.f32 %v652_v25, 0.0 }
  0xeb   :  { %v669_v30 = vmax.f32 %v605_v26, 0.0  ;;  %v685_v31 = vmax.f32 %v621_v27, 0.0 }
  0xec   :  { %764 = vst [vmem:[#allocation2 + $0x158] sm:$0xff] %v700_v28 }
  0xed   :  { %780 = vst [vmem:[#allocation2 + $0x1d8] sm:$0xff] %v716_v29  ;;  %v539_v37 = vpop.f32.mrf.mxu2  ;;  %v579_v38 = vpop.f32.mrf.mxu3  ;;  %v134_v29 = vld [vmem:[%s1470_s3 + $0x178] sm:$0xff] }
  0xee   :  { %733 = vst [vmem:[#allocation2 + $0x60] sm:$0xff] %v669_v30  ;;  %v540_v39 = vadd.f32 %v539_v37, %v131_v32  ;;  %v580_v40 = vadd.f32 %v579_v38, %v147_v33  ;;  %v461_v41 = vpop.f32.mrf.mxu0  ;;  %v501_v42 = vpop.f32.mrf.mxu1  ;;  %v150_v30 = vld [vmem:[%s1470_s3 + $0x1f8] sm:$0xff]  ;;  %s1042_s3 = smov 128  }
  0xef   :  { %749 = vst [vmem:[#allocation2 + $0xe0] sm:$0xff] %v685_v31  ;;  %v462_v43 = vadd.f32 %v461_v41, %v100_v34  ;;  %v502_v44 = vadd.f32 %v501_v42, %v116_v35 }
  0xf0   :  { %v637_v45 = vadd.f32 %v1212_v36, %v540_v39  ;;  %v653_v46 = vadd.f32 %v1212_v36, %v580_v40 }
  0xf1   :  { %v606_v47 = vadd.f32 %v1212_v36, %v462_v43  ;;  %v622_v48 = vadd.f32 %v1212_v36, %v502_v44 }
  0xf2   :  { %v701_v49 = vmax.f32 %v637_v45, 0.0  ;;  %v717_v50 = vmax.f32 %v653_v46, 0.0 }
  0xf3   :  { %v670_v51 = vmax.f32 %v606_v47, 0.0  ;;  %v686_v52 = vmax.f32 %v622_v48, 0.0 }
  0xf4   :  { %765 = vst [vmem:[#allocation2 + $0x160] sm:$0xff] %v701_v49 }
  0xf5   :  { %781 = vst [vmem:[#allocation2 + $0x1e0] sm:$0xff] %v717_v50  ;;  %v541_v57 = vpop.f32.mrf.mxu2  ;;  %v581_v58 = vpop.f32.mrf.mxu3 }
  0xf6   :  { %734 = vst [vmem:[#allocation2 + $0x68] sm:$0xff] %v670_v51  ;;  %v542_v59 = vadd.f32 %v541_v57, %v132_v53  ;;  %v582_v60 = vadd.f32 %v581_v58, %v148_v54  ;;  %v464_v61 = vpop.f32.mrf.mxu0  ;;  %v504_v62 = vpop.f32.mrf.mxu1 }
  0xf7   :  { %750 = vst [vmem:[#allocation2 + $0xe8] sm:$0xff] %v686_v52  ;;  %v465_v63 = vadd.f32 %v464_v61, %v101_v55  ;;  %v505_v0 = vadd.f32 %v504_v62, %v117_v56 }
  0xf8   :  { %v638_v1 = vadd.f32 %v1212_v36, %v542_v59  ;;  %v654_v2 = vadd.f32 %v1212_v36, %v582_v60 }
  0xf9   :  { %v607_v3 = vadd.f32 %v1212_v36, %v465_v63  ;;  %v623_v4 = vadd.f32 %v1212_v36, %v505_v0 }
  0xfa   :  { %v702_v5 = vmax.f32 %v638_v1, 0.0  ;;  %v718_v6 = vmax.f32 %v654_v2, 0.0 }
  0xfb   :  { %v671_v7 = vmax.f32 %v607_v3, 0.0  ;;  %v687_v8 = vmax.f32 %v623_v4, 0.0 }
  0xfc   :  { %766 = vst [vmem:[#allocation2 + $0x168] sm:$0xff] %v702_v5 }
  0xfd   :  { %782 = vst [vmem:[#allocation2 + $0x1e8] sm:$0xff] %v718_v6  ;;  %v544_v13 = vpop.f32.mrf.mxu2  ;;  %v584_v14 = vpop.f32.mrf.mxu3 }
  0xfe   :  { %735 = vst [vmem:[#allocation2 + $0x70] sm:$0xff] %v671_v7  ;;  %v545_v15 = vadd.f32 %v544_v13, %v133_v9  ;;  %v585_v16 = vadd.f32 %v584_v14, %v149_v10  ;;  %v466_v17 = vpop.f32.mrf.mxu0  ;;  %v506_v18 = vpop.f32.mrf.mxu1 }
  0xff   :  { %751 = vst [vmem:[#allocation2 + $0xf0] sm:$0xff] %v687_v8  ;;  %v467_v19 = vadd.f32 %v466_v17, %v102_v11  ;;  %v507_v20 = vadd.f32 %v506_v18, %v118_v12 }
 0x100   :  { %v639_v21 = vadd.f32 %v1212_v36, %v545_v15  ;;  %v655_v22 = vadd.f32 %v1212_v36, %v585_v16 }
 0x101   :  { %v608_v23 = vadd.f32 %v1212_v36, %v467_v19  ;;  %v624_v24 = vadd.f32 %v1212_v36, %v507_v20 }
 0x102   :  { %v703_v25 = vmax.f32 %v639_v21, 0.0  ;;  %v719_v26 = vmax.f32 %v655_v22, 0.0 }
 0x103   :  { %v672_v27 = vmax.f32 %v608_v23, 0.0  ;;  %v688_v28 = vmax.f32 %v624_v24, 0.0 }
 0x104   :  { %767 = vst [vmem:[#allocation2 + $0x170] sm:$0xff] %v703_v25 }
 0x105   :  { %783 = vst [vmem:[#allocation2 + $0x1f0] sm:$0xff] %v719_v26  ;;  %v546_v31 = vpop.f32.mrf.mxu2  ;;  %v586_v32 = vpop.f32.mrf.mxu3 }
 0x106   :  { %736 = vst [vmem:[#allocation2 + $0x78] sm:$0xff] %v672_v27  ;;  %v547_v33 = vadd.f32 %v546_v31, %v134_v29  ;;  %v587_v34 = vadd.f32 %v586_v32, %v150_v30 }
 0x107   :  { %752 = vst [vmem:[#allocation2 + $0xf8] sm:$0xff] %v688_v28 }
 0x108   :  { %v640_v35 = vadd.f32 %v1212_v36, %v547_v33  ;;  %v656_v37 = vadd.f32 %v1212_v36, %v587_v34 }
 0x10a   :  { %v704_v38 = vmax.f32 %v640_v35, 0.0  ;;  %v720_v39 = vmax.f32 %v656_v37, 0.0 }
 0x10c   :  { %768 = vst [vmem:[#allocation2 + $0x178] sm:$0xff] %v704_v38 }
 0x10d   :  { %784 = vst [vmem:[#allocation2 + $0x1f8] sm:$0xff] %v720_v39 }
 0x10e   :  { %797 = dma.vmem_to_hbm [thread:$0]  %s790_s15, 8192, %s792_s18, [#allocation3], %s1042_s3, %s1042_s3, %s1043_s19  }
 0x10f   :  { %1039 = dma.done.wait [#allocation3], 8192  }
 0x110   :  { %1040 = vsyncadd [#allocation3], 4294959104 }
 0x111   :  { %802 = vsyncpa [#allocation3], 1 }

// kernel: bottleneck_forward.4
= control target key start
LH: loop header
LB: loop body
LE: loop exit
PB: predicated region body
PF: predicated region fallthrough
CT: control target
= control target key end

     0   :  { %s2972_s12 = smov 0   ;;  %s4155_s0 = inlined_call_operand.vmem [shape: bf16[2,1,18,18,32], index: 0, kind: input, shape index: {}]   ;;  %s4156_s1 = inlined_call_operand.vmem [shape: bf16[9,32,32], index: 1, kind: input, shape index: {}]   ;;  %s4157_s2 = inlined_call_operand.vmem [shape: f32[1,32], index: 2, kind: input, shape index: {}]   ;;  %s4158_s3 = inlined_call_operand.vmem [shape: bf16[2,16,16,32], index: 3, kind: output, shape index: {}]  }
   0x1 LB: > { %s2534_s13 = sadd.s32 4294967295, %s2950_s12   ;;  %p2538_p0 = scmp.ge.s32.totalorder %s2950_s12, 1  ;;  %s2950_s12 = sphi %s2972_s12, %s13_s12  }
   0x2   : > { %p137_p1 = scmp.lt.s32.totalorder %s2950_s12, 3 }
   0x4   : > { %p138_p2 = pnand %p2538_p0, %p137_p1 }
   0x6   : > { %141 = sbr.rel (%p138_p2) target bundleno = 760 (0x2f8), region = 32 }
   0xb   : > { %v2904_v0 = vld [vmem:[%s4156_s1 + $0x18] sm:$0xff]  ;;  %p161_p3 = scmp.lt.s32.totalorder %s2534_s13, 1  ;;  %v2903_v1 = vld [vmem:[%s4156_s1 + $0x10] sm:$0xff]  ;;  %v2906_v2 = vld [vmem:[%s4156_s1 + $0x28] sm:$0xff]  ;;  %vm230_vm0 = vsmask.f32 3328 }
   0xc   : > { %2919 = vmatpush.bf16.msra.mxu1 %v2904_v0  ;;  %2920 = vmatpush.bf16.msra.mxu2 %v2904_v0  ;;  %v2908_v3 = vld [vmem:[%s4156_s1 + $0x38] sm:$0xff]  ;;  %v2902_v4 = vld [vmem:[%s4156_s1 + $0x8] sm:$0xff]  ;;  %vm231_vm1 = vsmask.f32 7440  ;;  %vm682_vm3 = vcmask 261120   ;;  %vm1065_vm4 = vcmask 1042432  }
   0xd   : > { %s4301_s13 = smov (!%p161_p3, %s2534_s13), 1  ;;  %2921 = vmatpush.bf16.msra.mxu3 %v2904_v0  ;;  %737 = vmatpush.bf16.msra.mxu0 %v2904_v0  ;;  %v2910_v5 = vld [vmem:[%s4156_s1 + $0x48] sm:$0xff]  ;;  %vm3027_vm2 = vmor %vm230_vm0, %vm231_vm1  ;;  %vm1066_vm5 = vcmask 1046532   ;;  %vm2446_vm7 = vcmask 257024  }
   0xe   : > { %s2925_s18 = smul.u32 216, %s4301_s13  ;;  %vm3341_vm6 = vmor %vm1065_vm4, %vm1066_vm5  ;;  %s2882_s5 = sshll.u32 %s4301_s13, 7 }
   0xf   : > { %s3947_s8 = scalar_lea.vmem %s4158_s3, %s2882_s5 }
  0x10   : > { %2922 = vmatpush.bf16.msra.mxu1 %v2903_v1  ;;  %2923 = vmatpush.bf16.msra.mxu2 %v2903_v1  ;;  %s3004_s29 = scalar_lea.vmem %s4155_s0, %s2925_s18 }
  0x11   : > { %2924 = vmatpush.bf16.msra.mxu3 %v2903_v1  ;;  %738 = vmatpush.bf16.msra.mxu0 %v2903_v1  ;;  %v3007_v6 = vld [vmem:[%s3004_s29 + $0x30] sm:$0xf]  ;;  %v3010_v7 = vld [vmem:[%s3004_s29 + $0x34] sm:$0xf]  ;;  %v3013_v8 = vld [vmem:[%s3004_s29 + $0x38] sm:$0x1] }
  0x12   : > { %v330_v9 = vshrl.u32 %v3007_v6, 16  ;;  %v333_v10 = vshll.u32 %v3007_v6, 16  ;;  %v339_v11 = vshll.u32 %v3010_v7, 16  ;;  %v343_v12 = vshrl.u32 %v3010_v7, 16  ;;  %v196_v13 = vld [vmem:[%s3004_s29 + $0x60] sm:$0xf] }
  0x13   : > { %v349_v14 = vshll.u32 %v3013_v8, 16  ;;  %v197_v15 = vld [vmem:[%s3004_s29 + $0x64] sm:$0xf]  ;;  %v198_v16 = vld [vmem:[%s3004_s29 + $0x68] sm:$0x1]  ;;  %v426_v17 = vshrl.u32 %v196_v13, 16 }
  0x14   : > { %1299 = vmatpush.bf16.msrb.mxu2 %v2906_v2  ;;  %966 = vmatpush.bf16.msrb.mxu1 %v2902_v4  ;;  %v332_v18 = vrot.slane %v330_v9, 4  ;;  %v335_v19 = vrot.slane %v333_v10, 5  ;;  %v341_v20 = vrot.slane %v339_v11, 5  ;;  %v345_v21 = vrot.slane %v343_v12, 4  ;;  %v208_v22 = vld [vmem:[%s3004_s29 + $0x90] sm:$0xf] }
  0x15   : > { %1445 = vmatpush.bf16.msrb.mxu3 %v2908_v3  ;;  %1613 = vmatpush.bf16.msrb.mxu0 %v2910_v5  ;;  %v351_v23 = vrot.slane %v349_v14, 5  ;;  %v428_v24 = vrot.slane %v426_v17, 4  ;;  %v429_v25 = vshll.u32 %v196_v13, 16  ;;  %v435_v26 = vshll.u32 %v197_v15, 16  ;;  %v209_v31 = vld [vmem:[%s3004_s29 + $0x94] sm:$0xf] }
  0x16   : > { %v336_v27 = vor.u32 %v335_v19, %v332_v18  ;;  %v346_v28 = vor.u32 %v345_v21, %v341_v20  ;;  %v439_v29 = vshrl.u32 %v197_v15, 16  ;;  %v445_v30 = vshll.u32 %v198_v16, 16  ;;  %v210_v41 = vld [vmem:[%s3004_s29 + $0x98] sm:$0x1]  ;;  %v3037_v57 = vld [vmem:[%s3004_s29] sm:$0xf] }
  0x17   : > { %v431_v33 = vrot.slane %v429_v25, 5  ;;  %v437_v34 = vrot.slane %v435_v26, 5  ;;  %v522_v35 = vshrl.u32 %v208_v22, 16  ;;  %v525_v43 = vshll.u32 %v208_v22, 16  ;;  %v3044_v61 = vld [vmem:[%s3004_s29 + $0x4] sm:$0xf] }
  0x18   : > { %v337_v36 = vrot.slane %v336_v27, 4  ;;  %v347_v37 = vrot.slane %v346_v28, 4  ;;  %v441_v38 = vrot.slane %v439_v29, 4  ;;  %v447_v39 = vrot.slane %v445_v30, 5  ;;  %v3047_v62 = vld [vmem:[%s3004_s29 + $0x8] sm:$0x1] }
  0x19   : > { %v432_v40 = vor.u32 %v431_v33, %v428_v24  ;;  %v524_v42 = vrot.slane %v522_v35, 4  ;;  %v531_v44 = vshll.u32 %v209_v31, 16  ;;  %v535_v48 = vshrl.u32 %v209_v31, 16  ;;  %v3063_v18 = vld [vmem:[%s3004_s29 + $0x3c] sm:$0xf] }
  0x1a   : > { %v342_v45 = vsel %vm3027_vm2, %v337_v36, %v341_v20  ;;  %v352_v46 = vsel %vm3027_vm2, %v347_v37, %v351_v23  ;;  %v442_v47 = vor.u32 %v441_v38, %v437_v34  ;;  %v527_v52 = vrot.slane %v525_v43, 5  ;;  %v3066_v19 = vld [vmem:[%s3004_s29 + $0x40] sm:$0xf]  ;;  %v3071_v24 = vld [vmem:[%s3004_s29 + $0x44] sm:$0x1] }
  0x1b   : > { %v630_v49 = vunpack.c.l.b16 %v342_v45  ;;  %v631_v50 = vunpack.c.l.b16 %v352_v46  ;;  %v433_v51 = vrot.slane %v432_v40, 4  ;;  %v533_v54 = vrot.slane %v531_v44, 5  ;;  %v3079_v33 = vld [vmem:[%s3004_s29 + $0x6c] sm:$0xf]  ;;  %v3093_v46 = vld [vmem:[%s3004_s29 + $0x74] sm:$0x1] }
  0x1c   : > { %v443_v53 = vrot.slane %v442_v47, 4  ;;  %v537_v55 = vrot.slane %v535_v48, 4  ;;  %v541_v56 = vshll.u32 %v210_v41, 16  ;;  %v528_v60 = vor.u32 %v527_v52, %v524_v42  ;;  %v3086_v42 = vld [vmem:[%s3004_s29 + $0x70] sm:$0xf] }
  0x1d   : > { %v3039_v58 = vpack.c.b16 %v631_v50, %v630_v49  ;;  %v438_v59 = vsel %vm3027_vm2, %v433_v51, %v437_v34  ;;  %v234_v5 = vshrl.u32 %v3037_v57, 16  ;;  %v237_v9 = vshll.u32 %v3037_v57, 16 }
  0x1e   : > { %v448_v63 = vsel %vm3027_vm2, %v443_v53, %v447_v39  ;;  %v638_v0 = vunpack.c.l.b16 %v438_v59  ;;  %v538_v1 = vor.u32 %v537_v55, %v533_v54  ;;  %v543_v2 = vrot.slane %v541_v56, 5 }
  0x1f   : > { %2558 = vmatmul.msk.bf16.vlgmr.msra.gmra.mxu1 %vm682_vm3, %v3039_v58  ;;  %v639_v3 = vunpack.c.l.b16 %v448_v63  ;;  %v529_v4 = vrot.slane %v528_v60, 4  ;;  %v243_v11 = vshll.u32 %v3044_v61, 16  ;;  %v247_v12 = vshrl.u32 %v3044_v61, 16 }
  0x20   : > { %v539_v10 = vrot.slane %v538_v1, 4  ;;  %v253_v13 = vshll.u32 %v3047_v62, 16  ;;  %v236_v16 = vrot.slane %v234_v5, 4  ;;  %v239_v17 = vrot.slane %v237_v9, 5 }
  0x21   : > { %v3058_v14 = vpack.c.b16 %v639_v3, %v638_v0  ;;  %v534_v15 = vsel %vm3027_vm2, %v529_v4, %v533_v54  ;;  %v245_v22 = vrot.slane %v243_v11, 5  ;;  %v249_v23 = vrot.slane %v247_v12, 4  ;;  %v211_v0 = vld [vmem:[%s3004_s29 + $0x9c] sm:$0xf]  ;;  %v212_v4 = vld [vmem:[%s3004_s29 + $0xa0] sm:$0xf] }
  0x22   : > { %v544_v20 = vsel %vm3027_vm2, %v539_v10, %v543_v2  ;;  %v646_v21 = vunpack.c.l.b16 %v534_v15  ;;  %v240_v26 = vor.u32 %v239_v17, %v236_v16  ;;  %v255_v27 = vrot.slane %v253_v13, 5  ;;  %v213_v12 = vld [vmem:[%s3004_s29 + $0xa4] sm:$0x1] }
  0x23   : > { %4201 = vst [vmem:[#allocation2_spill] sm:$0xff] %v3058_v14  ;;  %2562 = vmatmul.msk.bf16.vlgmr.msra.gmra.mxu2 %vm682_vm3, %v3058_v14  ;;  %v647_v25 = vunpack.c.l.b16 %v544_v20  ;;  %v250_v28 = vor.u32 %v249_v23, %v245_v22  ;;  %v354_v29 = vshrl.u32 %v3063_v18, 16  ;;  %v357_v30 = vshll.u32 %v3063_v18, 16 }
  0x24   : > { %v363_v31 = vshll.u32 %v3066_v19, 16  ;;  %v241_v35 = vrot.slane %v240_v26, 4  ;;  %v367_v36 = vshrl.u32 %v3066_v19, 16  ;;  %v373_v37 = vshll.u32 %v3071_v24, 16 }
  0x25   : > { %v3081_v34 = vpack.c.b16 %v647_v25, %v646_v21  ;;  %v251_v38 = vrot.slane %v250_v28, 4  ;;  %v356_v39 = vrot.slane %v354_v29, 4  ;;  %v359_v40 = vrot.slane %v357_v30, 5  ;;  %v3111_v25 = vld [vmem:[%s3004_s29 + $0xc] sm:$0xf]  ;;  %v2905_v30 = vld [vmem:[%s4156_s1 + $0x20] sm:$0xff] }
  0x26   : > { %v365_v41 = vrot.slane %v363_v31, 5  ;;  %v246_v43 = vsel %vm3027_vm2, %v241_v35, %v245_v22  ;;  %v369_v44 = vrot.slane %v367_v36, 4  ;;  %v375_v45 = vrot.slane %v373_v37, 5  ;;  %1300 = vmatpush.bf16.msrb.mxu2 %v2905_v30 }
  0x27   : > { %4202 = vst [vmem:[#allocation3_spill] sm:$0xff] %v3081_v34  ;;  %2566 = vmatmul.msk.bf16.vlgmr.msra.gmra.mxu3 %vm682_vm3, %v3081_v34  ;;  %v450_v47 = vshrl.u32 %v3079_v33, 16  ;;  %v256_v48 = vsel %vm3027_vm2, %v251_v38, %v255_v27  ;;  %v622_v49 = vunpack.c.l.b16 %v246_v43  ;;  %v360_v50 = vor.u32 %v359_v40, %v356_v39  ;;  %v3121_v38 = vld [vmem:[%s3004_s29 + $0x10] sm:$0xf]  ;;  %v3124_v43 = vld [vmem:[%s3004_s29 + $0x14] sm:$0x1] }
  0x28   : > { %v453_v51 = vshll.u32 %v3079_v33, 16  ;;  %v623_v52 = vunpack.c.l.b16 %v256_v48  ;;  %v370_v53 = vor.u32 %v369_v44, %v365_v41  ;;  %v459_v55 = vshll.u32 %v3086_v42, 16 }
  0x29   : > { %v452_v54 = vrot.slane %v450_v47, 4  ;;  %v361_v56 = vrot.slane %v360_v50, 4  ;;  %v463_v60 = vshrl.u32 %v3086_v42, 16  ;;  %v469_v63 = vshll.u32 %v3093_v46, 16 }
  0x2a   : > { %v455_v59 = vrot.slane %v453_v51, 5  ;;  %v654_v1 = vpack.c.b16 %v623_v52, %v622_v49  ;;  %v371_v2 = vrot.slane %v370_v53, 4  ;;  %v461_v3 = vrot.slane %v459_v55, 5  ;;  %v3134_v53 = vld [vmem:[%s3004_s29 + $0x48] sm:$0xf] }
  0x2b   : > { %v366_v5 = vsel %vm3027_vm2, %v361_v56, %v365_v41  ;;  %v465_v10 = vrot.slane %v463_v60, 4  ;;  %v471_v11 = vrot.slane %v469_v63, 5  ;;  %v546_v16 = vshrl.u32 %v211_v0, 16  ;;  %v2907_v63 = vld [vmem:[%s4156_s1 + $0x30] sm:$0xff] }
  0x2c   : > { %v456_v9 = vor.u32 %v455_v59, %v452_v54  ;;  %2554 = vmatmul.msk.bf16.vlgmr.msra.gmra.mxu0 %vm682_vm3, %v654_v1  ;;  %v376_v13 = vsel %vm3027_vm2, %v371_v2, %v375_v45  ;;  %v632_v15 = vunpack.c.l.b16 %v366_v5  ;;  %v549_v17 = vshll.u32 %v211_v0, 16  ;;  %v3137_v54 = vld [vmem:[%s3004_s29 + $0x4c] sm:$0xf]  ;;  %v2901_v0 = vld [vmem:[%s4156_s1] sm:$0xff]  ;;  %1446 = vmatpush.bf16.msrb.mxu3 %v2907_v63 }
  0x2d   : > { %v633_v20 = vunpack.c.l.b16 %v376_v13  ;;  %v466_v22 = vor.u32 %v465_v10, %v461_v3  ;;  %v555_v23 = vshll.u32 %v212_v4, 16  ;;  %v548_v26 = vrot.slane %v546_v16, 4  ;;  %v2909_v5 = vld [vmem:[%s4156_s1 + $0x40] sm:$0xff]  ;;  %v3155_v13 = vld [vmem:[%s3004_s29 + $0x50] sm:$0x1]  ;;  %967 = vmatpush.bf16.msrb.mxu1 %v2901_v0 }
  0x2e   : > { %v457_v21 = vrot.slane %v456_v9, 4  ;;  %v551_v27 = vrot.slane %v549_v17, 5  ;;  %v559_v28 = vshrl.u32 %v212_v4, 16  ;;  %v565_v29 = vshll.u32 %v213_v12, 16  ;;  %1614 = vmatpush.bf16.msrb.mxu0 %v2909_v5  ;;  %v3189_v5 = vld [vmem:[%s3004_s29 + $0xa8] sm:$0xf] }
  0x2f   : > { %v3116_v31 = vpack.c.b16 %v633_v20, %v632_v15  ;;  %v467_v36 = vrot.slane %v466_v22, 4  ;;  %v557_v37 = vrot.slane %v555_v23, 5  ;;  %v258_v47 = vshrl.u32 %v3111_v25, 16  ;;  %4204 = vst [vmem:[#allocation5_spill] sm:$0xff] %v3189_v5 }
  0x30   : > { %v462_v35 = vsel %vm3027_vm2, %v457_v21, %v461_v3  ;;  %v552_v40 = vor.u32 %v551_v27, %v548_v26  ;;  %v561_v41 = vrot.slane %v559_v28, 4  ;;  %v567_v45 = vrot.slane %v565_v29, 5  ;;  %v3166_v27 = vld [vmem:[%s3004_s29 + $0x78] sm:$0xf] }
  0x31   : > { %v640_v39 = vunpack.c.l.b16 %v462_v35  ;;  %2559 = vmatmul.msk.bf16.gmra.mxu1 %vm682_vm3, %v3116_v31  ;;  %v472_v44 = vsel %vm3027_vm2, %v467_v36, %v471_v11  ;;  %v261_v48 = vshll.u32 %v3111_v25, 16  ;;  %v267_v52 = vshll.u32 %v3121_v38, 16  ;;  %v3170_v36 = vld [vmem:[%s3004_s29 + $0x7c] sm:$0xf] }
  0x32   : > { %v641_v49 = vunpack.c.l.b16 %v472_v44  ;;  %v553_v50 = vrot.slane %v552_v40, 4  ;;  %v562_v51 = vor.u32 %v561_v41, %v557_v37  ;;  %v260_v55 = vrot.slane %v258_v47, 4 }
  0x33   : > { %v263_v56 = vrot.slane %v261_v48, 5  ;;  %v271_v59 = vshrl.u32 %v3121_v38, 16  ;;  %v277_v60 = vshll.u32 %v3124_v43, 16  ;;  %v269_v4 = vrot.slane %v267_v52, 5  ;;  %v3177_v48 = vld [vmem:[%s3004_s29 + $0x80] sm:$0x1] }
  0x34   : > { %v3147_v1 = vpack.c.b16 %v641_v49, %v640_v39  ;;  %v558_v2 = vsel %vm3027_vm2, %v553_v50, %v557_v37  ;;  %v563_v3 = vrot.slane %v562_v51, 4  ;;  %v378_v16 = vshrl.u32 %v3134_v53, 16 }
  0x35   : > { %v648_v9 = vunpack.c.l.b16 %v558_v2  ;;  %v264_v10 = vor.u32 %v263_v56, %v260_v55  ;;  %v273_v11 = vrot.slane %v271_v59, 4  ;;  %v279_v12 = vrot.slane %v277_v60, 5 }
  0x36   : > { %2563 = vmatmul.msk.bf16.gmra.mxu2 %vm682_vm3, %v3147_v1  ;;  %v568_v15 = vsel %vm3027_vm2, %v563_v3, %v567_v45  ;;  %v381_v17 = vshll.u32 %v3134_v53, 16  ;;  %v387_v20 = vshll.u32 %v3137_v54, 16  ;;  %v391_v26 = vshrl.u32 %v3137_v54, 16 }
  0x37   : > { %v649_v21 = vunpack.c.l.b16 %v568_v15  ;;  %v265_v22 = vrot.slane %v264_v10, 4  ;;  %v274_v23 = vor.u32 %v273_v11, %v269_v4  ;;  %v380_v28 = vrot.slane %v378_v16, 4  ;;  %v3199_v15 = vld [vmem:[%s3004_s29 + $0xb0] sm:$0x1] }
  0x38   : > { %v383_v29 = vrot.slane %v381_v17, 5  ;;  %v389_v30 = vrot.slane %v387_v20, 5  ;;  %v397_v35 = vshll.u32 %v3155_v13, 16  ;;  %v393_v41 = vrot.slane %v391_v26, 4  ;;  %4206 = vst [vmem:[#allocation7_spill] sm:$0xff] %v3199_v15 }
  0x39   : > { %v3172_v37 = vpack.c.b16 %v649_v21, %v648_v9  ;;  %v270_v39 = vsel %vm3027_vm2, %v265_v22, %v269_v4  ;;  %v275_v40 = vrot.slane %v274_v23, 4  ;;  %v474_v49 = vshrl.u32 %v3166_v27, 16 }
  0x3a   : > { %v624_v44 = vunpack.c.l.b16 %v270_v39  ;;  %v384_v45 = vor.u32 %v383_v29, %v380_v28  ;;  %v399_v47 = vrot.slane %v397_v35, 5  ;;  %v394_v51 = vor.u32 %v393_v41, %v389_v30 }
  0x3b   : > { %4203 = vst [vmem:[#allocation4_spill] sm:$0xff] %v3172_v37  ;;  %2567 = vmatmul.msk.bf16.gmra.mxu3 %vm682_vm3, %v3172_v37  ;;  %v280_v50 = vsel %vm3027_vm2, %v275_v40, %v279_v12  ;;  %v477_v52 = vshll.u32 %v3166_v27, 16  ;;  %v483_v55 = vshll.u32 %v3170_v36, 16  ;;  %v476_v60 = vrot.slane %v474_v49, 4  ;;  %v3196_v12 = vld [vmem:[%s3004_s29 + $0xac] sm:$0xf] }
  0x3c   : > { %v625_v56 = vunpack.c.l.b16 %v280_v50  ;;  %v385_v59 = vrot.slane %v384_v45, 4  ;;  %v487_v63 = vshrl.u32 %v3170_v36, 16  ;;  %v395_v0 = vrot.slane %v394_v51, 4  ;;  %4205 = vst [vmem:[#allocation6_spill] sm:$0xff] %v3196_v12 }
  0x3d   : > { %v479_v2 = vrot.slane %v477_v52, 5  ;;  %v485_v3 = vrot.slane %v483_v55, 5  ;;  %v493_v4 = vshll.u32 %v3177_v48, 16  ;;  %v570_v26 = vshrl.u32 %v3189_v5, 16  ;;  %v3218_v52 = vld [vmem:[%s3004_s29 + $0x1c] sm:$0xf] }
  0x3e   : > { %v3191_v9 = vpack.c.b16 %v625_v56, %v624_v44  ;;  %v390_v10 = vsel %vm3027_vm2, %v385_v59, %v389_v30  ;;  %v489_v11 = vrot.slane %v487_v63, 4  ;;  %v400_v16 = vsel %vm3027_vm2, %v395_v0, %v399_v47  ;;  %v3213_v47 = vld [vmem:[%s3004_s29 + $0x18] sm:$0xf]  ;;  %v3221_v55 = vld [vmem:[%s3004_s29 + $0x20] sm:$0x1] }
  0x3f   : > { %v634_v17 = vunpack.c.l.b16 %v390_v10  ;;  %v480_v20 = vor.u32 %v479_v2, %v476_v60  ;;  %v495_v21 = vrot.slane %v493_v4, 5  ;;  %v635_v22 = vunpack.c.l.b16 %v400_v16 }
  0x40   : > { %2555 = vmatmul.msk.bf16.gmra.mxu0 %vm682_vm3, %v3191_v9  ;;  %v490_v23 = vor.u32 %v489_v11, %v485_v3  ;;  %v573_v28 = vshll.u32 %v3189_v5, 16  ;;  %v579_v30 = vshll.u32 %v3196_v12, 16  ;;  %v583_v35 = vshrl.u32 %v3196_v12, 16  ;;  %v3277_v5 = vld [vmem:[%s3004_s29 + $0xb4] sm:$0xf] }
  0x41   : > { %v481_v29 = vrot.slane %v480_v20, 4  ;;  %v589_v39 = vshll.u32 %v3199_v15, 16  ;;  %v3210_v40 = vpack.c.b16 %v635_v22, %v634_v17  ;;  %v572_v44 = vrot.slane %v570_v26, 4  ;;  %v3233_v20 = vld [vmem:[%s3004_s29 + $0x54] sm:$0xf]  ;;  %4212 = vst [vmem:[#allocation13_spill] sm:$0xff] %v3277_v5 }
  0x42   : > { %v491_v41 = vrot.slane %v490_v23, 4  ;;  %v575_v45 = vrot.slane %v573_v28, 5  ;;  %v581_v50 = vrot.slane %v579_v30, 5  ;;  %v585_v51 = vrot.slane %v583_v35, 4  ;;  %v3238_v28 = vld [vmem:[%s3004_s29 + $0x58] sm:$0xf] }
  0x43   : > { %4207 = vst [vmem:[#allocation8_spill] sm:$0xff] %v3210_v40  ;;  %v486_v49 = vsel %vm3027_vm2, %v481_v29, %v485_v3  ;;  %2560 = vmatmul.msk.bf16.gmra.mxu1 %vm682_vm3, %v3210_v40  ;;  %v591_v63 = vrot.slane %v589_v39, 5  ;;  %v282_v3 = vshrl.u32 %v3213_v47, 16  ;;  %v285_v4 = vshll.u32 %v3213_v47, 16 }
  0x44   : > { %v496_v56 = vsel %vm3027_vm2, %v491_v41, %v495_v21  ;;  %v642_v59 = vunpack.c.l.b16 %v486_v49  ;;  %v576_v60 = vor.u32 %v575_v45, %v572_v44  ;;  %v586_v2 = vor.u32 %v585_v51, %v581_v50  ;;  %v3243_v41 = vld [vmem:[%s3004_s29 + $0x5c] sm:$0x1] }
  0x45   : > { %v643_v0 = vunpack.c.l.b16 %v496_v56  ;;  %v291_v11 = vshll.u32 %v3218_v52, 16  ;;  %v295_v16 = vshrl.u32 %v3218_v52, 16  ;;  %v301_v17 = vshll.u32 %v3221_v55, 16 }
  0x46   : > { %v577_v10 = vrot.slane %v576_v60, 4  ;;  %v587_v22 = vrot.slane %v586_v2, 4  ;;  %v284_v23 = vrot.slane %v282_v3, 4  ;;  %v287_v26 = vrot.slane %v285_v4, 5 }
  0x47   : > { %v3235_v21 = vpack.c.b16 %v643_v0, %v642_v59  ;;  %v293_v30 = vrot.slane %v291_v11, 5  ;;  %v297_v35 = vrot.slane %v295_v16, 4  ;;  %v303_v39 = vrot.slane %v301_v17, 5  ;;  %v3253_v0 = vld [vmem:[%s3004_s29 + $0x84] sm:$0xf] }
  0x48   : > { %v582_v29 = vsel %vm3027_vm2, %v577_v10, %v581_v50  ;;  %v592_v44 = vsel %vm3027_vm2, %v587_v22, %v591_v63  ;;  %v288_v49 = vor.u32 %v287_v26, %v284_v23  ;;  %v402_v51 = vshrl.u32 %v3233_v20, 16  ;;  %4208 = vst [vmem:[#allocation9_spill] sm:$0xff] %v3253_v0  ;;  %v3260_v22 = vld [vmem:[%s3004_s29 + $0x88] sm:$0xf] }
  0x49   : > { %2564 = vmatmul.msk.bf16.gmra.mxu2 %vm682_vm3, %v3235_v21  ;;  %v650_v45 = vunpack.c.l.b16 %v582_v29  ;;  %v651_v56 = vunpack.c.l.b16 %v592_v44  ;;  %v298_v59 = vor.u32 %v297_v35, %v293_v30  ;;  %v405_v50 = vshll.u32 %v3233_v20, 16  ;;  %4210 = vst [vmem:[#allocation11_spill] sm:$0xff] %v3260_v22  ;;  %v3265_v35 = vld [vmem:[%s3004_s29 + $0x8c] sm:$0x1] }
  0x4a   : > { %v411_v60 = vshll.u32 %v3238_v28, 16  ;;  %v289_v2 = vrot.slane %v288_v49, 4  ;;  %v404_v3 = vrot.slane %v402_v51, 4  ;;  %v415_v4 = vshrl.u32 %v3238_v28, 16  ;;  %4211 = vst [vmem:[#allocation12_spill] sm:$0xff] %v3265_v35 }
  0x4b   : > { %v421_v63 = vshll.u32 %v3243_v41, 16  ;;  %v3257_v10 = vpack.c.b16 %v651_v56, %v650_v45  ;;  %v299_v11 = vrot.slane %v298_v59, 4  ;;  %v407_v16 = vrot.slane %v405_v50, 5 }
  0x4c   : > { %v413_v17 = vrot.slane %v411_v60, 5  ;;  %v294_v23 = vsel %vm3027_vm2, %v289_v2, %v293_v30  ;;  %v417_v26 = vrot.slane %v415_v4, 4  ;;  %v498_v44 = vshrl.u32 %v3253_v0, 16 }
  0x4d   : > { %4209 = vst [vmem:[#allocation10_spill] sm:$0xff] %v3257_v10  ;;  %v423_v29 = vrot.slane %v421_v63, 5  ;;  %2568 = vmatmul.msk.bf16.gmra.mxu3 %vm682_vm3, %v3257_v10  ;;  %v304_v45 = vsel %vm3027_vm2, %v299_v11, %v303_v39  ;;  %v626_v49 = vunpack.c.l.b16 %v294_v23  ;;  %v408_v51 = vor.u32 %v407_v16, %v404_v3  ;;  %v3282_v16 = vld [vmem:[%s3004_s29 + $0xb8] sm:$0xf] }
  0x4e   : > { %v501_v56 = vshll.u32 %v3253_v0, 16  ;;  %v627_v59 = vunpack.c.l.b16 %v304_v45  ;;  %v418_v30 = vor.u32 %v417_v26, %v413_v17  ;;  %v500_v50 = vrot.slane %v498_v44, 4  ;;  %4213 = vst [vmem:[#allocation14_spill] sm:$0xff] %v3282_v16 }
  0x4f   : > { %v507_v60 = vshll.u32 %v3260_v22, 16  ;;  %v409_v2 = vrot.slane %v408_v51, 4  ;;  %v511_v63 = vshrl.u32 %v3260_v22, 16  ;;  %v517_v10 = vshll.u32 %v3265_v35, 16  ;;  %v3287_v51 = vld [vmem:[%s3004_s29 + $0xbc] sm:$0x1] }
  0x50   : > { %v503_v4 = vrot.slane %v501_v56, 5  ;;  %v3279_v39 = vpack.c.b16 %v627_v59, %v626_v49  ;;  %v419_v11 = vrot.slane %v418_v30, 4  ;;  %4214 = vst [vmem:[#allocation15_spill] sm:$0xff] %v3287_v51  ;;  %v2914_v56 = vld [vmem:[%s4156_s1 + $0x68] sm:$0xff]  ;;  %v594_v30 = vshrl.u32 %v3277_v5, 16 }
  0x51   : > { %v509_v3 = vrot.slane %v507_v60, 5  ;;  %v414_v23 = vsel %vm3027_vm2, %v409_v2, %v413_v17  ;;  %v513_v44 = vrot.slane %v511_v63, 4  ;;  %v519_v45 = vrot.slane %v517_v10, 5  ;;  %1911 = vmatpush.bf16.msra.mxu2 %v2914_v56 }
  0x52   : > { %v504_v26 = vor.u32 %v503_v4, %v500_v50  ;;  %2556 = vmatmul.msk.bf16.gmra.mxu0 %vm682_vm3, %v3279_v39  ;;  %v424_v49 = vsel %vm3027_vm2, %v419_v11, %v423_v29  ;;  %v636_v59 = vunpack.c.l.b16 %v414_v23  ;;  %v597_v17 = vshll.u32 %v3277_v5, 16  ;;  %v3302_v29 = vld [vmem:[%s3004_s29 + $0x24] sm:$0xf] }
  0x53   : > { %v637_v10 = vunpack.c.l.b16 %v424_v49  ;;  %v514_v60 = vor.u32 %v513_v44, %v509_v3  ;;  %v603_v2 = vshll.u32 %v3282_v16, 16  ;;  %v596_v4 = vrot.slane %v594_v30, 4  ;;  %v3312_v44 = vld [vmem:[%s3004_s29 + $0x2c] sm:$0x1] }
  0x54   : > { %v505_v50 = vrot.slane %v504_v26, 4  ;;  %v599_v63 = vrot.slane %v597_v17, 5  ;;  %v607_v15 = vshrl.u32 %v3282_v16, 16  ;;  %v613_v12 = vshll.u32 %v3287_v51, 16  ;;  %v3309_v26 = vld [vmem:[%s3004_s29 + $0x28] sm:$0xf] }
  0x55   : > { %v3304_v11 = vpack.c.b16 %v637_v10, %v636_v59  ;;  %v515_v5 = vrot.slane %v514_v60, 4  ;;  %v605_v49 = vrot.slane %v603_v2, 5  ;;  %v2916_v51 = vld [vmem:[%s4156_s1 + $0x78] sm:$0xff]  ;;  %v309_v60 = vshll.u32 %v3302_v29, 16 }
  0x56   : > { %v510_v23 = vsel %vm3027_vm2, %v505_v50, %v509_v3  ;;  %v600_v30 = vor.u32 %v599_v63, %v596_v4  ;;  %v609_v17 = vrot.slane %v607_v15, 4  ;;  %v2912_v59 = vld [vmem:[%s4156_s1 + $0x58] sm:$0xff]  ;;  %v2918_v3 = vld [vmem:[%s4156_s1 + $0x88] sm:$0xff]  ;;  %v615_v50 = vrot.slane %v613_v12, 5  ;;  %2079 = vmatpush.bf16.msra.mxu3 %v2916_v51 }
  0x57   : > { %4215 = vst [vmem:[#allocation16_spill] sm:$0xff] %v3304_v11  ;;  %v644_v56 = vunpack.c.l.b16 %v510_v23  ;;  %2561 = vmatmul.msk.bf16.gmra.mxu1 %vm682_vm3, %v3304_v11  ;;  %v520_v10 = vsel %vm3027_vm2, %v515_v5, %v519_v45  ;;  %v306_v15 = vshrl.u32 %v3302_v29, 16  ;;  %v315_v23 = vshll.u32 %v3309_v26, 16  ;;  %2231 = vmatpush.bf16.msra.mxu0 %v2918_v3 }
  0x58   : > { %v645_v2 = vunpack.c.l.b16 %v520_v10  ;;  %v601_v4 = vrot.slane %v600_v30, 4  ;;  %v610_v63 = vor.u32 %v609_v17, %v605_v49  ;;  %1765 = vmatpush.bf16.msra.mxu1 %v2912_v59  ;;  %v311_v37 = vrot.slane %v309_v60, 5 }
  0x59   : > { %v308_v16 = vrot.slane %v306_v15, 4  ;;  %v319_v34 = vshrl.u32 %v3309_v26, 16  ;;  %v325_v0 = vshll.u32 %v3312_v44, 16  ;;  %v317_v10 = vrot.slane %v315_v23, 5 }
  0x5a   : > { %v3332_v5 = vpack.c.b16 %v645_v2, %v644_v56  ;;  %v606_v12 = vsel %vm3027_vm2, %v601_v4, %v605_v49  ;;  %v611_v45 = vrot.slane %v610_v63, 4  ;;  %v2658_v56 = vrot.slane %v3037_v57, 9 }
  0x5b   : > { %v652_v30 = vunpack.c.l.b16 %v606_v12  ;;  %v312_v17 = vor.u32 %v311_v37, %v308_v16  ;;  %v321_v35 = vrot.slane %v319_v34, 4  ;;  %v327_v22 = vrot.slane %v325_v0, 5 }
  0x5c   : > { %4216 = vst [vmem:[#allocation17_spill] sm:$0xff] %v3332_v5  ;;  %2565 = vmatmul.msk.bf16.gmra.mxu2 %vm682_vm3, %v3332_v5  ;;  %v616_v51 = vsel %vm3027_vm2, %v611_v45, %v615_v50  ;;  %v1070_v34 = vrot.slane %v3044_v61, 5  ;;  %v1073_v37 = vrot.slane %v3047_v62, 5  ;;  %v2659_v0 = vrot.slane %v3111_v25, 9  ;;  %v2883_v45 = vld [vmem:[%s3004_s29] sm:$0xff] }
  0x5d   : > { %v653_v59 = vunpack.c.l.b16 %v616_v51  ;;  %v313_v3 = vrot.slane %v312_v17, 4  ;;  %v322_v15 = vor.u32 %v321_v35, %v317_v10  ;;  %v1077_v16 = vrot.slane %v3121_v38, 5 }
  0x5e   : > { %v1080_v50 = vrot.slane %v3124_v43, 5  ;;  %v1071_v2 = vsel %vm3341_vm6, %v2658_v56, %v1070_v34  ;;  %v1072_v61 = vrot.slane %v1070_v34, 4  ;;  %v2660_v34 = vrot.slane %v3213_v47, 9 }
  0x5f   : > { %v3350_v60 = vpack.c.b16 %v653_v59, %v652_v30  ;;  %v318_v57 = vsel %vm3027_vm2, %v313_v3, %v317_v10  ;;  %v323_v35 = vrot.slane %v322_v15, 4  ;;  %v1078_v62 = vsel %vm3341_vm6, %v2659_v0, %v1077_v16  ;;  %v2884_v59 = vld [vmem:[%s3004_s29 + $0xc] sm:$0xff]  ;;  %v3384_v15 = vld [vmem:[%s3004_s29 + $0x18] sm:$0xff] }
  0x60   : > { %v628_v4 = vunpack.c.l.b16 %v318_v57  ;;  %v1185_v38 = vunpack.c.l.b16 %v1071_v2  ;;  %v1079_v43 = vrot.slane %v1077_v16, 4  ;;  %v1074_v23 = vsel %vm3341_vm6, %v1072_v61, %v1073_v37  ;;  %v3404_v57 = vld [vmem:[%s3004_s29 + $0x24] sm:$0xff] }
  0x61   : > { %2569 = vmatmul.msk.bf16.gmra.mxu3 %vm682_vm3, %v3350_v60  ;;  %v328_v25 = vsel %vm3027_vm2, %v323_v35, %v327_v22  ;;  %v1187_v12 = vunpack.c.l.b16 %v1078_v62  ;;  %v1186_v10 = vunpack.c.l.b16 %v1074_v23  ;;  %v1084_v3 = vrot.slane %v3218_v52, 5 }
  0x62   : > { %v629_v63 = vunpack.c.l.b16 %v328_v25  ;;  %v1081_v30 = vsel %vm3341_vm6, %v1079_v43, %v1080_v50  ;;  %v1087_v0 = vrot.slane %v3221_v55, 5  ;;  %v1091_v55 = vrot.slane %v3309_v26, 5  ;;  %v3426_v43 = vld [vmem:[%s3004_s29 + $0x30] sm:$0xff] }
  0x63   : > { %v1188_v51 = vunpack.c.l.b16 %v1081_v30  ;;  %v1217_v56 = vpack.c.b16 %v1186_v10, %v1185_v38  ;;  %v1086_v37 = vrot.slane %v1084_v3, 4  ;;  %v2661_v35 = vrot.slane %v3302_v29, 9 }
  0x64   : > { %v3367_v17 = vpack.c.b16 %v629_v63, %v628_v4  ;;  %v1093_v2 = vrot.slane %v1091_v55, 4  ;;  %v1094_v4 = vrot.slane %v3312_v44, 5  ;;  %v1098_v44 = vrot.slane %v3010_v7, 5 }
  0x65   : > { %v3371_v22 = vpack.c.b16 %v1188_v51, %v1187_v12  ;;  %v1088_v52 = vsel %vm3341_vm6, %v1086_v37, %v1087_v0  ;;  %v1092_v61 = vsel %vm3341_vm6, %v2661_v35, %v1091_v55  ;;  %v2662_v63 = vrot.slane %v3007_v6, 9 }
  0x66   : > { %2557 = vmatmul.msk.bf16.gmra.mxu0 %vm682_vm3, %v3367_v17  ;;  %v1190_v50 = vunpack.c.l.b16 %v1088_v52  ;;  %v1095_v26 = vsel %vm3341_vm6, %v1093_v2, %v1094_v4  ;;  %v1191_v62 = vunpack.c.l.b16 %v1092_v61  ;;  %v1100_v23 = vrot.slane %v1098_v44, 4 }
  0x67   : > { %2642 = vmatmul.msk.bf16.vlgmr.msrb.gmra.mxu1 %vm682_vm3, %v2883_v45  ;;  %v1192_v25 = vunpack.c.l.b16 %v1095_v26  ;;  %v1101_v12 = vrot.slane %v3013_v8, 5  ;;  %v1099_v45 = vsel %vm3341_vm6, %v2662_v63, %v1098_v44  ;;  %v2663_v0 = vrot.slane %v3063_v18, 9 }
  0x68   : > { %v1193_v30 = vunpack.c.l.b16 %v1099_v45  ;;  %v1108_v52 = vrot.slane %v3071_v24, 5  ;;  %v1112_v26 = vrot.slane %v3137_v54, 5  ;;  %v2664_v63 = vrot.slane %v3134_v53, 9 }
  0x69   : > { %v3418_v29 = vpack.c.b16 %v1192_v25, %v1191_v62  ;;  %v1102_v7 = vsel %vm3341_vm6, %v1100_v23, %v1101_v12  ;;  %v3488_v25 = vld [vmem:[%s3004_s29 + $0x48] sm:$0xff]  ;;  %v1115_v12 = vrot.slane %v3155_v13, 5 }
  0x6a   : > { %v1194_v51 = vunpack.c.l.b16 %v1102_v7  ;;  %v1114_v23 = vrot.slane %v1112_v26, 4  ;;  %v1113_v7 = vsel %vm3341_vm6, %v2664_v63, %v1112_v26  ;;  %v1122_v26 = vrot.slane %v3243_v41, 5 }
  0x6c   : > { %2686 = vmatmul.msk.bf16.vlgmr.msrb.gmra.mxu2 %vm682_vm3, %v1217_v56  ;;  %v3446_v8 = vpack.c.b16 %v1194_v51, %v1193_v30  ;;  %v1116_v30 = vsel %vm3341_vm6, %v1114_v23, %v1115_v12  ;;  %v1197_v51 = vunpack.c.l.b16 %v1113_v7 }
  0x71   : > { %2718 = vmatmul.msk.bf16.vlgmr.msrb.gmra.mxu3 %vm682_vm3, %v2884_v59 }
  0x76   : > { %2746 = vmatmul.msk.bf16.vlgmr.msrb.gmra.mxu0 %vm682_vm3, %v3191_v9  ;;  %v1085_v9 = vsel %vm3341_vm6, %v2660_v34, %v1084_v3  ;;  %v1105_v3 = vrot.slane %v3066_v19, 5  ;;  %v3454_v34 = vld [vmem:[%s3004_s29 + $0x3c] sm:$0xff] }
  0x77   : > { %2643 = vmatmul.msk.bf16.gmra.mxu1 %vm682_vm3, %v2884_v59  ;;  %v1189_v16 = vunpack.c.l.b16 %v1085_v9 }
  0x78   : > { %v1107_v9 = vrot.slane %v1105_v3, 4  ;;  %v1106_v19 = vsel %vm3341_vm6, %v2663_v0, %v1105_v3  ;;  %v1198_v3 = vunpack.c.l.b16 %v1116_v30 }
  0x79   : > { %v3398_v47 = vpack.c.b16 %v1190_v50, %v1189_v16  ;;  %v1195_v18 = vunpack.c.l.b16 %v1106_v19 }
  0x7a   : > { %v1109_v50 = vsel %vm3341_vm6, %v1107_v9, %v1108_v52  ;;  %v3512_v0 = vpack.c.b16 %v1198_v3, %v1197_v51  ;;  %v1119_v9 = vrot.slane %v3238_v28, 5  ;;  %v2915_v3 = vld [vmem:[%s4156_s1 + $0x70] sm:$0xff] }
  0x7b   : > { %v1196_v2 = vunpack.c.l.b16 %v1109_v50  ;;  %v3522_v50 = vld [vmem:[%s3004_s29 + $0x54] sm:$0xff]  ;;  %2080 = vmatpush.bf16.msra.mxu3 %v2915_v3  ;;  %v2937_v3 = vld [vmem:[%s3004_s29 + $0x60] sm:$0xf] }
  0x7c   : > { %2687 = vmatmul.msk.bf16.gmra.mxu2 %vm682_vm3, %v3371_v22  ;;  %4223 = vst [vmem:[#allocation22_spill] sm:$0xff] %v3512_v0 }
  0x7d   : > { %v3478_v4 = vpack.c.b16 %v1196_v2, %v1195_v18  ;;  %4224 = vst [vmem:[#allocation23_spill] sm:$0xff] %v3522_v50  ;;  %v2665_v18 = vrot.slane %v3233_v20, 9  ;;  %v1121_v2 = vrot.slane %v1119_v9, 4  ;;  %v2913_v20 = vld [vmem:[%s4156_s1 + $0x60] sm:$0xff] }
  0x7e   : > { %1912 = vmatpush.bf16.msra.mxu2 %v2913_v20  ;;  %v2917_v20 = vld [vmem:[%s4156_s1 + $0x80] sm:$0xff] }
  0x7f   : > { %v1120_v28 = vsel %vm3341_vm6, %v2665_v18, %v1119_v9  ;;  %v1123_v12 = vsel %vm3341_vm6, %v1121_v2, %v1122_v26  ;;  %v2911_v9 = vld [vmem:[%s4156_s1 + $0x50] sm:$0xff]  ;;  %v2935_v26 = vld [vmem:[%s3004_s29 + $0x64] sm:$0xf]  ;;  %2232 = vmatpush.bf16.msra.mxu0 %v2917_v20 }
  0x80   : > { %v1199_v41 = vunpack.c.l.b16 %v1120_v28  ;;  %v1200_v30 = vunpack.c.l.b16 %v1123_v12  ;;  %1766 = vmatpush.bf16.msra.mxu1 %v2911_v9  ;;  %v1126_v28 = vrot.slane %v2935_v26, 5  ;;  %v2666_v9 = vrot.slane %v2937_v3, 9 }
  0x81   : > { %2719 = vmatmul.msk.bf16.gmra.mxu3 %vm682_vm3, %v3384_v15 }
  0x82   : > { %v3553_v18 = vpack.c.b16 %v1200_v30, %v1199_v41  ;;  %v3569_v30 = vld [vmem:[%s3004_s29 + $0x60] sm:$0xff] }
  0x83   : > { %4228 = vst [vmem:[#allocation27_spill] sm:$0xff] %v3569_v30 }
  0x84   : > { %4226 = vst [vmem:[#allocation25_spill] sm:$0xff] %v3553_v18 }
  0x86   : > { %2747 = vmatmul.msk.bf16.gmra.mxu0 %vm682_vm3, %v3279_v39 }
  0x87   : > { %2644 = vmatmul.msk.bf16.gmra.mxu1 %vm682_vm3, %v3384_v15 }
  0x8c   : > { %2688 = vmatmul.msk.bf16.gmra.mxu2 %vm682_vm3, %v3398_v47 }
  0x91   : > { %2720 = vmatmul.msk.bf16.gmra.mxu3 %vm682_vm3, %v3404_v57 }
  0x96   : > { %2748 = vmatmul.msk.bf16.gmra.mxu0 %vm682_vm3, %v3367_v17 }
  0x97   : > { %2645 = vmatmul.msk.bf16.gmra.mxu1 %vm682_vm3, %v3404_v57 }
  0x9c   : > { %v3421_v38 = vpop.f32.mrf.mxu1  ;;  %2689 = vmatmul.msk.bf16.gmra.mxu2 %vm682_vm3, %v3418_v29 }
  0xa1   : > { %2721 = vmatmul.msk.bf16.gmra.mxu3 %vm682_vm3, %v3426_v43 }
  0xa4   : > { %v3436_v10 = vpop.f32.mrf.mxu1 }
  0xa6   : > { %v3438_v56 = vpop.f32.mrf.mxu2  ;;  %2749 = vmatmul.msk.bf16.gmra.mxu0 %vm682_vm3, %v3039_v58 }
  0xa7   : > { %2646 = vmatmul.msk.bf16.gmra.mxu1 %vm682_vm3, %v3426_v43 }
  0xa9   : > { %v3444_v6 = vpop.f32.mrf.mxu0 }
  0xaa   : > { %v3448_v59 = vpop.f32.mrf.mxu3 }
  0xab   : > { %4219 = vst [vmem:[#allocation18_spill] sm:$0xff] %v3448_v59 }
  0xac   : > { %2690 = vmatmul.msk.bf16.gmra.mxu2 %vm682_vm3, %v3446_v8 }
  0xae   : > { %v3456_v37 = vpop.f32.mrf.mxu1  ;;  %v3460_v16 = vpop.f32.mrf.mxu2 }
  0xb1   : > { %2722 = vmatmul.msk.bf16.gmra.mxu3 %vm682_vm3, %v3454_v34  ;;  %v3468_v55 = vpop.f32.mrf.mxu0 }
  0xb2   : > { %v3470_v35 = vpop.f32.mrf.mxu3 }
  0xb3   : > { %4220 = vst [vmem:[#allocation19_spill] sm:$0xff] %v3470_v35 }
  0xb6   : > { %2750 = vmatmul.msk.bf16.gmra.mxu0 %vm682_vm3, %v3116_v31  ;;  %v3474_v24 = vpop.f32.mrf.mxu1 }
  0xb7   : > { %2647 = vmatmul.msk.bf16.gmra.mxu1 %vm682_vm3, %v3454_v34 }
  0xb9   : > { %v3480_v61 = vpop.f32.mrf.mxu2 }
  0xbc   : > { %2691 = vmatmul.msk.bf16.gmra.mxu2 %vm682_vm3, %v3478_v4 }
  0xbd   : > { %v3483_v62 = vpop.f32.mrf.mxu0 }
  0xbe   : > { %v3490_v44 = vpop.f32.mrf.mxu3 }
  0xbf   : > { %4221 = vst [vmem:[#allocation20_spill] sm:$0xff] %v3490_v44 }
  0xc0   : > { %v3494_v45 = vpop.f32.mrf.mxu1 }
  0xc1   : > { %2723 = vmatmul.msk.bf16.gmra.mxu3 %vm682_vm3, %v3488_v25  ;;  %v3498_v54 = vpop.f32.mrf.mxu2 }
  0xc5   : > { %v3504_v53 = vpop.f32.mrf.mxu0 }
  0xc6   : > { %2751 = vmatmul.msk.bf16.gmra.mxu0 %vm682_vm3, %v3210_v40  ;;  %v3508_v13 = vpop.f32.mrf.mxu3 }
  0xc7   : > { %4222 = vst [vmem:[#allocation21_spill] sm:$0xff] %v3508_v13  ;;  %2648 = vmatmul.msk.bf16.gmra.mxu1 %vm682_vm3, %v3488_v25  ;;  %v2936_v13 = vld [vmem:[%s3004_s29 + $0x68] sm:$0x1] }
  0xc8   : > { %v3515_v52 = vpop.f32.mrf.mxu1  ;;  %v1129_v41 = vrot.slane %v2936_v13, 5 }
  0xcc   : > { %v3517_v19 = vpop.f32.mrf.mxu2  ;;  %2692 = vmatmul.msk.bf16.gmra.mxu2 %vm682_vm3, %v3512_v0 }
  0xcf   : > { %v3526_v63 = vpop.f32.mrf.mxu0 }
  0xd0   : > { %v3528_v23 = vpop.f32.mrf.mxu3 }
  0xd1   : > { %4225 = vst [vmem:[#allocation24_spill] sm:$0xff] %v3528_v23  ;;  %2724 = vmatmul.msk.bf16.gmra.mxu3 %vm682_vm3, %v3522_v50 }
  0xd4   : > { %v3539_v7 = vpop.f32.mrf.mxu1  ;;  %v3541_v51 = vpop.f32.mrf.mxu2 }
  0xd6   : > { %2752 = vmatmul.msk.bf16.gmra.mxu0 %vm682_vm3, %v3304_v11  ;;  %v1128_v11 = vrot.slane %v1126_v28, 4 }
  0xd7   : > { %2649 = vmatmul.msk.bf16.gmra.mxu1 %vm682_vm3, %v3522_v50  ;;  %v3555_v2 = vpop.f32.mrf.mxu0 }
  0xd8   : > { %v3558_v12 = vpop.f32.mrf.mxu3 }
  0xd9   : > { %4227 = vst [vmem:[#allocation26_spill] sm:$0xff] %v3558_v12  ;;  %v1127_v12 = vsel %vm3341_vm6, %v2666_v9, %v1126_v28 }
  0xda   : > { %v1201_v3 = vunpack.c.l.b16 %v1127_v12 }
  0xdc   : > { %2693 = vmatmul.msk.bf16.gmra.mxu2 %vm682_vm3, %v3553_v18  ;;  %v3565_v23 = vpop.f32.mrf.mxu1  ;;  %v1130_v18 = vsel %vm3341_vm6, %v1128_v11, %v1129_v41  ;;  %v1133_v11 = vrot.slane %v3086_v42, 5 }
  0xdd   : > { %v1202_v35 = vunpack.c.l.b16 %v1130_v18  ;;  %v3602_v18 = vld [vmem:[%s3004_s29 + $0x6c] sm:$0xff] }
  0xdf   : > { %v3572_v26 = vpop.f32.mrf.mxu2  ;;  %v3591_v28 = vpack.c.b16 %v1202_v35, %v1201_v3  ;;  %v1135_v35 = vrot.slane %v1133_v11, 4 }
  0xe1   : > { %2725 = vmatmul.msk.bf16.gmra.mxu3 %vm682_vm3, %v3569_v30  ;;  %4230 = vst [vmem:[#allocation29_spill] sm:$0xff] %v3591_v28 }
  0xe3   : > { %v3580_v44 = vpop.f32.mrf.mxu0 }
  0xe4   : > { %v3582_v13 = vpop.f32.mrf.mxu3  ;;  %v969_v50 = vpop.f32.mrf.mxu1 }
  0xe5   : > { %4229 = vst [vmem:[#allocation28_spill] sm:$0xff] %v3582_v13  ;;  %v970_v20 = vadd.f32 %v969_v50, %v3444_v6  ;;  %v1136_v50 = vrot.slane %v3093_v46, 5  ;;  %v2667_v13 = vrot.slane %v3079_v33, 9 }
  0xe6   : > { %2753 = vmatmul.msk.bf16.gmra.mxu0 %vm682_vm3, %v3058_v14 }
  0xe7   : > { %v3587_v0 = vpop.f32.mrf.mxu2  ;;  %2650 = vmatmul.msk.bf16.gmra.mxu1 %vm682_vm3, %v3569_v30  ;;  %v1134_v42 = vsel %vm3341_vm6, %v2667_v13, %v1133_v11 }
  0xe8   : > { %v1203_v40 = vunpack.c.l.b16 %v1134_v42 }
  0xeb   : > { %v3594_v41 = vpop.f32.mrf.mxu0 }
  0xec   : > { %v3596_v9 = vpop.f32.mrf.mxu3  ;;  %2694 = vmatmul.msk.bf16.gmra.mxu2 %vm682_vm3, %v3591_v28  ;;  %v971_v6 = vpop.f32.mrf.mxu1 }
  0xed   : > { %4231 = vst [vmem:[#allocation30_spill] sm:$0xff] %v3596_v9  ;;  %v972_v12 = vadd.f32 %v971_v6, %v3468_v55  ;;  %v1137_v9 = vsel %vm3341_vm6, %v1135_v35, %v1136_v50  ;;  %v1140_v50 = vrot.slane %v3170_v36, 5 }
  0xee   : > { %v1204_v59 = vunpack.c.l.b16 %v1137_v9  ;;  %v1143_v9 = vrot.slane %v3177_v48, 5 }
  0xef   : > { %v1302_v3 = vpop.f32.mrf.mxu2 }
  0xf0   : > { %v1382_v14 = vadd.f32 %v1302_v3, %v970_v20  ;;  %v3619_v6 = vpack.c.b16 %v1204_v59, %v1203_v40  ;;  %v3626_v3 = vld [vmem:[%s3004_s29 + $0x78] sm:$0xff] }
  0xf1   : > { %2726 = vmatmul.msk.bf16.gmra.mxu3 %vm682_vm3, %v3602_v18 }
  0xf3   : > { %v1616_v28 = vpop.f32.mrf.mxu0 }
  0xf4   : > { %v1448_v46 = vpop.f32.mrf.mxu3  ;;  %v974_v30 = vpop.f32.mrf.mxu1 }
  0xf5   : > { %v1528_v55 = vadd.f32 %v1448_v46, %v1382_v14  ;;  %v975_v33 = vadd.f32 %v974_v30, %v3483_v62 }
  0xf6   : > { %2754 = vmatmul.msk.bf16.gmra.mxu0 %vm682_vm3, %v3147_v1 }
  0xf7   : > { %v1304_v20 = vpop.f32.mrf.mxu2  ;;  %2651 = vmatmul.msk.bf16.gmra.mxu1 %vm682_vm3, %v3602_v18  ;;  %v3617_v13 = vadd.f32 %v1616_v28, %v1528_v55  ;;  %v2668_v28 = vrot.slane %v3166_v27, 9 }
  0xf8   : > { %v1383_v11 = vadd.f32 %v1304_v20, %v972_v12  ;;  %v1142_v12 = vrot.slane %v1140_v50, 4 }
  0xf9   : > { %v1141_v48 = vsel %vm3341_vm6, %v2668_v28, %v1140_v50 }
  0xfa   : > { %v1144_v46 = vsel %vm3341_vm6, %v1142_v12, %v1143_v9 }
  0xfb   : > { %v1618_v35 = vpop.f32.mrf.mxu0 }
  0xfc   : > { %v1450_v14 = vpop.f32.mrf.mxu3  ;;  %2695 = vmatmul.msk.bf16.gmra.mxu2 %vm682_vm3, %v3619_v6  ;;  %v976_v62 = vpop.f32.mrf.mxu1 }
  0xfd   : > { %v1529_v30 = vadd.f32 %v1450_v14, %v1383_v11  ;;  %v977_v42 = vadd.f32 %v976_v62, %v3504_v53  ;;  %v1205_v53 = vunpack.c.l.b16 %v1141_v48  ;;  %v1206_v14 = vunpack.c.l.b16 %v1144_v46 }
  0xff   : > { %v1307_v40 = vpop.f32.mrf.mxu2  ;;  %v3630_v59 = vadd.f32 %v1618_v35, %v1529_v30  ;;  %v3645_v9 = vpack.c.b16 %v1206_v14, %v1205_v53  ;;  %v4233_v30 = vld [vmem:[#allocation11_spill] sm:$0xff] }
 0x100   : > { %v1384_v36 = vadd.f32 %v1307_v40, %v975_v33  ;;  %v1147_v28 = vrot.slane %v4233_v30, 5  ;;  %v4234_v40 = vld [vmem:[#allocation12_spill] sm:$0xff] }
 0x101   : > { %2727 = vmatmul.msk.bf16.gmra.mxu3 %vm682_vm3, %v3626_v3  ;;  %v1150_v48 = vrot.slane %v4234_v40, 5 }
 0x103   : > { %v1621_v55 = vpop.f32.mrf.mxu0 }
 0x104   : > { %v1453_v20 = vpop.f32.mrf.mxu3  ;;  %v979_v11 = vpop.f32.mrf.mxu1 }
 0x105   : > { %v1530_v27 = vadd.f32 %v1453_v20, %v1384_v36  ;;  %v980_v35 = vadd.f32 %v979_v11, %v3526_v63  ;;  %v3652_v20 = vld [vmem:[%s3004_s29 + $0x84] sm:$0xff] }
 0x106   : > { %2755 = vmatmul.msk.bf16.gmra.mxu0 %vm682_vm3, %v3235_v21 }
 0x107   : > { %v1309_v33 = vpop.f32.mrf.mxu2  ;;  %2652 = vmatmul.msk.bf16.gmra.mxu1 %vm682_vm3, %v3626_v3  ;;  %v3643_v50 = vadd.f32 %v1621_v55, %v1530_v27  ;;  %v4235_v55 = vld [vmem:[#allocation9_spill] sm:$0xff] }
 0x108   : > { %v1385_v62 = vadd.f32 %v1309_v33, %v977_v42  ;;  %v2669_v27 = vrot.slane %v4235_v55, 9  ;;  %v1149_v42 = vrot.slane %v1147_v28, 4 }
 0x109   : > { %4232 = vst [vmem:[#allocation31_spill] sm:$0xff] %v3643_v50 }
 0x10a   : > { %v1148_v30 = vsel %vm3341_vm6, %v2669_v27, %v1147_v28  ;;  %v2938_v27 = vld [vmem:[%s3004_s29 + $0x94] sm:$0xf] }
 0x10b   : > { %v1623_v12 = vpop.f32.mrf.mxu0 }
 0x10c   : > { %v1455_v36 = vpop.f32.mrf.mxu3  ;;  %2696 = vmatmul.msk.bf16.gmra.mxu2 %vm682_vm3, %v3645_v9  ;;  %v981_v63 = vpop.f32.mrf.mxu1 }
 0x10d   : > { %v1531_v46 = vadd.f32 %v1455_v36, %v1385_v62  ;;  %v982_v11 = vadd.f32 %v981_v63, %v3555_v2  ;;  %v1151_v62 = vsel %vm3341_vm6, %v1149_v42, %v1150_v48  ;;  %v1207_v63 = vunpack.c.l.b16 %v1148_v30 }
 0x10e   : > { %v1208_v55 = vunpack.c.l.b16 %v1151_v62  ;;  %v1154_v42 = vrot.slane %v2938_v27, 5 }
 0x10f   : > { %v1312_v53 = vpop.f32.mrf.mxu2  ;;  %v3656_v14 = vadd.f32 %v1623_v12, %v1531_v46 }
 0x110   : > { %v1386_v33 = vadd.f32 %v1312_v53, %v980_v35  ;;  %v3671_v46 = vpack.c.b16 %v1208_v55, %v1207_v63 }
 0x111   : > { %4236 = vst [vmem:[#allocation11_spill] sm:$0xff] %v3656_v14  ;;  %2728 = vmatmul.msk.bf16.gmra.mxu3 %vm682_vm3, %v3652_v20 }
 0x112   : > { %4238 = vst [vmem:[#allocation9_spill] sm:$0xff] %v3671_v46 }
 0x113   : > { %v1626_v40 = vpop.f32.mrf.mxu0 }
 0x114   : > { %v1458_v2 = vpop.f32.mrf.mxu3  ;;  %v984_v36 = vpop.f32.mrf.mxu1 }
 0x115   : > { %v1532_v50 = vadd.f32 %v1458_v2, %v1386_v33  ;;  %v985_v12 = vadd.f32 %v984_v36, %v3580_v44  ;;  %v2939_v33 = vld [vmem:[%s3004_s29 + $0x98] sm:$0x1]  ;;  %v3678_v36 = vld [vmem:[%s3004_s29 + $0x90] sm:$0xff] }
 0x116   : > { %2756 = vmatmul.msk.bf16.gmra.mxu0 %vm682_vm3, %v3332_v5  ;;  %v1157_v30 = vrot.slane %v2939_v33, 5  ;;  %4239 = vst [vmem:[#allocation32_spill] sm:$0xff] %v3678_v36 }
 0x117   : > { %v1314_v35 = vpop.f32.mrf.mxu2  ;;  %2653 = vmatmul.msk.bf16.gmra.mxu1 %vm682_vm3, %v3652_v20  ;;  %v3669_v28 = vadd.f32 %v1626_v40, %v1532_v50  ;;  %v2940_v50 = vld [vmem:[%s3004_s29 + $0x90] sm:$0xf] }
 0x118   : > { %v1387_v48 = vadd.f32 %v1314_v35, %v982_v11  ;;  %v2670_v40 = vrot.slane %v2940_v50, 9  ;;  %v1156_v11 = vrot.slane %v1154_v42, 4 }
 0x119   : > { %4237 = vst [vmem:[#allocation12_spill] sm:$0xff] %v3669_v28 }
 0x11a   : > { %v1155_v27 = vsel %vm3341_vm6, %v2670_v40, %v1154_v42  ;;  %v2941_v40 = vld [vmem:[%s3004_s29 + $0xa0] sm:$0xf] }
 0x11b   : > { %v1628_v53 = vpop.f32.mrf.mxu0 }
 0x11c   : > { %v1460_v44 = vpop.f32.mrf.mxu3  ;;  %2697 = vmatmul.msk.bf16.gmra.mxu2 %vm682_vm3, %v3671_v46  ;;  %v986_v62 = vpop.f32.mrf.mxu1  ;;  %v2943_v46 = vld [vmem:[%s3004_s29 + $0x9c] sm:$0xf] }
 0x11d   : > { %v1533_v2 = vadd.f32 %v1460_v44, %v1387_v48  ;;  %v987_v14 = vadd.f32 %v986_v62, %v3594_v41  ;;  %v1158_v48 = vsel %vm3341_vm6, %v1156_v11, %v1157_v30  ;;  %v1209_v62 = vunpack.c.l.b16 %v1155_v27 }
 0x11e   : > { %v1210_v50 = vunpack.c.l.b16 %v1158_v48  ;;  %v1161_v11 = vrot.slane %v2941_v40, 5  ;;  %v2942_v48 = vld [vmem:[%s3004_s29 + $0xa4] sm:$0x1] }
 0x11f   : > { %v1317_v63 = vpop.f32.mrf.mxu2  ;;  %v3682_v55 = vadd.f32 %v1628_v53, %v1533_v2  ;;  %v4241_v53 = vld [vmem:[#allocation3_spill] sm:$0xff] }
 0x120   : > { %v1388_v35 = vadd.f32 %v1317_v63, %v985_v12  ;;  %v3696_v30 = vpack.c.b16 %v1210_v50, %v1209_v62 }
 0x121   : > { %4240 = vst [vmem:[#allocation33_spill] sm:$0xff] %v3682_v55  ;;  %2729 = vmatmul.msk.bf16.gmra.mxu3 %vm682_vm3, %v3678_v36 }
 0x122   : > { %4243 = vst [vmem:[#allocation35_spill] sm:$0xff] %v3696_v30 }
 0x123   : > { %v1631_v33 = vpop.f32.mrf.mxu0 }
 0x124   : > { %v1463_v44 = vpop.f32.mrf.mxu3  ;;  %v989_v41 = vpop.f32.mrf.mxu1 }
 0x125   : > { %v1534_v28 = vadd.f32 %v1463_v44, %v1388_v35  ;;  %v1164_v44 = vrot.slane %v2942_v48, 5 }
 0x126   : > { %2757 = vmatmul.msk.bf16.gmra.mxu0 %vm682_vm3, %v4241_v53  ;;  %v3703_v53 = vld [vmem:[%s3004_s29 + $0x9c] sm:$0xff] }
 0x127   : > { %v1319_v12 = vpop.f32.mrf.mxu2  ;;  %2654 = vmatmul.msk.bf16.gmra.mxu1 %vm682_vm3, %v3678_v36  ;;  %v3694_v42 = vadd.f32 %v1631_v33, %v1534_v28  ;;  %4244 = vst [vmem:[#allocation36_spill] sm:$0xff] %v3703_v53  ;;  %v2671_v36 = vrot.slane %v2943_v46, 9  ;;  %v1163_v28 = vrot.slane %v1161_v11, 4 }
 0x128   : > { %v1389_v2 = vadd.f32 %v1319_v12, %v987_v14  ;;  %v990_v14 = vadd.f32 %v989_v41, %v3421_v38  ;;  %v4246_v41 = vld [vmem:[#allocation4_spill] sm:$0xff] }
 0x129   : > { %4242 = vst [vmem:[#allocation34_spill] sm:$0xff] %v3694_v42  ;;  %v1162_v12 = vsel %vm3341_vm6, %v2671_v36, %v1161_v11 }
 0x12a   : > { %v1211_v46 = vunpack.c.l.b16 %v1162_v12 }
 0x12b   : > { %v1633_v63 = vpop.f32.mrf.mxu0 }
 0x12c   : > { %v1465_v27 = vpop.f32.mrf.mxu3  ;;  %2698 = vmatmul.msk.bf16.gmra.mxu2 %vm682_vm3, %v3696_v30  ;;  %v991_v35 = vpop.f32.mrf.mxu1 }
 0x12d   : > { %v1535_v55 = vadd.f32 %v1465_v27, %v1389_v2  ;;  %v1165_v2 = vsel %vm3341_vm6, %v1163_v28, %v1164_v44  ;;  %v4249_v28 = vld [vmem:[#allocation6_spill] sm:$0xff] }
 0x12e   : > { %v1212_v42 = vunpack.c.l.b16 %v1165_v2  ;;  %v4250_v2 = vld [vmem:[#allocation7_spill] sm:$0xff] }
 0x12f   : > { %v1322_v33 = vpop.f32.mrf.mxu2  ;;  %v3707_v62 = vadd.f32 %v1633_v63, %v1535_v55  ;;  %v992_v55 = vadd.f32 %v991_v35, %v3436_v10  ;;  %v3729_v35 = vld [vmem:[%s3004_s29 + $0xa8] sm:$0xff] }
 0x130   : > { %v1390_v50 = vadd.f32 %v1322_v33, %v990_v14  ;;  %v3722_v44 = vpack.c.b16 %v1212_v42, %v1211_v46  ;;  %v1168_v14 = vrot.slane %v4249_v28, 5  ;;  %4251 = vst [vmem:[#allocation6_spill] sm:$0xff] %v3729_v35 }
 0x131   : > { %4245 = vst [vmem:[#allocation37_spill] sm:$0xff] %v3707_v62  ;;  %2730 = vmatmul.msk.bf16.gmra.mxu3 %vm682_vm3, %v3703_v53  ;;  %v4252_v62 = vld [vmem:[#allocation5_spill] sm:$0xff] }
 0x132   : > { %4248 = vst [vmem:[#allocation39_spill] sm:$0xff] %v3722_v44 }
 0x133   : > { %v1636_v40 = vpop.f32.mrf.mxu0 }
 0x134   : > { %v1468_v27 = vpop.f32.mrf.mxu3  ;;  %v994_v48 = vpop.f32.mrf.mxu1 }
 0x135   : > { %v1536_v38 = vadd.f32 %v1468_v27, %v1390_v50  ;;  %v1171_v27 = vrot.slane %v4250_v2, 5 }
 0x136   : > { %2758 = vmatmul.msk.bf16.gmra.mxu0 %vm682_vm3, %v4246_v41  ;;  %v2672_v41 = vrot.slane %v4252_v62, 9 }
 0x137   : > { %v1324_v63 = vpop.f32.mrf.mxu2  ;;  %2655 = vmatmul.msk.bf16.gmra.mxu1 %vm682_vm3, %v3703_v53  ;;  %v3720_v36 = vadd.f32 %v1636_v40, %v1536_v38  ;;  %v1170_v40 = vrot.slane %v1168_v14, 4  ;;  %v995_v38 = vadd.f32 %v994_v48, %v3456_v37 }
 0x138   : > { %v1391_v11 = vadd.f32 %v1324_v63, %v992_v55  ;;  %v1169_v63 = vsel %vm3341_vm6, %v2672_v41, %v1168_v14  ;;  %v3747_v41 = vld [vmem:[%s3004_s29 + $0xc0] sm:$0xf] }
 0x139   : > { %4247 = vst [vmem:[#allocation38_spill] sm:$0xff] %v3720_v36  ;;  %v1213_v2 = vunpack.c.l.b16 %v1169_v63  ;;  %v4254_v36 = vld [vmem:[#allocation10_spill] sm:$0xff]  ;;  %v1561_v63 = vshrl.u32 %v3747_v41, 16 }
 0x13a   : > { %4255 = vst [vmem:[#allocation5_spill] sm:$0xff] %v3747_v41 }
 0x13b   : > { %v1638_v33 = vpop.f32.mrf.mxu0 }
 0x13c   : > { %v1470_v12 = vpop.f32.mrf.mxu3  ;;  %2699 = vmatmul.msk.bf16.gmra.mxu2 %vm682_vm3, %v3722_v44  ;;  %v996_v50 = vpop.f32.mrf.mxu1 }
 0x13d   : > { %v1537_v10 = vadd.f32 %v1470_v12, %v1391_v11  ;;  %v1172_v11 = vsel %vm3341_vm6, %v1170_v40, %v1171_v27 }
 0x13e   : > { %v1214_v37 = vunpack.c.l.b16 %v1172_v11 }
 0x13f   : > { %v1327_v42 = vpop.f32.mrf.mxu2  ;;  %v3733_v46 = vadd.f32 %v1638_v33, %v1537_v10  ;;  %v997_v33 = vadd.f32 %v996_v50, %v3474_v24  ;;  %v1564_v24 = vshll.u32 %v3747_v41, 16 }
 0x140   : > { %v1392_v55 = vadd.f32 %v1327_v42, %v995_v38  ;;  %v3751_v40 = vpack.c.b16 %v1214_v37, %v1213_v2  ;;  %v3754_v38 = vld [vmem:[%s3004_s29 + $0xc4] sm:$0xf]  ;;  %v4260_v2 = vld [vmem:[#allocation15_spill] sm:$0xff] }
 0x141   : > { %4253 = vst [vmem:[#allocation7_spill] sm:$0xff] %v3733_v46  ;;  %2731 = vmatmul.msk.bf16.gmra.mxu3 %vm682_vm3, %v3729_v35  ;;  %v4259_v42 = vld [vmem:[#allocation14_spill] sm:$0xff]  ;;  %v1570_v50 = vshll.u32 %v3754_v38, 16  ;;  %v1178_v37 = vrot.slane %v4260_v2, 5  ;;  %v1566_v44 = vrot.slane %v1564_v24, 5 }
 0x142   : > { %4257 = vst [vmem:[#allocation41_spill] sm:$0xff] %v3751_v40 }
 0x143   : > { %v1641_v28 = vpop.f32.mrf.mxu0  ;;  %4258 = vst [vmem:[#allocation42_spill] sm:$0xff] %v3754_v38 }
 0x144   : > { %v1473_v62 = vpop.f32.mrf.mxu3  ;;  %v999_v12 = vpop.f32.mrf.mxu1 }
 0x145   : > { %v1538_v48 = vadd.f32 %v1473_v62, %v1392_v55  ;;  %v1175_v55 = vrot.slane %v4259_v42, 5  ;;  %v1574_v62 = vshrl.u32 %v3754_v38, 16  ;;  %v1000_v41 = vadd.f32 %v999_v12, %v3494_v45 }
 0x146   : > { %2759 = vmatmul.msk.bf16.gmra.mxu0 %vm682_vm3, %v4254_v36  ;;  %v1563_v36 = vrot.slane %v1561_v63, 4  ;;  %v1572_v38 = vrot.slane %v1570_v50, 5 }
 0x147   : > { %v1329_v10 = vpop.f32.mrf.mxu2  ;;  %2656 = vmatmul.msk.bf16.gmra.mxu1 %vm682_vm3, %v3729_v35  ;;  %v3749_v14 = vadd.f32 %v1641_v28, %v1538_v48  ;;  %v1576_v53 = vrot.slane %v1574_v62, 4 }
 0x148   : > { %v1393_v27 = vadd.f32 %v1329_v10, %v997_v33  ;;  %v3765_v33 = vld [vmem:[%s3004_s29 + $0xb4] sm:$0xff]  ;;  %v1567_v12 = vor.u32 %v1566_v44, %v1563_v36 }
 0x149   : > { %4256 = vst [vmem:[#allocation40_spill] sm:$0xff] %v3749_v14  ;;  %v4261_v10 = vld [vmem:[#allocation13_spill] sm:$0xff]  ;;  %v1177_v14 = vrot.slane %v1175_v55, 4  ;;  %v1577_v63 = vor.u32 %v1576_v53, %v1572_v38 }
 0x14a   : > { %v2673_v42 = vrot.slane %v4261_v10, 9 }
 0x14b   : > { %v1643_v11 = vpop.f32.mrf.mxu0  ;;  %v1578_v36 = vrot.slane %v1577_v63, 4 }
 0x14c   : > { %v1475_v46 = vpop.f32.mrf.mxu3  ;;  %2700 = vmatmul.msk.bf16.gmra.mxu2 %vm682_vm3, %v3751_v40  ;;  %v1001_v28 = vpop.f32.mrf.mxu1  ;;  %v3772_v40 = vld [vmem:[%s3004_s29 + $0xc8] sm:$0x1] }
 0x14d   : > { %v1539_v48 = vadd.f32 %v1475_v46, %v1393_v27  ;;  %v1176_v46 = vsel %vm3341_vm6, %v2673_v42, %v1175_v55  ;;  %v1179_v27 = vsel %vm3341_vm6, %v1177_v14, %v1178_v37  ;;  %v1580_v24 = vshll.u32 %v3772_v40, 16 }
 0x14e   : > { %v1215_v62 = vunpack.c.l.b16 %v1176_v46  ;;  %v1002_v2 = vadd.f32 %v1001_v28, %v3515_v52  ;;  %v1568_v14 = vrot.slane %v1567_v12, 4 }
 0x14f   : > { %v1332_v35 = vpop.f32.mrf.mxu2  ;;  %v3769_v30 = vadd.f32 %v1643_v11, %v1539_v48  ;;  %v1582_v53 = vrot.slane %v1580_v24, 5 }
 0x150   : > { %v1394_v5 = vadd.f32 %v1332_v35, %v1000_v41  ;;  %v1216_v35 = vunpack.c.l.b16 %v1179_v27  ;;  %v3797_v27 = vld [vmem:[%s3004_s29 + $0xc0] sm:$0xff] }
 0x151   : > { %2732 = vmatmul.msk.bf16.gmra.mxu3 %vm682_vm3, %v3765_v33  ;;  %v1583_v52 = vsel %vm3027_vm2, %v1578_v36, %v1582_v53 }
 0x152   : > { %v3788_v48 = vpack.c.b16 %v1216_v35, %v1215_v62  ;;  %v1590_v63 = vunpack.c.l.b16 %v1583_v52 }
 0x153   : > { %v1646_v45 = vpop.f32.mrf.mxu0 }
 0x154   : > { %v1478_v50 = vpop.f32.mrf.mxu3  ;;  %v1004_v11 = vpop.f32.mrf.mxu1 }
 0x155   : > { %v1540_v41 = vadd.f32 %v1478_v50, %v1394_v5  ;;  %v1573_v5 = vsel %vm3027_vm2, %v1568_v14, %v1572_v38 }
 0x156   : > { %2760 = vmatmul.msk.bf16.gmra.mxu0 %vm682_vm3, %v3350_v60  ;;  %v1589_v12 = vunpack.c.l.b16 %v1573_v5 }
 0x157   : > { %v1334_v55 = vpop.f32.mrf.mxu2  ;;  %2657 = vmatmul.msk.bf16.gmra.mxu1 %vm682_vm3, %v3765_v33  ;;  %v3786_v44 = vadd.f32 %v1646_v45, %v1540_v41  ;;  %v1005_v45 = vadd.f32 %v1004_v11, %v3539_v7 }
 0x158   : > { %v1395_v37 = vadd.f32 %v1334_v55, %v1002_v2  ;;  %v3804_v38 = vpack.c.b16 %v1590_v63, %v1589_v12 }
 0x15b   : > { %v1648_v10 = vpop.f32.mrf.mxu0 }
 0x15c   : > { %v1480_v28 = vpop.f32.mrf.mxu3  ;;  %2701 = vmatmul.msk.bf16.gmra.mxu2 %vm682_vm3, %v3788_v48  ;;  %v1006_v42 = vpop.f32.mrf.mxu1 }
 0x15d   : > { %v1541_v46 = vadd.f32 %v1480_v28, %v1395_v37  ;;  %v1007_v7 = vadd.f32 %v1006_v42, %v3565_v23 }
 0x15f   : > { %v1337_v24 = vpop.f32.mrf.mxu2  ;;  %v3800_v50 = vadd.f32 %v1648_v10, %v1541_v46 }
 0x160   : > { %v1396_v62 = vadd.f32 %v1337_v24, %v1005_v45 }
 0x161   : > { %2733 = vmatmul.msk.bf16.gmra.mxu3 %vm682_vm3, %v3797_v27 }
 0x163   : > { %v1651_v35 = vpop.f32.mrf.mxu0 }
 0x164   : > { %v1483_v41 = vpop.f32.mrf.mxu3  ;;  %v1009_v2 = vpop.f32.mrf.mxu1 }
 0x165   : > { %v1542_v55 = vadd.f32 %v1483_v41, %v1396_v62  ;;  %v1010_v52 = vadd.f32 %v1009_v2, %v3438_v56 }
 0x166   : > { %2761 = vmatmul.msk.bf16.gmra.mxu0 %vm682_vm3, %v3804_v38 }
 0x167   : > { %v1339_v11 = vpop.f32.mrf.mxu2  ;;  %2775 = vmatmul.msk.bf16.vlgmr.msra.gmra.mxu1 %vm682_vm3, %v3371_v22  ;;  %v3811_v14 = vadd.f32 %v1651_v35, %v1542_v55 }
 0x168   : > { %v1397_v36 = vadd.f32 %v1339_v11, %v1007_v7 }
 0x16b   : > { %v1653_v53 = vpop.f32.mrf.mxu0 }
 0x16c   : > { %v1485_v37 = vpop.f32.mrf.mxu3  ;;  %2807 = vmatmul.msk.bf16.vlgmr.msra.gmra.mxu2 %vm682_vm3, %v3384_v15  ;;  %v1011_v10 = vpop.f32.mrf.mxu1 }
 0x16d   : > { %v1543_v5 = vadd.f32 %v1485_v37, %v1397_v36  ;;  %v1012_v15 = vadd.f32 %v1011_v10, %v3460_v16 }
 0x16f   : > { %v1342_v28 = vpop.f32.mrf.mxu2  ;;  %v3816_v46 = vadd.f32 %v1653_v53, %v1543_v5 }
 0x170   : > { %v1398_v23 = vadd.f32 %v1342_v28, %v1010_v52 }
 0x171   : > { %2835 = vmatmul.msk.bf16.vlgmr.msra.gmra.mxu3 %vm682_vm3, %v3279_v39 }
 0x173   : > { %v1656_v22 = vpop.f32.mrf.mxu0 }
 0x174   : > { %v1488_v42 = vpop.f32.mrf.mxu3  ;;  %v1014_v45 = vpop.f32.mrf.mxu1 }
 0x175   : > { %v1544_v12 = vadd.f32 %v1488_v42, %v1398_v23  ;;  %v1015_v2 = vadd.f32 %v1014_v45, %v3480_v61 }
 0x176   : > { %2864 = vmatmul.msk.bf16.vlgmr.msra.gmra.mxu0 %vm682_vm3, %v3398_v47 }
 0x177   : > { %v1344_v63 = vpop.f32.mrf.mxu2  ;;  %2776 = vmatmul.msk.bf16.gmra.mxu1 %vm682_vm3, %v3398_v47  ;;  %v3825_v56 = vadd.f32 %v1656_v22, %v1544_v12 }
 0x178   : > { %v1399_v24 = vadd.f32 %v1344_v63, %v1012_v15 }
 0x17b   : > { %v1658_v62 = vpop.f32.mrf.mxu0 }
 0x17c   : > { %v1490_v35 = vpop.f32.mrf.mxu3  ;;  %2808 = vmatmul.msk.bf16.gmra.mxu2 %vm682_vm3, %v3404_v57  ;;  %v1016_v39 = vpop.f32.mrf.mxu1 }
 0x17d   : > { %v1545_v41 = vadd.f32 %v1490_v35, %v1399_v24  ;;  %v1017_v57 = vadd.f32 %v1016_v39, %v3498_v54 }
 0x17f   : > { %v1347_v55 = vpop.f32.mrf.mxu2  ;;  %v3830_v7 = vadd.f32 %v1658_v62, %v1545_v41 }
 0x180   : > { %v1400_v16 = vadd.f32 %v1347_v55, %v1015_v2 }
 0x181   : > { %2836 = vmatmul.msk.bf16.gmra.mxu3 %vm682_vm3, %v3367_v17 }
 0x183   : > { %v1661_v47 = vpop.f32.mrf.mxu0 }
 0x184   : > { %v1493_v11 = vpop.f32.mrf.mxu3  ;;  %v1019_v36 = vpop.f32.mrf.mxu1 }
 0x185   : > { %v1546_v53 = vadd.f32 %v1493_v11, %v1400_v16  ;;  %v1020_v23 = vadd.f32 %v1019_v36, %v3517_v19 }
 0x186   : > { %2865 = vmatmul.msk.bf16.gmra.mxu0 %vm682_vm3, %v3418_v29 }
 0x187   : > { %v1349_v37 = vpop.f32.mrf.mxu2  ;;  %2777 = vmatmul.msk.bf16.gmra.mxu1 %vm682_vm3, %v3418_v29  ;;  %v3839_v61 = vadd.f32 %v1661_v47, %v1546_v53 }
 0x188   : > { %v1401_v10 = vadd.f32 %v1349_v37, %v1017_v57 }
 0x18b   : > { %v1663_v5 = vpop.f32.mrf.mxu0 }
 0x18c   : > { %v1495_v52 = vpop.f32.mrf.mxu3  ;;  %2809 = vmatmul.msk.bf16.gmra.mxu2 %vm682_vm3, %v3426_v43  ;;  %v1021_v17 = vpop.f32.mrf.mxu1 }
 0x18d   : > { %v1547_v28 = vadd.f32 %v1495_v52, %v1401_v10  ;;  %v1022_v43 = vadd.f32 %v1021_v17, %v3541_v51 }
 0x18f   : > { %v1352_v22 = vpop.f32.mrf.mxu2  ;;  %v3844_v42 = vadd.f32 %v1663_v5, %v1547_v28  ;;  %v4262_v5 = vld [vmem:[#allocation18_spill] sm:$0xff] }
 0x190   : > { %v1402_v54 = vadd.f32 %v1352_v22, %v1020_v23  ;;  %v4263_v23 = vld [vmem:[#allocation8_spill] sm:$0xff] }
 0x191   : > { %2837 = vmatmul.msk.bf16.gmra.mxu3 %vm682_vm3, %v3039_v58 }
 0x193   : > { %v1666_v29 = vpop.f32.mrf.mxu0 }
 0x194   : > { %v1498_v45 = vpop.f32.mrf.mxu3  ;;  %v1024_v12 = vpop.f32.mrf.mxu1 }
 0x195   : > { %v1548_v15 = vadd.f32 %v1498_v45, %v1402_v54  ;;  %v1025_v41 = vadd.f32 %v1024_v12, %v3572_v26  ;;  %v4264_v45 = vld [vmem:[#allocation22_spill] sm:$0xff]  ;;  %v4265_v12 = vld [vmem:[#allocation19_spill] sm:$0xff] }
 0x196   : > { %2866 = vmatmul.msk.bf16.gmra.mxu0 %vm682_vm3, %v3446_v8 }
 0x197   : > { %v1354_v63 = vpop.f32.mrf.mxu2  ;;  %2778 = vmatmul.msk.bf16.gmra.mxu1 %vm682_vm3, %v3446_v8  ;;  %v3853_v19 = vadd.f32 %v1666_v29, %v1548_v15 }
 0x198   : > { %v1403_v24 = vadd.f32 %v1354_v63, %v1022_v43 }
 0x19b   : > { %v1668_v62 = vpop.f32.mrf.mxu0 }
 0x19c   : > { %v1500_v35 = vpop.f32.mrf.mxu3  ;;  %2810 = vmatmul.msk.bf16.gmra.mxu2 %vm682_vm3, %v3454_v34  ;;  %v1026_v58 = vpop.f32.mrf.mxu1 }
 0x19d   : > { %v1549_v39 = vadd.f32 %v1500_v35, %v1403_v24  ;;  %v1027_v34 = vadd.f32 %v1026_v58, %v3587_v0  ;;  %v4266_v35 = vld [vmem:[#allocation23_spill] sm:$0xff] }
 0x19f   : > { %v1357_v2 = vpop.f32.mrf.mxu2  ;;  %v3858_v55 = vadd.f32 %v1668_v62, %v1549_v39 }
 0x1a0   : > { %v1404_v51 = vadd.f32 %v1357_v2, %v1025_v41  ;;  %v4267_v41 = vld [vmem:[#allocation20_spill] sm:$0xff] }
 0x1a1   : > { %2838 = vmatmul.msk.bf16.gmra.mxu3 %vm682_vm3, %v3116_v31 }
 0x1a3   : > { %v1671_v8 = vpop.f32.mrf.mxu0 }
 0x1a4   : > { %v1503_v16 = vpop.f32.mrf.mxu3  ;;  %v1029_v47 = vpop.f32.mrf.mxu1 }
 0x1a5   : > { %v1550_v11 = vadd.f32 %v1503_v16, %v1404_v51  ;;  %v1030_v52 = vadd.f32 %v1029_v47, %v4262_v5  ;;  %v4268_v47 = vld [vmem:[#allocation16_spill] sm:$0xff] }
 0x1a6   : > { %2867 = vmatmul.msk.bf16.gmra.mxu0 %vm682_vm3, %v3478_v4 }
 0x1a7   : > { %v1359_v36 = vpop.f32.mrf.mxu2  ;;  %2779 = vmatmul.msk.bf16.gmra.mxu1 %vm682_vm3, %v3478_v4  ;;  %v3867_v26 = vadd.f32 %v1671_v8, %v1550_v11 }
 0x1a8   : > { %v1405_v53 = vadd.f32 %v1359_v36, %v1027_v34 }
 0x1ab   : > { %v1673_v57 = vpop.f32.mrf.mxu0 }
 0x1ac   : > { %v1505_v37 = vpop.f32.mrf.mxu3  ;;  %2811 = vmatmul.msk.bf16.gmra.mxu2 %vm682_vm3, %v3488_v25  ;;  %v1031_v31 = vpop.f32.mrf.mxu1 }
 0x1ad   : > { %v1551_v10 = vadd.f32 %v1505_v37, %v1405_v53  ;;  %v1032_v25 = vadd.f32 %v1031_v31, %v4265_v12  ;;  %v4270_v37 = vld [vmem:[#allocation21_spill] sm:$0xff] }
 0x1af   : > { %v1362_v17 = vpop.f32.mrf.mxu2  ;;  %v3872_v28 = vadd.f32 %v1673_v57, %v1551_v10  ;;  %v4269_v57 = vld [vmem:[#allocation25_spill] sm:$0xff] }
 0x1b0   : > { %v1406_v0 = vadd.f32 %v1362_v17, %v1030_v52 }
 0x1b1   : > { %2839 = vmatmul.msk.bf16.gmra.mxu3 %vm682_vm3, %v4263_v23  ;;  %v4271_v23 = vld [vmem:[#allocation27_spill] sm:$0xff] }
 0x1b3   : > { %v1676_v4 = vpop.f32.mrf.mxu0 }
 0x1b4   : > { %v1508_v22 = vpop.f32.mrf.mxu3  ;;  %v1034_v54 = vpop.f32.mrf.mxu1 }
 0x1b5   : > { %v1552_v29 = vadd.f32 %v1508_v22, %v1406_v0  ;;  %v1035_v2 = vadd.f32 %v1034_v54, %v4267_v41  ;;  %v4272_v54 = vld [vmem:[#allocation24_spill] sm:$0xff] }
 0x1b6   : > { %2868 = vmatmul.msk.bf16.gmra.mxu0 %vm682_vm3, %v4264_v45 }
 0x1b7   : > { %v1364_v15 = vpop.f32.mrf.mxu2  ;;  %2780 = vmatmul.msk.bf16.gmra.mxu1 %vm682_vm3, %v4264_v45  ;;  %v3881_v43 = vadd.f32 %v1676_v4, %v1552_v29 }
 0x1b8   : > { %v1407_v63 = vadd.f32 %v1364_v15, %v1032_v25  ;;  %v4273_v15 = vld [vmem:[#allocation2_spill] sm:$0xff] }
 0x1bb   : > { %v1678_v24 = vpop.f32.mrf.mxu0 }
 0x1bc   : > { %v1510_v62 = vpop.f32.mrf.mxu3  ;;  %2812 = vmatmul.msk.bf16.gmra.mxu2 %vm682_vm3, %v4266_v35  ;;  %v1036_v58 = vpop.f32.mrf.mxu1 }
 0x1bd   : > { %v1553_v39 = vadd.f32 %v1510_v62, %v1407_v63  ;;  %v1037_v31 = vadd.f32 %v1036_v58, %v4270_v37  ;;  %v4274_v58 = vld [vmem:[#allocation29_spill] sm:$0xff] }
 0x1bf   : > { %v1367_v51 = vpop.f32.mrf.mxu2  ;;  %v3886_v8 = vadd.f32 %v1678_v24, %v1553_v39  ;;  %v4275_v39 = vld [vmem:[#allocation26_spill] sm:$0xff] }
 0x1c0   : > { %v1408_v16 = vadd.f32 %v1367_v51, %v1035_v2 }
 0x1c1   : > { %2840 = vmatmul.msk.bf16.gmra.mxu3 %vm682_vm3, %v4268_v47 }
 0x1c3   : > { %v1681_v11 = vpop.f32.mrf.mxu0 }
 0x1c4   : > { %v1513_v34 = vpop.f32.mrf.mxu3  ;;  %v1039_v36 = vpop.f32.mrf.mxu1 }
 0x1c5   : > { %v1554_v53 = vadd.f32 %v1513_v34, %v1408_v16  ;;  %v1040_v29 = vadd.f32 %v1039_v36, %v4272_v54 }
 0x1c6   : > { %2869 = vmatmul.msk.bf16.gmra.mxu0 %vm682_vm3, %v4269_v57 }
 0x1c7   : > { %v1369_v10 = vpop.f32.mrf.mxu2  ;;  %2781 = vmatmul.msk.bf16.gmra.mxu1 %vm682_vm3, %v4269_v57  ;;  %v3895_v5 = vadd.f32 %v1681_v11, %v1554_v53  ;;  %v4276_v53 = vld [vmem:[#allocation28_spill] sm:$0xff] }
 0x1c8   : > { %v1409_v52 = vadd.f32 %v1369_v10, %v1037_v31 }
 0x1cb   : > { %v1683_v17 = vpop.f32.mrf.mxu0 }
 0x1cc   : > { %v1515_v0 = vpop.f32.mrf.mxu3  ;;  %2813 = vmatmul.msk.bf16.gmra.mxu2 %vm682_vm3, %v4271_v23  ;;  %v1041_v4 = vpop.f32.mrf.mxu1 }
 0x1cd   : > { %v1555_v22 = vadd.f32 %v1515_v0, %v1409_v52  ;;  %v1042_v41 = vadd.f32 %v1041_v4, %v4275_v39  ;;  %v4277_v4 = vld [vmem:[#allocation30_spill] sm:$0xff] }
 0x1cf   : > { %v1372_v45 = vpop.f32.mrf.mxu2  ;;  %v3900_v12 = vadd.f32 %v1683_v17, %v1555_v22 }
 0x1d0   : > { %v1410_v25 = vadd.f32 %v1372_v45, %v1040_v29 }
 0x1d1   : > { %2841 = vmatmul.msk.bf16.gmra.mxu3 %vm682_vm3, %v4273_v15 }
 0x1d3   : > { %v1686_v63 = vpop.f32.mrf.mxu0 }
 0x1d4   : > { %v1518_v24 = vpop.f32.mrf.mxu3  ;;  %v1044_v62 = vpop.f32.mrf.mxu1 }
 0x1d5   : > { %v1556_v35 = vadd.f32 %v1518_v24, %v1410_v25  ;;  %v1045_v57 = vadd.f32 %v1044_v62, %v4276_v53 }
 0x1d6   : > { %2870 = vmatmul.msk.bf16.gmra.mxu0 %vm682_vm3, %v4274_v58 }
 0x1d7   : > { %v1374_v2 = vpop.f32.mrf.mxu2  ;;  %2782 = vmatmul.msk.bf16.gmra.mxu1 %vm682_vm3, %v4274_v58  ;;  %v3909_v51 = vadd.f32 %v1686_v63, %v1556_v35 }
 0x1d8   : > { %v1411_v16 = vadd.f32 %v1374_v2, %v1042_v41 }
 0x1db   : > { %v1688_v47 = vpop.f32.mrf.mxu0 }
 0x1dc   : > { %v1520_v11 = vpop.f32.mrf.mxu3  ;;  %2814 = vmatmul.msk.bf16.gmra.mxu2 %vm682_vm3, %v3602_v18  ;;  %v1046_v34 = vpop.f32.mrf.mxu1 }
 0x1dd   : > { %v1557_v36 = vadd.f32 %v1520_v11, %v1411_v16  ;;  %v1047_v18 = vadd.f32 %v1046_v34, %v4277_v4 }
 0x1df   : > { %v1377_v37 = vpop.f32.mrf.mxu2  ;;  %v3914_v31 = vadd.f32 %v1688_v47, %v1557_v36 }
 0x1e0   : > { %v1412_v10 = vadd.f32 %v1377_v37, %v1045_v57  ;;  %v4278_v37 = vld [vmem:[#allocation31_spill] sm:$0xff] }
 0x1e1   : > { %2842 = vmatmul.msk.bf16.gmra.mxu3 %vm682_vm3, %v3147_v1 }
 0x1e3   : > { %v1691_v52 = vpop.f32.mrf.mxu0 }
 0x1e4   : > { %v1523_v17 = vpop.f32.mrf.mxu3  ;;  %v1768_v0 = vpop.f32.mrf.mxu1 }
 0x1e5   : > { %v1558_v23 = vadd.f32 %v1523_v17, %v1412_v10  ;;  %v1848_v63 = vadd.f32 %v1768_v0, %v3617_v13  ;;  %v4279_v0 = vld [vmem:[#allocation17_spill] sm:$0xff] }
 0x1e6   : > { %2871 = vmatmul.msk.bf16.gmra.mxu0 %vm682_vm3, %v3619_v6 }
 0x1e7   : > { %v1379_v22 = vpop.f32.mrf.mxu2  ;;  %2783 = vmatmul.msk.bf16.gmra.mxu1 %vm682_vm3, %v3619_v6  ;;  %v3923_v54 = vadd.f32 %v1691_v52, %v1558_v23 }
 0x1e8   : > { %v1413_v29 = vadd.f32 %v1379_v22, %v1047_v18 }
 0x1eb   : > { %v1693_v45 = vpop.f32.mrf.mxu0 }
 0x1ec   : > { %v1525_v25 = vpop.f32.mrf.mxu3  ;;  %2815 = vmatmul.msk.bf16.gmra.mxu2 %vm682_vm3, %v3626_v3  ;;  %v1770_v1 = vpop.f32.mrf.mxu1  ;;  %v3935_v3 = vld [vmem:[%s4157_s2] ss:$0 sm:$0xff] }
 0x1ed   : > { %v1559_v15 = vadd.f32 %v1525_v25, %v1413_v29  ;;  %v1849_v2 = vadd.f32 %v1770_v1, %v3630_v59  ;;  %v4280_v25 = vld [vmem:[#allocation9_spill] sm:$0xff] }
 0x1ef   : > { %v1914_v24 = vpop.f32.mrf.mxu2  ;;  %v3928_v62 = vadd.f32 %v1693_v45, %v1559_v15  ;;  %v4281_v15 = vld [vmem:[#allocation11_spill] sm:$0xff] }
 0x1f0   : > { %v1994_v6 = vadd.f32 %v1914_v24, %v1848_v63 }
 0x1f1   : > { %2843 = vmatmul.msk.bf16.gmra.mxu3 %vm682_vm3, %v3235_v21 }
 0x1f3   : > { %v2234_v35 = vpop.f32.mrf.mxu0 }
 0x1f4   : > { %v2082_v58 = vpop.f32.mrf.mxu3  ;;  %v1773_v39 = vpop.f32.mrf.mxu1 }
 0x1f5   : > { %v2162_v41 = vadd.f32 %v2082_v58, %v1994_v6  ;;  %v1850_v10 = vadd.f32 %v1773_v39, %v4278_v37 }
 0x1f6   : > { %2872 = vmatmul.msk.bf16.gmra.mxu0 %vm682_vm3, %v3645_v9 }
 0x1f7   : > { %v2314_v13 = vadd.f32 %v2234_v35, %v2162_v41  ;;  %v1916_v16 = vpop.f32.mrf.mxu2  ;;  %2784 = vmatmul.msk.bf16.gmra.mxu1 %vm682_vm3, %v3645_v9 }
 0x1f8   : > { %v1995_v47 = vadd.f32 %v1916_v16, %v1849_v2 }
 0x1f9   : > { %v2350_v21 = vadd.f32 %v3935_v3, %v2314_v13  ;;  %v4282_v13 = vld [vmem:[#allocation32_spill] sm:$0xff] }
 0x1fb   : > { %v2382_v11 = vmax.f32 %v2350_v21, 0.0  ;;  %v2236_v34 = vpop.f32.mrf.mxu0 }
 0x1fc   : > { %v2084_v36 = vpop.f32.mrf.mxu3  ;;  %2816 = vmatmul.msk.bf16.gmra.mxu2 %vm682_vm3, %v3652_v20  ;;  %v1775_v59 = vpop.f32.mrf.mxu1 }
 0x1fd   : > { %v2414_v53 = vpack.c.bf16 %v2382_v11, %v2382_v11  ;;  %v2163_v9 = vadd.f32 %v2084_v36, %v1995_v47  ;;  %v1851_v63 = vadd.f32 %v1775_v59, %v4281_v15  ;;  %v4283_v11 = vld [vmem:[#allocation12_spill] sm:$0xff] }
 0x1ff   : > { %2447 = vst.msk [vmem:[%s3947_s8] sm:$0xf] %vm2446_vm7, %v2414_v53  ;;  %v2315_v57 = vadd.f32 %v2236_v34, %v2163_v9  ;;  %v1919_v52 = vpop.f32.mrf.mxu2  ;;  %v4284_v53 = vld [vmem:[#allocation3_spill] sm:$0xff] }
 0x200   : > { %v1996_v23 = vadd.f32 %v1919_v52, %v1850_v10 }
 0x201   : > { %v2351_v17 = vadd.f32 %v3935_v3, %v2315_v57  ;;  %2844 = vmatmul.msk.bf16.gmra.mxu3 %vm682_vm3, %v4279_v0 }
 0x203   : > { %v2383_v4 = vmax.f32 %v2351_v17, 0.0  ;;  %v2239_v18 = vpop.f32.mrf.mxu0 }
 0x204   : > { %v2087_v22 = vpop.f32.mrf.mxu3  ;;  %v1778_v20 = vpop.f32.mrf.mxu1 }
 0x205   : > { %v2415_v29 = vpack.c.bf16 %v2383_v4, %v2383_v4  ;;  %v2164_v45 = vadd.f32 %v2087_v22, %v1996_v23  ;;  %v1852_v34 = vadd.f32 %v1778_v20, %v4283_v11  ;;  %v4285_v23 = vld [vmem:[#allocation35_spill] sm:$0xff] }
 0x206   : > { %2873 = vmatmul.msk.bf16.gmra.mxu0 %vm682_vm3, %v4280_v25 }
 0x207   : > { %2448 = vst.msk [vmem:[%s3947_s8 + $0x4] sm:$0xf] %vm2446_vm7, %v2415_v29  ;;  %v2316_v1 = vadd.f32 %v2239_v18, %v2164_v45  ;;  %v1921_v24 = vpop.f32.mrf.mxu2  ;;  %2785 = vmatmul.msk.bf16.gmra.mxu1 %vm682_vm3, %v4280_v25  ;;  %v4286_v18 = vld [vmem:[#allocation33_spill] sm:$0xff] }
 0x208   : > { %v1997_v35 = vadd.f32 %v1921_v24, %v1851_v63  ;;  %v4287_v63 = vld [vmem:[#allocation36_spill] sm:$0xff] }
 0x209   : > { %v2352_v6 = vadd.f32 %v3935_v3, %v2316_v1 }
 0x20b   : > { %v2384_v58 = vmax.f32 %v2352_v6, 0.0  ;;  %v2241_v39 = vpop.f32.mrf.mxu0 }
 0x20c   : > { %v2089_v41 = vpop.f32.mrf.mxu3  ;;  %2817 = vmatmul.msk.bf16.gmra.mxu2 %vm682_vm3, %v4282_v13  ;;  %v1780_v2 = vpop.f32.mrf.mxu1 }
 0x20d   : > { %v2416_v16 = vpack.c.bf16 %v2384_v58, %v2384_v58  ;;  %v2165_v21 = vadd.f32 %v2089_v41, %v1997_v35  ;;  %v1853_v22 = vadd.f32 %v1780_v2, %v4286_v18 }
 0x20f   : > { %2449 = vst.msk [vmem:[%s3947_s8 + $0x8] sm:$0xf] %vm2446_vm7, %v2416_v16  ;;  %v2317_v47 = vadd.f32 %v2241_v39, %v2165_v21  ;;  %v1924_v36 = vpop.f32.mrf.mxu2  ;;  %v4288_v39 = vld [vmem:[#allocation34_spill] sm:$0xff]  ;;  %v4289_v16 = vld [vmem:[#allocation4_spill] sm:$0xff] }
 0x210   : > { %v1998_v9 = vadd.f32 %v1924_v36, %v1852_v34 }
 0x211   : > { %v2353_v59 = vadd.f32 %v3935_v3, %v2317_v47  ;;  %2845 = vmatmul.msk.bf16.gmra.mxu3 %vm682_vm3, %v4284_v53 }
 0x213   : > { %v2385_v57 = vmax.f32 %v2353_v59, 0.0  ;;  %v2244_v37 = vpop.f32.mrf.mxu0 }
 0x214   : > { %v2092_v10 = vpop.f32.mrf.mxu3  ;;  %v1783_v52 = vpop.f32.mrf.mxu1 }
 0x215   : > { %v2417_v17 = vpack.c.bf16 %v2385_v57, %v2385_v57  ;;  %v2166_v0 = vadd.f32 %v2092_v10, %v1998_v9  ;;  %v1854_v41 = vadd.f32 %v1783_v52, %v4288_v39  ;;  %v4290_v9 = vld [vmem:[#allocation39_spill] sm:$0xff] }
 0x216   : > { %2874 = vmatmul.msk.bf16.gmra.mxu0 %vm682_vm3, %v4285_v23 }
 0x217   : > { %2450 = vst.msk [vmem:[%s3947_s8 + $0xc] sm:$0xf] %vm2446_vm7, %v2417_v17  ;;  %v2318_v4 = vadd.f32 %v2244_v37, %v2166_v0  ;;  %v1926_v20 = vpop.f32.mrf.mxu2  ;;  %2786 = vmatmul.msk.bf16.gmra.mxu1 %vm682_vm3, %v4285_v23  ;;  %v4291_v37 = vld [vmem:[#allocation37_spill] sm:$0xff] }
 0x218   : > { %v1999_v45 = vadd.f32 %v1926_v20, %v1853_v22  ;;  %v4292_v22 = vld [vmem:[#allocation6_spill] sm:$0xff] }
 0x219   : > { %v2354_v29 = vadd.f32 %v3935_v3, %v2318_v4 }
 0x21b   : > { %v2386_v25 = vmax.f32 %v2354_v29, 0.0  ;;  %v2246_v1 = vpop.f32.mrf.mxu0 }
 0x21c   : > { %v2094_v15 = vpop.f32.mrf.mxu3  ;;  %2818 = vmatmul.msk.bf16.gmra.mxu2 %vm682_vm3, %v4287_v63  ;;  %v1785_v24 = vpop.f32.mrf.mxu1 }
 0x21d   : > { %v2418_v6 = vpack.c.bf16 %v2386_v25, %v2386_v25  ;;  %v2167_v35 = vadd.f32 %v2094_v15, %v1999_v45  ;;  %v1855_v10 = vadd.f32 %v1785_v24, %v4291_v37 }
 0x21f   : > { %2451 = vst.msk [vmem:[%s3947_s8 + $0x10] sm:$0xf] %vm2446_vm7, %v2418_v6  ;;  %v2319_v58 = vadd.f32 %v2246_v1, %v2167_v35  ;;  %v1929_v13 = vpop.f32.mrf.mxu2  ;;  %v4293_v1 = vld [vmem:[#allocation38_spill] sm:$0xff] }
 0x220   : > { %v2000_v21 = vadd.f32 %v1929_v13, %v1854_v41  ;;  %v4294_v6 = vld [vmem:[#allocation10_spill] sm:$0xff] }
 0x221   : > { %v2355_v2 = vadd.f32 %v3935_v3, %v2319_v58  ;;  %2846 = vmatmul.msk.bf16.gmra.mxu3 %vm682_vm3, %v4289_v16 }
 0x223   : > { %v2387_v47 = vmax.f32 %v2355_v2, 0.0  ;;  %v2249_v11 = vpop.f32.mrf.mxu0 }
 0x224   : > { %v2097_v34 = vpop.f32.mrf.mxu3  ;;  %v1788_v36 = vpop.f32.mrf.mxu1 }
 0x225   : > { %v2419_v59 = vpack.c.bf16 %v2387_v47, %v2387_v47  ;;  %v2168_v53 = vadd.f32 %v2097_v34, %v2000_v21  ;;  %v1856_v15 = vadd.f32 %v1788_v36, %v4293_v1  ;;  %v4295_v21 = vld [vmem:[#allocation41_spill] sm:$0xff]  ;;  %v4023_v1 = vld [vmem:[%s3004_s29 + $0xcc] sm:$0xf] }
 0x226   : > { %2875 = vmatmul.msk.bf16.gmra.mxu0 %vm682_vm3, %v4290_v9 }
 0x227   : > { %2452 = vst.msk [vmem:[%s3947_s8 + $0x14] sm:$0xf] %vm2446_vm7, %v2419_v59  ;;  %v2320_v57 = vadd.f32 %v2249_v11, %v2168_v53  ;;  %v1931_v52 = vpop.f32.mrf.mxu2  ;;  %2787 = vmatmul.msk.bf16.gmra.mxu1 %vm682_vm3, %v4290_v9  ;;  %v4296_v11 = vld [vmem:[#allocation7_spill] sm:$0xff] }
 0x228   : > { %v2001_v0 = vadd.f32 %v1931_v52, %v1855_v10 }
 0x229   : > { %v2356_v17 = vadd.f32 %v3935_v3, %v2320_v57 }
 0x22b   : > { %v2388_v23 = vmax.f32 %v2356_v17, 0.0  ;;  %v2251_v4 = vpop.f32.mrf.mxu0 }
 0x22c   : > { %v2099_v18 = vpop.f32.mrf.mxu3  ;;  %2819 = vmatmul.msk.bf16.gmra.mxu2 %vm682_vm3, %v4292_v22  ;;  %v1790_v20 = vpop.f32.mrf.mxu1 }
 0x22d   : > { %v2420_v29 = vpack.c.bf16 %v2388_v23, %v2388_v23  ;;  %v2169_v45 = vadd.f32 %v2099_v18, %v2001_v0  ;;  %v1857_v34 = vadd.f32 %v1790_v20, %v4296_v11  ;;  %v4297_v23 = vld [vmem:[#allocation40_spill] sm:$0xff] }
 0x22f   : > { %2453 = vst.msk [vmem:[%s3947_s8 + $0x18] sm:$0xf] %vm2446_vm7, %v2420_v29  ;;  %v2321_v25 = vadd.f32 %v2251_v4, %v2169_v45  ;;  %v1934_v63 = vpop.f32.mrf.mxu2 }
 0x230   : > { %v2002_v35 = vadd.f32 %v1934_v63, %v1856_v15  ;;  %v4026_v15 = vld [vmem:[%s3004_s29 + $0xd0] sm:$0xf] }
 0x231   : > { %v2357_v24 = vadd.f32 %v3935_v3, %v2321_v25  ;;  %2847 = vmatmul.msk.bf16.gmra.mxu3 %vm682_vm3, %v4294_v6  ;;  %v4298_v25 = vld [vmem:[#allocation42_spill] sm:$0xff] }
 0x233   : > { %v2389_v58 = vmax.f32 %v2357_v24, 0.0  ;;  %v2254_v39 = vpop.f32.mrf.mxu0 }
 0x234   : > { %v2102_v41 = vpop.f32.mrf.mxu3  ;;  %v1793_v13 = vpop.f32.mrf.mxu1 }
 0x235   : > { %v2421_v2 = vpack.c.bf16 %v2389_v58, %v2389_v58  ;;  %v2170_v16 = vadd.f32 %v2102_v41, %v2002_v35  ;;  %v1858_v4 = vadd.f32 %v1793_v13, %v4297_v23  ;;  %v4299_v58 = vld [vmem:[#allocation5_spill] sm:$0xff]  ;;  %v2030_v41 = vshll.u32 %v4023_v1, 16 }
 0x236   : > { %2876 = vmatmul.msk.bf16.gmra.mxu0 %vm682_vm3, %v4295_v21  ;;  %v2036_v13 = vshll.u32 %v4026_v15, 16 }
 0x237   : > { %2454 = vst.msk [vmem:[%s3947_s8 + $0x1c] sm:$0xf] %vm2446_vm7, %v2421_v2  ;;  %v2322_v47 = vadd.f32 %v2254_v39, %v2170_v16  ;;  %v1936_v36 = vpop.f32.mrf.mxu2  ;;  %2788 = vmatmul.msk.bf16.gmra.mxu1 %vm682_vm3, %v4295_v21  ;;  %v2762_v39 = vrot.slane %v4299_v58, 9  ;;  %v2040_v2 = vshrl.u32 %v4026_v15, 16 }
 0x238   : > { %v2003_v53 = vadd.f32 %v1936_v36, %v1857_v34  ;;  %v1734_v34 = vrot.slane %v3772_v40, 5 }
 0x239   : > { %v2358_v59 = vadd.f32 %v3935_v3, %v2322_v47 }
 0x23b   : > { %v2390_v9 = vmax.f32 %v2358_v59, 0.0  ;;  %v2256_v57 = vpop.f32.mrf.mxu0 }
 0x23c   : > { %v2104_v37 = vpop.f32.mrf.mxu3  ;;  %2820 = vmatmul.msk.bf16.gmra.mxu2 %vm682_vm3, %v3765_v33  ;;  %v1795_v10 = vpop.f32.mrf.mxu1  ;;  %v1731_v33 = vrot.slane %v4298_v25, 5 }
 0x23d   : > { %v2422_v52 = vpack.c.bf16 %v2390_v9, %v2390_v9  ;;  %v2171_v17 = vadd.f32 %v2104_v37, %v2003_v53  ;;  %v1859_v21 = vadd.f32 %v1795_v10, %v3769_v30  ;;  %v2038_v37 = vrot.slane %v2036_v13, 5 }
 0x23e   : > { %v1733_v11 = vrot.slane %v1731_v33, 4  ;;  %v1732_v53 = vsel %vm3341_vm6, %v2762_v39, %v1731_v33 }
 0x23f   : > { %2455 = vst.msk [vmem:[%s3947_s8 + $0x20] sm:$0xf] %vm2446_vm7, %v2422_v52  ;;  %v2323_v0 = vadd.f32 %v2256_v57, %v2171_v17  ;;  %v1939_v18 = vpop.f32.mrf.mxu2  ;;  %v2032_v57 = vrot.slane %v2030_v41, 5  ;;  %v2042_v52 = vrot.slane %v2040_v2, 4  ;;  %v2197_v2 = vrot.slane %v4026_v15, 5 }
 0x240   : > { %v2004_v20 = vadd.f32 %v1939_v18, %v1858_v4  ;;  %v1735_v10 = vsel %vm3341_vm6, %v1733_v11, %v1734_v34  ;;  %v1741_v18 = vunpack.c.l.b16 %v1732_v53  ;;  %v2851_v11 = vrot.slane %v4023_v1, 9 }
 0x241   : > { %v2359_v22 = vadd.f32 %v3935_v3, %v2323_v0  ;;  %2848 = vmatmul.msk.bf16.gmra.mxu3 %vm682_vm3, %v3350_v60  ;;  %v2027_v60 = vshrl.u32 %v4023_v1, 16 }
 0x242   : > { %v2198_v1 = vsel %vm3341_vm6, %v2851_v11, %v2197_v2 }
 0x243   : > { %v2391_v29 = vmax.f32 %v2359_v22, 0.0  ;;  %v2259_v45 = vpop.f32.mrf.mxu0  ;;  %v2029_v9 = vrot.slane %v2027_v60, 4  ;;  %v1742_v22 = vunpack.c.l.b16 %v1735_v10 }
 0x244   : > { %v2107_v63 = vpop.f32.mrf.mxu3  ;;  %v1798_v24 = vpop.f32.mrf.mxu1 }
 0x245   : > { %v2423_v6 = vpack.c.bf16 %v2391_v29, %v2391_v29  ;;  %v2172_v35 = vadd.f32 %v2107_v63, %v2004_v20  ;;  %v2033_v20 = vor.u32 %v2032_v57, %v2029_v9  ;;  %v2043_v29 = vor.u32 %v2042_v52, %v2038_v37  ;;  %v2900_v9 = vld [vmem:[%s3004_s29 + $0xcc] sm:$0xff] }
 0x246   : > { %2877 = vmatmul.msk.bf16.gmra.mxu0 %vm682_vm3, %v3788_v48  ;;  %v1860_v33 = vadd.f32 %v1798_v24, %v3786_v44 }
 0x247   : > { %2456 = vst.msk [vmem:[%s3947_s8 + $0x24] sm:$0xf] %vm2446_vm7, %v2423_v6  ;;  %v2324_v16 = vadd.f32 %v2259_v45, %v2172_v35  ;;  %v1941_v47 = vpop.f32.mrf.mxu2  ;;  %2789 = vmatmul.msk.bf16.gmra.mxu1 %vm682_vm3, %v3788_v48  ;;  %v225_v48 = vld [vmem:[%s3004_s29 + $0xd4] sm:$0x1]  ;;  %v1743_v35 = vpack.c.b16 %v1742_v22, %v1741_v18  ;;  %v2034_v58 = vrot.slane %v2033_v20, 4  ;;  %v2044_v39 = vrot.slane %v2043_v29, 4 }
 0x248   : > { %v2005_v59 = vadd.f32 %v1941_v47, %v1859_v21  ;;  %v2046_v45 = vshll.u32 %v225_v48, 16  ;;  %v2200_v53 = vrot.slane %v225_v48, 5 }
 0x249   : > { %v2360_v36 = vadd.f32 %v3935_v3, %v2324_v16 }
 0x24a   : > { %v2048_v60 = vrot.slane %v2046_v45, 5 }
 0x24b   : > { %v2392_v17 = vmax.f32 %v2360_v36, 0.0  ;;  %v2261_v30 = vpop.f32.mrf.mxu0 }
 0x24c   : > { %v2109_v0 = vpop.f32.mrf.mxu3  ;;  %2821 = vmatmul.msk.bf16.gmra.mxu2 %vm682_vm3, %v3797_v27  ;;  %v1800_v40 = vpop.f32.mrf.mxu1  ;;  %v2049_v47 = vsel %vm3027_vm2, %v2044_v39, %v2048_v60 }
 0x24d   : > { %v2424_v23 = vpack.c.bf16 %v2392_v17, %v2392_v17  ;;  %v2173_v4 = vadd.f32 %v2109_v0, %v2005_v59  ;;  %v1861_v15 = vadd.f32 %v1800_v40, %v3800_v50  ;;  %v2199_v59 = vrot.slane %v2197_v2, 4 }
 0x24e   : > { %v2056_v32 = vunpack.c.l.b16 %v2049_v47 }
 0x24f   : > { %2457 = vst.msk [vmem:[%s3947_s8 + $0x28] sm:$0xf] %vm2446_vm7, %v2424_v23  ;;  %v2325_v25 = vadd.f32 %v2261_v30, %v2173_v4  ;;  %v1944_v63 = vpop.f32.mrf.mxu2  ;;  %v2201_v50 = vsel %vm3341_vm6, %v2199_v59, %v2200_v53  ;;  %v2207_v4 = vunpack.c.l.b16 %v2198_v1 }
 0x250   : > { %v2006_v27 = vadd.f32 %v1944_v63, %v1860_v33  ;;  %v2208_v18 = vunpack.c.l.b16 %v2201_v50 }
 0x251   : > { %v2361_v6 = vadd.f32 %v3935_v3, %v2325_v25  ;;  %2849 = vmatmul.msk.bf16.gmra.mxu3 %vm682_vm3, %v3804_v38  ;;  %v2039_v38 = vsel %vm3027_vm2, %v2034_v58, %v2038_v37 }
 0x252   : > { %v2055_v52 = vunpack.c.l.b16 %v2039_v38  ;;  %v2209_v25 = vpack.c.b16 %v2208_v18, %v2207_v4 }
 0x253   : > { %v2393_v41 = vmax.f32 %v2361_v6, 0.0  ;;  %v2264_v13 = vpop.f32.mrf.mxu0 }
 0x254   : > { %v2112_v16 = vpop.f32.mrf.mxu3  ;;  %v1803_v21 = vpop.f32.mrf.mxu1  ;;  %v2057_v23 = vpack.c.b16 %v2056_v32, %v2055_v52 }
 0x255   : > { %v2425_v44 = vpack.c.bf16 %v2393_v41, %v2393_v41  ;;  %v2174_v24 = vadd.f32 %v2112_v16, %v2006_v27  ;;  %v1862_v20 = vadd.f32 %v1803_v21, %v3811_v14 }
 0x256   : > { %2878 = vmatmul.msk.bf16.gmra.mxu0 %vm682_vm3, %v1743_v35 }
 0x257   : > { %2458 = vst.msk [vmem:[%s3947_s8 + $0x2c] sm:$0xf] %vm2446_vm7, %v2425_v44  ;;  %v2326_v34 = vadd.f32 %v2264_v13, %v2174_v24  ;;  %v1946_v36 = vpop.f32.mrf.mxu2  ;;  %2790 = vmatmul.msk.bf16.gmra.mxu1 %vm682_vm3, %v1743_v35 }
 0x258   : > { %v2007_v37 = vadd.f32 %v1946_v36, %v1861_v15 }
 0x259   : > { %v2362_v57 = vadd.f32 %v3935_v3, %v2326_v34 }
 0x25b   : > { %v2394_v17 = vmax.f32 %v2362_v57, 0.0  ;;  %v2266_v30 = vpop.f32.mrf.mxu0 }
 0x25c   : > { %v2114_v10 = vpop.f32.mrf.mxu3  ;;  %2822 = vmatmul.msk.bf16.gmra.mxu2 %vm682_vm3, %v2900_v9  ;;  %v1805_v0 = vpop.f32.mrf.mxu1 }
 0x25d   : > { %v2426_v48 = vpack.c.bf16 %v2394_v17, %v2394_v17  ;;  %v2175_v40 = vadd.f32 %v2114_v10, %v2007_v37  ;;  %v1863_v14 = vadd.f32 %v1805_v0, %v3816_v46 }
 0x25f   : > { %2459 = vst.msk [vmem:[%s3947_s8 + $0x30] sm:$0xf] %vm2446_vm7, %v2426_v48  ;;  %v2327_v22 = vadd.f32 %v2266_v30, %v2175_v40  ;;  %v1949_v29 = vpop.f32.mrf.mxu2 }
 0x260   : > { %v2008_v49 = vadd.f32 %v1949_v29, %v1862_v20 }
 0x261   : > { %v2363_v45 = vadd.f32 %v3935_v3, %v2327_v22  ;;  %2850 = vmatmul.msk.bf16.gmra.mxu3 %vm682_vm3, %v2057_v23 }
 0x263   : > { %v2395_v33 = vmax.f32 %v2363_v45, 0.0  ;;  %v2269_v63 = vpop.f32.mrf.mxu0 }
 0x264   : > { %v2117_v6 = vpop.f32.mrf.mxu3  ;;  %v1808_v27 = vpop.f32.mrf.mxu1 }
 0x265   : > { %v2427_v35 = vpack.c.bf16 %v2395_v33, %v2395_v33  ;;  %v2176_v58 = vadd.f32 %v2117_v6, %v2008_v49  ;;  %v1864_v11 = vadd.f32 %v1808_v27, %v3825_v56 }
 0x266   : > { %2879 = vmatmul.msk.bf16.gmra.mxu0 %vm682_vm3, %v2209_v25 }
 0x267   : > { %2460 = vst.msk [vmem:[%s3947_s8 + $0x34] sm:$0xf] %vm2446_vm7, %v2427_v35  ;;  %v2328_v39 = vadd.f32 %v2269_v63, %v2176_v58  ;;  %v1951_v60 = vpop.f32.mrf.mxu2 }
 0x268   : > { %v2009_v13 = vadd.f32 %v1951_v60, %v1863_v14 }
 0x269   : > { %v2364_v41 = vadd.f32 %v3935_v3, %v2328_v39 }
 0x26b   : > { %v2396_v2 = vmax.f32 %v2364_v41, 0.0  ;;  %v2271_v16 = vpop.f32.mrf.mxu0 }
 0x26c   : > { %v2119_v21 = vpop.f32.mrf.mxu3  ;;  %v1810_v44 = vpop.f32.mrf.mxu1 }
 0x26d   : > { %v2428_v24 = vpack.c.bf16 %v2396_v2, %v2396_v2  ;;  %v2177_v38 = vadd.f32 %v2119_v21, %v2009_v13  ;;  %v1865_v32 = vadd.f32 %v1810_v44, %v3830_v7 }
 0x26f   : > { %2461 = vst.msk [vmem:[%s3947_s8 + $0x38] sm:$0xf] %vm2446_vm7, %v2428_v24  ;;  %v2329_v47 = vadd.f32 %v2271_v16, %v2177_v38  ;;  %v1954_v34 = vpop.f32.mrf.mxu2 }
 0x270   : > { %v2010_v46 = vadd.f32 %v1954_v34, %v1864_v11 }
 0x271   : > { %v2365_v15 = vadd.f32 %v3935_v3, %v2329_v47 }
 0x273   : > { %v2397_v36 = vmax.f32 %v2365_v15, 0.0  ;;  %v2274_v59 = vpop.f32.mrf.mxu0 }
 0x274   : > { %v2122_v53 = vpop.f32.mrf.mxu3  ;;  %v1813_v9 = vpop.f32.mrf.mxu1 }
 0x275   : > { %v2429_v57 = vpack.c.bf16 %v2397_v36, %v2397_v36  ;;  %v2178_v37 = vadd.f32 %v2122_v53, %v2010_v46  ;;  %v1866_v4 = vadd.f32 %v1813_v9, %v3839_v61 }
 0x277   : > { %2462 = vst.msk [vmem:[%s3947_s8 + $0x3c] sm:$0xf] %vm2446_vm7, %v2429_v57  ;;  %v2330_v52 = vadd.f32 %v2274_v59, %v2178_v37  ;;  %v1956_v17 = vpop.f32.mrf.mxu2 }
 0x278   : > { %v2011_v56 = vadd.f32 %v1956_v17, %v1865_v32 }
 0x279   : > { %v2366_v30 = vadd.f32 %v3935_v3, %v2330_v52 }
 0x27b   : > { %v2398_v1 = vmax.f32 %v2366_v30, 0.0  ;;  %v2276_v50 = vpop.f32.mrf.mxu0 }
 0x27c   : > { %v2124_v10 = vpop.f32.mrf.mxu3  ;;  %v1815_v0 = vpop.f32.mrf.mxu1 }
 0x27d   : > { %v2430_v48 = vpack.c.bf16 %v2398_v1, %v2398_v1  ;;  %v2179_v40 = vadd.f32 %v2124_v10, %v2011_v56  ;;  %v1867_v6 = vadd.f32 %v1815_v0, %v3844_v42 }
 0x27f   : > { %2463 = vst.msk [vmem:[%s3947_s8 + $0x40] sm:$0xf] %vm2446_vm7, %v2430_v48  ;;  %v2331_v23 = vadd.f32 %v2276_v50, %v2179_v40  ;;  %v1959_v18 = vpop.f32.mrf.mxu2 }
 0x280   : > { %v2012_v7 = vadd.f32 %v1959_v18, %v1866_v4 }
 0x281   : > { %v2367_v22 = vadd.f32 %v3935_v3, %v2331_v23 }
 0x283   : > { %v2399_v20 = vmax.f32 %v2367_v22, 0.0  ;;  %v2279_v29 = vpop.f32.mrf.mxu0 }
 0x284   : > { %v2127_v45 = vpop.f32.mrf.mxu3  ;;  %v1818_v49 = vpop.f32.mrf.mxu1 }
 0x285   : > { %v2431_v25 = vpack.c.bf16 %v2399_v20, %v2399_v20  ;;  %v2180_v33 = vadd.f32 %v2127_v45, %v2012_v7  ;;  %v1868_v16 = vadd.f32 %v1818_v49, %v3853_v19 }
 0x287   : > { %2464 = vst.msk [vmem:[%s3947_s8 + $0x44] sm:$0xf] %vm2446_vm7, %v2431_v25  ;;  %v2332_v63 = vadd.f32 %v2279_v29, %v2180_v33  ;;  %v1961_v27 = vpop.f32.mrf.mxu2 }
 0x288   : > { %v2013_v61 = vadd.f32 %v1961_v27, %v1867_v6 }
 0x289   : > { %v2368_v35 = vadd.f32 %v3935_v3, %v2332_v63 }
 0x28b   : > { %v2400_v58 = vmax.f32 %v2368_v35, 0.0  ;;  %v2281_v39 = vpop.f32.mrf.mxu0 }
 0x28c   : > { %v2129_v14 = vpop.f32.mrf.mxu3  ;;  %v1820_v60 = vpop.f32.mrf.mxu1 }
 0x28d   : > { %v2432_v41 = vpack.c.bf16 %v2400_v58, %v2400_v58  ;;  %v2181_v13 = vadd.f32 %v2129_v14, %v2013_v61  ;;  %v1869_v36 = vadd.f32 %v1820_v60, %v3858_v55 }
 0x28f   : > { %2465 = vst.msk [vmem:[%s3947_s8 + $0x48] sm:$0xf] %vm2446_vm7, %v2432_v41  ;;  %v2333_v2 = vadd.f32 %v2281_v39, %v2181_v13  ;;  %v1964_v21 = vpop.f32.mrf.mxu2 }
 0x290   : > { %v2014_v42 = vadd.f32 %v1964_v21, %v1868_v16 }
 0x291   : > { %v2369_v44 = vadd.f32 %v3935_v3, %v2333_v2 }
 0x293   : > { %v2401_v24 = vmax.f32 %v2369_v44, 0.0  ;;  %v2284_v38 = vpop.f32.mrf.mxu0 }
 0x294   : > { %v2132_v47 = vpop.f32.mrf.mxu3  ;;  %v1823_v11 = vpop.f32.mrf.mxu1 }
 0x295   : > { %v2433_v34 = vpack.c.bf16 %v2401_v24, %v2401_v24  ;;  %v2182_v15 = vadd.f32 %v2132_v47, %v2014_v42  ;;  %v1870_v56 = vadd.f32 %v1823_v11, %v3867_v26 }
 0x297   : > { %2466 = vst.msk [vmem:[%s3947_s8 + $0x4c] sm:$0xf] %vm2446_vm7, %v2433_v34  ;;  %v2334_v46 = vadd.f32 %v2284_v38, %v2182_v15  ;;  %v1966_v59 = vpop.f32.mrf.mxu2 }
 0x298   : > { %v2015_v19 = vadd.f32 %v1966_v59, %v1869_v36 }
 0x299   : > { %v2370_v53 = vadd.f32 %v3935_v3, %v2334_v46 }
 0x29b   : > { %v2402_v9 = vmax.f32 %v2370_v53, 0.0  ;;  %v2286_v57 = vpop.f32.mrf.mxu0 }
 0x29c   : > { %v2134_v37 = vpop.f32.mrf.mxu3  ;;  %v1825_v52 = vpop.f32.mrf.mxu1 }
 0x29d   : > { %v2434_v32 = vpack.c.bf16 %v2402_v9, %v2402_v9  ;;  %v2183_v17 = vadd.f32 %v2134_v37, %v2015_v19  ;;  %v1871_v22 = vadd.f32 %v1825_v52, %v3872_v28 }
 0x29f   : > { %2467 = vst.msk [vmem:[%s3947_s8 + $0x50] sm:$0xf] %vm2446_vm7, %v2434_v32  ;;  %v2335_v30 = vadd.f32 %v2286_v57, %v2183_v17  ;;  %v1969_v1 = vpop.f32.mrf.mxu2 }
 0x2a0   : > { %v2016_v55 = vadd.f32 %v1969_v1, %v1870_v56 }
 0x2a1   : > { %v2371_v50 = vadd.f32 %v3935_v3, %v2335_v30 }
 0x2a3   : > { %v2403_v10 = vmax.f32 %v2371_v50, 0.0  ;;  %v2289_v0 = vpop.f32.mrf.mxu0 }
 0x2a4   : > { %v2137_v48 = vpop.f32.mrf.mxu3  ;;  %v1828_v40 = vpop.f32.mrf.mxu1 }
 0x2a5   : > { %v2435_v23 = vpack.c.bf16 %v2403_v10, %v2403_v10  ;;  %v2184_v4 = vadd.f32 %v2137_v48, %v2016_v55  ;;  %v1872_v27 = vadd.f32 %v1828_v40, %v3881_v43 }
 0x2a7   : > { %2468 = vst.msk [vmem:[%s3947_s8 + $0x54] sm:$0xf] %vm2446_vm7, %v2435_v23  ;;  %v2336_v18 = vadd.f32 %v2289_v0, %v2184_v4  ;;  %v1971_v7 = vpop.f32.mrf.mxu2 }
 0x2a8   : > { %v2017_v26 = vadd.f32 %v1971_v7, %v1871_v22 }
 0x2a9   : > { %v2372_v20 = vadd.f32 %v3935_v3, %v2336_v18 }
 0x2ab   : > { %v2404_v29 = vmax.f32 %v2372_v20, 0.0  ;;  %v2291_v45 = vpop.f32.mrf.mxu0 }
 0x2ac   : > { %v2139_v49 = vpop.f32.mrf.mxu3  ;;  %v1830_v25 = vpop.f32.mrf.mxu1 }
 0x2ad   : > { %v2436_v33 = vpack.c.bf16 %v2404_v29, %v2404_v29  ;;  %v2185_v63 = vadd.f32 %v2139_v49, %v2017_v26  ;;  %v1873_v16 = vadd.f32 %v1830_v25, %v3886_v8 }
 0x2af   : > { %2469 = vst.msk [vmem:[%s3947_s8 + $0x58] sm:$0xf] %vm2446_vm7, %v2436_v33  ;;  %v2337_v6 = vadd.f32 %v2291_v45, %v2185_v63  ;;  %v1974_v35 = vpop.f32.mrf.mxu2 }
 0x2b0   : > { %v2018_v28 = vadd.f32 %v1974_v35, %v1872_v27 }
 0x2b1   : > { %v2373_v61 = vadd.f32 %v3935_v3, %v2337_v6 }
 0x2b3   : > { %v2405_v58 = vmax.f32 %v2373_v61, 0.0  ;;  %v2294_v39 = vpop.f32.mrf.mxu0 }
 0x2b4   : > { %v2142_v14 = vpop.f32.mrf.mxu3  ;;  %v1833_v60 = vpop.f32.mrf.mxu1 }
 0x2b5   : > { %v2437_v41 = vpack.c.bf16 %v2405_v58, %v2405_v58  ;;  %v2186_v13 = vadd.f32 %v2142_v14, %v2018_v28  ;;  %v1874_v46 = vadd.f32 %v1833_v60, %v3895_v5 }
 0x2b7   : > { %2470 = vst.msk [vmem:[%s3947_s8 + $0x5c] sm:$0xf] %vm2446_vm7, %v2437_v41  ;;  %v2338_v2 = vadd.f32 %v2294_v39, %v2186_v13  ;;  %v1976_v21 = vpop.f32.mrf.mxu2 }
 0x2b8   : > { %v2019_v43 = vadd.f32 %v1976_v21, %v1873_v16 }
 0x2b9   : > { %v2374_v44 = vadd.f32 %v3935_v3, %v2338_v2 }
 0x2bb   : > { %v2406_v42 = vmax.f32 %v2374_v44, 0.0  ;;  %v2296_v24 = vpop.f32.mrf.mxu0 }
 0x2bc   : > { %v2144_v38 = vpop.f32.mrf.mxu3  ;;  %v1835_v47 = vpop.f32.mrf.mxu1 }
 0x2bd   : > { %v2438_v11 = vpack.c.bf16 %v2406_v42, %v2406_v42  ;;  %v2187_v34 = vadd.f32 %v2144_v38, %v2019_v43  ;;  %v1875_v17 = vadd.f32 %v1835_v47, %v3900_v12 }
 0x2bf   : > { %2471 = vst.msk [vmem:[%s3947_s8 + $0x60] sm:$0xf] %vm2446_vm7, %v2438_v11  ;;  %v2339_v15 = vadd.f32 %v2296_v24, %v2187_v34  ;;  %v1979_v36 = vpop.f32.mrf.mxu2 }
 0x2c0   : > { %v2020_v8 = vadd.f32 %v1979_v36, %v1874_v46 }
 0x2c1   : > { %v2375_v59 = vadd.f32 %v3935_v3, %v2339_v15 }
 0x2c3   : > { %v2407_v53 = vmax.f32 %v2375_v59, 0.0  ;;  %v2299_v19 = vpop.f32.mrf.mxu0 }
 0x2c4   : > { %v2147_v9 = vpop.f32.mrf.mxu3  ;;  %v1838_v52 = vpop.f32.mrf.mxu1 }
 0x2c5   : > { %v2439_v57 = vpack.c.bf16 %v2407_v53, %v2407_v53  ;;  %v2188_v37 = vadd.f32 %v2147_v9, %v2020_v8  ;;  %v1876_v40 = vadd.f32 %v1838_v52, %v3909_v51 }
 0x2c7   : > { %2472 = vst.msk [vmem:[%s3947_s8 + $0x64] sm:$0xf] %vm2446_vm7, %v2439_v57  ;;  %v2340_v32 = vadd.f32 %v2299_v19, %v2188_v37  ;;  %v1981_v30 = vpop.f32.mrf.mxu2 }
 0x2c8   : > { %v2021_v5 = vadd.f32 %v1981_v30, %v1875_v17 }
 0x2c9   : > { %v2376_v56 = vadd.f32 %v3935_v3, %v2340_v32 }
 0x2cb   : > { %v2408_v1 = vmax.f32 %v2376_v56, 0.0  ;;  %v2301_v50 = vpop.f32.mrf.mxu0 }
 0x2cc   : > { %v2149_v55 = vpop.f32.mrf.mxu3  ;;  %v1840_v4 = vpop.f32.mrf.mxu1 }
 0x2cd   : > { %v2440_v10 = vpack.c.bf16 %v2408_v1, %v2408_v1  ;;  %v2189_v0 = vadd.f32 %v2149_v55, %v2021_v5  ;;  %v1877_v49 = vadd.f32 %v1840_v4, %v3914_v31 }
 0x2cf   : > { %2473 = vst.msk [vmem:[%s3947_s8 + $0x68] sm:$0xf] %vm2446_vm7, %v2440_v10  ;;  %v2341_v48 = vadd.f32 %v2301_v50, %v2189_v0  ;;  %v1984_v23 = vpop.f32.mrf.mxu2 }
 0x2d0   : > { %v2022_v12 = vadd.f32 %v1984_v23, %v1876_v40 }
 0x2d1   : > { %v2377_v18 = vadd.f32 %v3935_v3, %v2341_v48 }
 0x2d3   : > { %v2409_v22 = vmax.f32 %v2377_v18, 0.0  ;;  %v2304_v7 = vpop.f32.mrf.mxu0 }
 0x2d4   : > { %v2152_v20 = vpop.f32.mrf.mxu3  ;;  %v1843_v63 = vpop.f32.mrf.mxu1 }
 0x2d5   : > { %v2441_v26 = vpack.c.bf16 %v2409_v22, %v2409_v22  ;;  %v2190_v29 = vadd.f32 %v2152_v20, %v2022_v12  ;;  %v1878_v39 = vadd.f32 %v1843_v63, %v3923_v54 }
 0x2d7   : > { %2474 = vst.msk [vmem:[%s3947_s8 + $0x6c] sm:$0xf] %vm2446_vm7, %v2441_v26  ;;  %v2342_v45 = vadd.f32 %v2304_v7, %v2190_v29  ;;  %v1986_v25 = vpop.f32.mrf.mxu2 }
 0x2d8   : > { %v2023_v51 = vadd.f32 %v1986_v25, %v1877_v49 }
 0x2d9   : > { %v2378_v33 = vadd.f32 %v3935_v3, %v2342_v45 }
 0x2db   : > { %v2410_v6 = vmax.f32 %v2378_v33, 0.0  ;;  %v2306_v27 = vpop.f32.mrf.mxu0 }
 0x2dc   : > { %v2154_v35 = vpop.f32.mrf.mxu3  ;;  %v1845_v13 = vpop.f32.mrf.mxu1 }
 0x2dd   : > { %v2442_v61 = vpack.c.bf16 %v2410_v6, %v2410_v6  ;;  %v2191_v28 = vadd.f32 %v2154_v35, %v2023_v51  ;;  %v1879_v42 = vadd.f32 %v1845_v13, %v3928_v62 }
 0x2df   : > { %2475 = vst.msk [vmem:[%s3947_s8 + $0x70] sm:$0xf] %vm2446_vm7, %v2442_v61  ;;  %v2343_v58 = vadd.f32 %v2306_v27, %v2191_v28  ;;  %v1989_v14 = vpop.f32.mrf.mxu2 }
 0x2e0   : > { %v2024_v31 = vadd.f32 %v1989_v14, %v1878_v39 }
 0x2e1   : > { %v2379_v60 = vadd.f32 %v3935_v3, %v2343_v58 }
 0x2e3   : > { %v2411_v41 = vmax.f32 %v2379_v60, 0.0  ;;  %v2309_v2 = vpop.f32.mrf.mxu0 }
 0x2e4   : > { %v2157_v16 = vpop.f32.mrf.mxu3 }
 0x2e5   : > { %v2443_v21 = vpack.c.bf16 %v2411_v41, %v2411_v41  ;;  %v2192_v44 = vadd.f32 %v2157_v16, %v2024_v31 }
 0x2e7   : > { %2476 = vst.msk [vmem:[%s3947_s8 + $0x74] sm:$0xf] %vm2446_vm7, %v2443_v21  ;;  %v2344_v43 = vadd.f32 %v2309_v2, %v2192_v44  ;;  %v1991_v24 = vpop.f32.mrf.mxu2 }
 0x2e8   : > { %v2025_v38 = vadd.f32 %v1991_v24, %v1879_v42 }
 0x2e9   : > { %v2380_v54 = vadd.f32 %v3935_v3, %v2344_v43 }
 0x2eb   : > { %v2412_v47 = vmax.f32 %v2380_v54, 0.0  ;;  %v2311_v46 = vpop.f32.mrf.mxu0 }
 0x2ec   : > { %v2159_v11 = vpop.f32.mrf.mxu3 }
 0x2ed   : > { %v2444_v34 = vpack.c.bf16 %v2412_v47, %v2412_v47  ;;  %v2193_v15 = vadd.f32 %v2159_v11, %v2025_v38 }
 0x2ef   : > { %2477 = vst.msk [vmem:[%s3947_s8 + $0x78] sm:$0xf] %vm2446_vm7, %v2444_v34  ;;  %v2345_v36 = vadd.f32 %v2311_v46, %v2193_v15 }
 0x2f1   : > { %v2381_v59 = vadd.f32 %v3935_v3, %v2345_v36 }
 0x2f3   : > { %v2413_v8 = vmax.f32 %v2381_v59, 0.0 }
 0x2f5   : > { %v2445_v53 = vpack.c.bf16 %v2413_v8, %v2413_v8 }
 0x2f7   : > { %2478 = vst.msk [vmem:[%s3947_s8 + $0x7c] sm:$0xf] %vm2446_vm7, %v2445_v53 }
 0x2f8 PF: > { %s13_s12 = sadd.s32 1, %s2950_s12  }
 0x2f9   : > { %p10_p4 = scmp.ge.s32.totalorder %s13_s12, 4  }
 0x2fb   :  { %12 = sbr.rel (!%p10_p4) target bundleno = 1 (0x1), region = 70 }

</bundles_post_ra>
